<compile_context>
chip_gen: v7x
topology: tpu7x:2x2x1
jax: 0.10.0
libtpu: 0.0.40
codegen_flags: <defaults>
</compile_context>

<pallas_src>
import functools

import jax
import jax.numpy as jnp
from jax import lax
from jax.experimental import pallas as pl
from jax.experimental.pallas import tpu as pltpu


def _fused_resnet_block_kernel(x_ref, w0_ref, b0_ref, w1_ref, b1_ref, mask_ref,
                               o_ref, zbuf, *, d, h, w, c, cdt):
    """One batch sample: out = relu(x) + conv1(relu(conv0(relu(x)))) (+ biases).

    x_ref    : (1, C, (D+4)*PP) zero-padded input, PP = (H+2)*(W+2), f32
    w*_ref   : (C, 27*C) tap-major / channel-minor weight matrices, compute dtype
    b*_ref   : (C, 1) f32 biases
    mask_ref : (1, D*PP) f32, 1.0 on real (h, w) columns, 0.0 on halo columns
    o_ref    : (1, C, D*PP) f32 output in NCDHW order (halo columns discarded outside)
    zbuf     : (C, (D+4)*PP) f32 VMEM scratch staging relu(conv0) with zero margins
    """
    wp = w + 2
    pp = (h + 2) * (w + 2)             # padded plane size
    m = d * pp                         # GEMM columns (lane axis)
    base = 2 * pp                      # flat offset of output voxel (d=0, hq=0, wq=0)
    offs = [(kd - 1) * pp + (kh - 1) * wp + (kw - 1)
            for kd in range(3) for kh in range(3) for kw in range(3)]

    x_relu = jnp.maximum(x_ref[0], 0.0)          # ReLU applied once, in f32
    x_mxu = x_relu.astype(cdt)                   # MXU operand copy (bf16 by default)

    # ---- conv0: in-VMEM im2col (27 contiguous shifted slices) + one MXU matmul ----
    p0 = jnp.concatenate([x_mxu[:, base + off: base + off + m] for off in offs], axis=0)
    y0 = jnp.dot(w0_ref[...], p0, preferred_element_type=jnp.float32) + b0_ref[...]

    # relu(conv0); halo columns become conv1's zero padding; re-attach zero margins in a
    # VMEM scratch so conv1 can use the same contiguous shifted-slice scheme.
    z = jnp.maximum(y0, 0.0) * mask_ref[...]
    zbuf[...] = jnp.zeros(zbuf.shape, zbuf.dtype)
    zbuf[:, base:base + m] = z
    z_full = zbuf[...].astype(cdt)

    # ---- conv1 + bias + relu(x) residual (all lane-dense) ----
    p1 = jnp.concatenate([z_full[:, base + off: base + off + m] for off in offs], axis=0)
    y1 = jnp.dot(w1_ref[...], p1, preferred_element_type=jnp.float32)
    out = x_relu[:, base:base + m] + y1 + b1_ref[...]
    o_ref[...] = out.reshape(o_ref.shape).astype(o_ref.dtype)


@functools.partial(jax.jit, static_argnames=("compute_dtype",))
def resnet_block_pallas(x, w0, b0, w1, b1, *, compute_dtype=jnp.bfloat16):
    """ResNetBlock forward.  x: (N, C, D, H, W) float32 (PyTorch NCDHW layout)."""
    n, c, d, h, w = x.shape
    hp, wp = h + 2, w + 2
    pp = hp * wp
    m = d * pp

    # Zero-pad once: 1 voxel in H/W, 2 planes in D (the 2nd D plane is flat-index headroom
    # for the in-kernel shifted-tap slices).  relu(0) == 0, so padding before the in-kernel
    # ReLU is exact.  The reshape to (N, C, (D+4)*PP) is layout-free.
    x_pad = jnp.pad(x, ((0, 0), (0, 0), (2, 2), (1, 1), (1, 1)))
    x_flat = x_pad.reshape(n, c, (d + 4) * pp)

    # torch Conv3d weight (Cout, Cin, 3, 3, 3) -> (Cout, 27*Cin), columns ordered
    # (kd, kh, kw, ci) to match the kernel's tap-major / channel-minor patch rows.
    def to_wmat(wgt):
        return jnp.transpose(wgt, (0, 2, 3, 4, 1)).reshape(c, 27 * c).astype(compute_dtype)

    w0m, w1m = to_wmat(w0), to_wmat(w1)
    b0c = b0.reshape(c, 1).astype(jnp.float32)
    b1c = b1.reshape(c, 1).astype(jnp.float32)

    # 1.0 on real (h, w) columns of each flattened padded plane, 0.0 on the halo columns.
    hq = jnp.arange(hp)
    wq = jnp.arange(wp)
    plane = (((hq >= 1) & (hq <= h))[:, None] & ((wq >= 1) & (wq <= w))[None, :])
    mask = jnp.tile(plane.reshape(-1), d).astype(jnp.float32).reshape(1, m)

    kernel = functools.partial(_fused_resnet_block_kernel,
                               d=d, h=h, w=w, c=c, cdt=compute_dtype)

    flops = 2 * 2 * n * m * 27 * c * c                    # both convs, incl. halo columns
    bytes_accessed = (x_flat.size + n * c * m) * 4 + 2 * 27 * c * c * 2

    # TODO(synk): for very large volumes / channel counts add D-slab tiling with a halo DMA
    # (memory_space=pl.ANY) so the per-step VMEM stays bounded on v7x's 64 MiB; at these
    # sizes one sample per grid step fits comfortably under the 32 MiB scoped limit.
    out_flat = pl.pallas_call(
        kernel,
        out_shape=jax.ShapeDtypeStruct((n, c, m), jnp.float32),
        grid=(n,),
        in_specs=[
            pl.BlockSpec((1, c, (d + 4) * pp), lambda i: (i, 0, 0)),  # padded input sample
            pl.BlockSpec((c, 27 * c), lambda i: (0, 0)),              # w0 (stays resident)
            pl.BlockSpec((c, 1), lambda i: (0, 0)),                   # b0
            pl.BlockSpec((c, 27 * c), lambda i: (0, 0)),              # w1
            pl.BlockSpec((c, 1), lambda i: (0, 0)),                   # b1
            pl.BlockSpec((1, m), lambda i: (0, 0)),                   # halo mask
        ],
        out_specs=pl.BlockSpec((1, c, m), lambda i: (i, 0, 0)),
        scratch_shapes=[pltpu.VMEM((c, (d + 4) * pp), jnp.float32)],  # relu(conv0) staging
        compiler_params=pltpu.CompilerParams(
            dimension_semantics=("parallel",),            # batch across TCs (v7x megacore)
            vmem_limit_bytes=32 * 1024 * 1024),
        cost_estimate=pl.CostEstimate(
            flops=flops, transcendentals=0, bytes_accessed=bytes_accessed),
    )(x_flat, w0m, b0c, w1m, b1c, mask)

    # Drop the halo columns and restore (N, C, D, H, W) -- already channel-first, no transpose.
    return out_flat.reshape(n, c, d, hp, wp)[:, :, :, 1:h + 1, 1:w + 1]


def resnet_block_reference(x, w0, b0, w1, b1, operand_dtype=jnp.float32):
    """Pure-JAX reference matching ResNetBlock.forward (inplace-ReLU semantics).
    With operand_dtype=bfloat16 it emulates the kernel's MXU operand rounding
    (f32 accumulation either way) so the comparison can be tight."""
    dn = lax.conv_dimension_numbers(x.shape, w0.shape, ("NCDHW", "OIDHW", "NCDHW"))

    def rnd(a):
        return a.astype(operand_dtype).astype(jnp.float32)

    def conv(z, wgt, bias):
        y = lax.conv_general_dilated(
            rnd(z), rnd(wgt), window_strides=(1, 1, 1),
            padding=((1, 1), (1, 1), (1, 1)),
            dimension_numbers=dn, precision=lax.Precision.HIGHEST)
        return y + bias.reshape(1, -1, 1, 1, 1)

    r = jnp.maximum(x, 0.0)                 # ReLU(inplace=True) mutated x
    out = conv(r, w0, b0)
    out = conv(jnp.maximum(out, 0.0), w1, b1)
    return r + out


if __name__ == "__main__":
    N, C, D, H, W = 2, 8, 8, 8, 8
    key = jax.random.PRNGKey(0)
    kx, k0, k1, kb0, kb1 = jax.random.split(key, 5)
    x = jax.random.normal(kx, (N, C, D, H, W), dtype=jnp.float32)
    w0 = 0.1 * jax.random.normal(k0, (C, C, 3, 3, 3), dtype=jnp.float32)
    b0 = 0.05 * jax.random.normal(kb0, (C,), dtype=jnp.float32)
    w1 = 0.1 * jax.random.normal(k1, (C, C, 3, 3, 3), dtype=jnp.float32)
    b1 = 0.05 * jax.random.normal(kb1, (C,), dtype=jnp.float32)

    out = jax.block_until_ready(resnet_block_pallas(x, w0, b0, w1, b1))
    assert out.shape == x.shape and out.dtype == x.dtype

    # Tight check against a reference with the same bf16 operand rounding: any tap-ordering /
    # layout / indexing bug would be O(1) off.  The 1e-2 margin only covers double-rounding
    # divergence between two independently rounded bf16 pipelines.
    ref_rounded = resnet_block_reference(x, w0, b0, w1, b1, operand_dtype=jnp.bfloat16)
    err_tight = float(jnp.max(jnp.abs(out - ref_rounded)))
    # Loose sanity check against the exact f32 reference (bounds total bf16 rounding error).
    ref_f32 = resnet_block_reference(x, w0, b0, w1, b1)
    err_f32 = float(jnp.max(jnp.abs(out - ref_f32)))

    assert err_tight < 1e-2, f"mismatch vs bf16-rounded reference: {err_tight}"
    assert err_f32 < 1.5e-1, f"mismatch vs f32 reference: {err_f32}"
    print("KERNEL_OK")
</pallas_src>

<mosaic_0001>
module attributes {stable_mosaic.version = 11 : i64} {
  func.func @_fused_resnet_block_kernel(%arg0: i32, %arg1: memref<1x8x1200xf32, #tpu.memory_space<vmem>>, %arg2: memref<8x216xbf16, #tpu.memory_space<vmem>>, %arg3: memref<8x1xf32, #tpu.memory_space<vmem>>, %arg4: memref<8x216xbf16, #tpu.memory_space<vmem>>, %arg5: memref<8x1xf32, #tpu.memory_space<vmem>>, %arg6: memref<1x800xf32, #tpu.memory_space<vmem>>, %arg7: memref<1x8x800xf32, #tpu.memory_space<vmem>>, %arg8: memref<8x1200xf32, #tpu.memory_space<vmem>>) attributes {dimension_semantics = [#tpu.dimension_semantics<parallel>], iteration_bounds = array<i64: 2>, scalar_prefetch = 0 : i64, scratch_operands = 1 : i64, tpu.core_type = #tpu.core_type<tc>, window_params = [{transform_indices = @transform_0, window_bounds = array<i64: 1, 8, 1200>}, {pipeline_mode = #tpu.pipeline_mode<synchronous>, transform_indices = @transform_1, window_bounds = array<i64: 8, 216>}, {pipeline_mode = #tpu.pipeline_mode<synchronous>, transform_indices = @transform_2, window_bounds = array<i64: 8, 1>}, {pipeline_mode = #tpu.pipeline_mode<synchronous>, transform_indices = @transform_3, window_bounds = array<i64: 8, 216>}, {pipeline_mode = #tpu.pipeline_mode<synchronous>, transform_indices = @transform_4, window_bounds = array<i64: 8, 1>}, {pipeline_mode = #tpu.pipeline_mode<synchronous>, transform_indices = @transform_5, window_bounds = array<i64: 1, 800>}, {transform_indices = @transform_6, window_bounds = array<i64: 1, 8, 800>}]} {
    %c0 = arith.constant 0 : index
    %c0_0 = arith.constant 0 : index
    %c0_1 = arith.constant 0 : index
    %0 = vector.load %arg1[%c0, %c0_0, %c0_1] : memref<1x8x1200xf32, #tpu.memory_space<vmem>>, vector<1x8x1200xf32>
    %1 = vector.shape_cast %0 : vector<1x8x1200xf32> to vector<8x1200xf32>
    %cst = arith.constant 0.000000e+00 : f32
    %2 = vector.broadcast %cst : f32 to vector<8x1200xf32>
    %3 = arith.maximumf %1, %2 : vector<8x1200xf32>
    %4 = arith.truncf %3 : vector<8x1200xf32> to vector<8x1200xbf16>
    %5 = vector.extract_strided_slice %4 {offsets = [0, 89], sizes = [8, 800], strides = [1, 1]} : vector<8x1200xbf16> to vector<8x800xbf16>
    %6 = vector.extract_strided_slice %4 {offsets = [0, 90], sizes = [8, 800], strides = [1, 1]} : vector<8x1200xbf16> to vector<8x800xbf16>
    %7 = vector.extract_strided_slice %4 {offsets = [0, 91], sizes = [8, 800], strides = [1, 1]} : vector<8x1200xbf16> to vector<8x800xbf16>
    %8 = vector.extract_strided_slice %4 {offsets = [0, 99], sizes = [8, 800], strides = [1, 1]} : vector<8x1200xbf16> to vector<8x800xbf16>
    %9 = vector.extract_strided_slice %4 {offsets = [0, 100], sizes = [8, 800], strides = [1, 1]} : vector<8x1200xbf16> to vector<8x800xbf16>
    %10 = vector.extract_strided_slice %4 {offsets = [0, 101], sizes = [8, 800], strides = [1, 1]} : vector<8x1200xbf16> to vector<8x800xbf16>
    %11 = vector.extract_strided_slice %4 {offsets = [0, 109], sizes = [8, 800], strides = [1, 1]} : vector<8x1200xbf16> to vector<8x800xbf16>
    %12 = vector.extract_strided_slice %4 {offsets = [0, 110], sizes = [8, 800], strides = [1, 1]} : vector<8x1200xbf16> to vector<8x800xbf16>
    %13 = vector.extract_strided_slice %4 {offsets = [0, 111], sizes = [8, 800], strides = [1, 1]} : vector<8x1200xbf16> to vector<8x800xbf16>
    %14 = vector.extract_strided_slice %4 {offsets = [0, 189], sizes = [8, 800], strides = [1, 1]} : vector<8x1200xbf16> to vector<8x800xbf16>
    %15 = vector.extract_strided_slice %4 {offsets = [0, 190], sizes = [8, 800], strides = [1, 1]} : vector<8x1200xbf16> to vector<8x800xbf16>
    %16 = vector.extract_strided_slice %4 {offsets = [0, 191], sizes = [8, 800], strides = [1, 1]} : vector<8x1200xbf16> to vector<8x800xbf16>
    %17 = vector.extract_strided_slice %4 {offsets = [0, 199], sizes = [8, 800], strides = [1, 1]} : vector<8x1200xbf16> to vector<8x800xbf16>
    %18 = vector.extract_strided_slice %4 {offsets = [0, 200], sizes = [8, 800], strides = [1, 1]} : vector<8x1200xbf16> to vector<8x800xbf16>
    %19 = vector.extract_strided_slice %4 {offsets = [0, 201], sizes = [8, 800], strides = [1, 1]} : vector<8x1200xbf16> to vector<8x800xbf16>
    %20 = vector.extract_strided_slice %4 {offsets = [0, 209], sizes = [8, 800], strides = [1, 1]} : vector<8x1200xbf16> to vector<8x800xbf16>
    %21 = vector.extract_strided_slice %4 {offsets = [0, 210], sizes = [8, 800], strides = [1, 1]} : vector<8x1200xbf16> to vector<8x800xbf16>
    %22 = vector.extract_strided_slice %4 {offsets = [0, 211], sizes = [8, 800], strides = [1, 1]} : vector<8x1200xbf16> to vector<8x800xbf16>
    %23 = vector.extract_strided_slice %4 {offsets = [0, 289], sizes = [8, 800], strides = [1, 1]} : vector<8x1200xbf16> to vector<8x800xbf16>
    %24 = vector.extract_strided_slice %4 {offsets = [0, 290], sizes = [8, 800], strides = [1, 1]} : vector<8x1200xbf16> to vector<8x800xbf16>
    %25 = vector.extract_strided_slice %4 {offsets = [0, 291], sizes = [8, 800], strides = [1, 1]} : vector<8x1200xbf16> to vector<8x800xbf16>
    %26 = vector.extract_strided_slice %4 {offsets = [0, 299], sizes = [8, 800], strides = [1, 1]} : vector<8x1200xbf16> to vector<8x800xbf16>
    %27 = vector.extract_strided_slice %4 {offsets = [0, 300], sizes = [8, 800], strides = [1, 1]} : vector<8x1200xbf16> to vector<8x800xbf16>
    %28 = vector.extract_strided_slice %4 {offsets = [0, 301], sizes = [8, 800], strides = [1, 1]} : vector<8x1200xbf16> to vector<8x800xbf16>
    %29 = vector.extract_strided_slice %4 {offsets = [0, 309], sizes = [8, 800], strides = [1, 1]} : vector<8x1200xbf16> to vector<8x800xbf16>
    %30 = vector.extract_strided_slice %4 {offsets = [0, 310], sizes = [8, 800], strides = [1, 1]} : vector<8x1200xbf16> to vector<8x800xbf16>
    %31 = vector.extract_strided_slice %4 {offsets = [0, 311], sizes = [8, 800], strides = [1, 1]} : vector<8x1200xbf16> to vector<8x800xbf16>
    %32 = tpu.concatenate %5, %6, %7, %8, %9, %10, %11, %12, %13, %14, %15, %16, %17, %18, %19, %20 in 0 : vector<8x800xbf16>, vector<8x800xbf16>, vector<8x800xbf16>, vector<8x800xbf16>, vector<8x800xbf16>, vector<8x800xbf16>, vector<8x800xbf16>, vector<8x800xbf16>, vector<8x800xbf16>, vector<8x800xbf16>, vector<8x800xbf16>, vector<8x800xbf16>, vector<8x800xbf16>, vector<8x800xbf16>, vector<8x800xbf16>, vector<8x800xbf16> -> vector<128x800xbf16>
    %33 = tpu.concatenate %21, %22, %23, %24, %25, %26, %27, %28, %29, %30, %31 in 0 : vector<8x800xbf16>, vector<8x800xbf16>, vector<8x800xbf16>, vector<8x800xbf16>, vector<8x800xbf16>, vector<8x800xbf16>, vector<8x800xbf16>, vector<8x800xbf16>, vector<8x800xbf16>, vector<8x800xbf16>, vector<8x800xbf16> -> vector<88x800xbf16>
    %34 = tpu.concatenate %32, %33 in 0 : vector<128x800xbf16>, vector<88x800xbf16> -> vector<216x800xbf16>
    %c0_2 = arith.constant 0 : index
    %c0_3 = arith.constant 0 : index
    %35 = vector.load %arg2[%c0_2, %c0_3] : memref<8x216xbf16, #tpu.memory_space<vmem>>, vector<8x216xbf16>
    %cst_4 = arith.constant dense<0.000000e+00> : vector<8x800xf32>
    %36 = tpu.matmul %35, %34, %cst_4 {dimension_numbers = #tpu.dot_dimension_numbers<[1], [0], [0], [1], [0, 0, 1, 1], [], []>} : vector<8x216xbf16>, vector<216x800xbf16>, vector<8x800xf32> -> vector<8x800xf32>
    %c0_5 = arith.constant 0 : index
    %c0_6 = arith.constant 0 : index
    %37 = vector.load %arg3[%c0_5, %c0_6] : memref<8x1xf32, #tpu.memory_space<vmem>>, vector<8x1xf32>
    %38 = vector.broadcast %37 : vector<8x1xf32> to vector<8x800xf32>
    %39 = arith.addf %36, %38 : vector<8x800xf32>
    %cst_7 = arith.constant 0.000000e+00 : f32
    %40 = vector.broadcast %cst_7 : f32 to vector<8x800xf32>
    %41 = arith.maximumf %39, %40 : vector<8x800xf32>
    %c0_8 = arith.constant 0 : index
    %c0_9 = arith.constant 0 : index
    %42 = vector.load %arg6[%c0_8, %c0_9] : memref<1x800xf32, #tpu.memory_space<vmem>>, vector<1x800xf32>
    %43 = vector.broadcast %42 : vector<1x800xf32> to vector<8x800xf32>
    %44 = arith.mulf %41, %43 : vector<8x800xf32>
    %cst_10 = arith.constant 0.000000e+00 : f32
    %45 = vector.broadcast %cst_10 : f32 to vector<8x1200xf32>
    %c0_11 = arith.constant 0 : index
    %c0_12 = arith.constant 0 : index
    %46 = vector.load %arg8[%c0_11, %c0_12] : memref<8x1200xf32, #tpu.memory_space<vmem>>, vector<8x1200xf32>
    tpu.vector_store %arg8[%c0_11, %c0_12], %45 {strides = array<i32>} : memref<8x1200xf32, #tpu.memory_space<vmem>>, vector<8x1200xf32>,
    %c0_13 = arith.constant 0 : index
    %c200 = arith.constant 200 : index
    %47 = vector.load %arg8[%c0_13, %c200] : memref<8x1200xf32, #tpu.memory_space<vmem>>, vector<8x800xf32>
    tpu.vector_store %arg8[%c0_13, %c200], %44 {strides = array<i32>} : memref<8x1200xf32, #tpu.memory_space<vmem>>, vector<8x800xf32>,
    %c0_14 = arith.constant 0 : index
    %c0_15 = arith.constant 0 : index
    %48 = vector.load %arg8[%c0_14, %c0_15] : memref<8x1200xf32, #tpu.memory_space<vmem>>, vector<8x1200xf32>
    %49 = arith.truncf %48 : vector<8x1200xf32> to vector<8x1200xbf16>
    %50 = vector.extract_strided_slice %49 {offsets = [0, 89], sizes = [8, 800], strides = [1, 1]} : vector<8x1200xbf16> to vector<8x800xbf16>
    %51 = vector.extract_strided_slice %49 {offsets = [0, 90], sizes = [8, 800], strides = [1, 1]} : vector<8x1200xbf16> to vector<8x800xbf16>
    %52 = vector.extract_strided_slice %49 {offsets = [0, 91], sizes = [8, 800], strides = [1, 1]} : vector<8x1200xbf16> to vector<8x800xbf16>
    %53 = vector.extract_strided_slice %49 {offsets = [0, 99], sizes = [8, 800], strides = [1, 1]} : vector<8x1200xbf16> to vector<8x800xbf16>
    %54 = vector.extract_strided_slice %49 {offsets = [0, 100], sizes = [8, 800], strides = [1, 1]} : vector<8x1200xbf16> to vector<8x800xbf16>
    %55 = vector.extract_strided_slice %49 {offsets = [0, 101], sizes = [8, 800], strides = [1, 1]} : vector<8x1200xbf16> to vector<8x800xbf16>
    %56 = vector.extract_strided_slice %49 {offsets = [0, 109], sizes = [8, 800], strides = [1, 1]} : vector<8x1200xbf16> to vector<8x800xbf16>
    %57 = vector.extract_strided_slice %49 {offsets = [0, 110], sizes = [8, 800], strides = [1, 1]} : vector<8x1200xbf16> to vector<8x800xbf16>
    %58 = vector.extract_strided_slice %49 {offsets = [0, 111], sizes = [8, 800], strides = [1, 1]} : vector<8x1200xbf16> to vector<8x800xbf16>
    %59 = vector.extract_strided_slice %49 {offsets = [0, 189], sizes = [8, 800], strides = [1, 1]} : vector<8x1200xbf16> to vector<8x800xbf16>
    %60 = vector.extract_strided_slice %49 {offsets = [0, 190], sizes = [8, 800], strides = [1, 1]} : vector<8x1200xbf16> to vector<8x800xbf16>
    %61 = vector.extract_strided_slice %49 {offsets = [0, 191], sizes = [8, 800], strides = [1, 1]} : vector<8x1200xbf16> to vector<8x800xbf16>
    %62 = vector.extract_strided_slice %49 {offsets = [0, 199], sizes = [8, 800], strides = [1, 1]} : vector<8x1200xbf16> to vector<8x800xbf16>
    %63 = vector.extract_strided_slice %49 {offsets = [0, 200], sizes = [8, 800], strides = [1, 1]} : vector<8x1200xbf16> to vector<8x800xbf16>
    %64 = vector.extract_strided_slice %49 {offsets = [0, 201], sizes = [8, 800], strides = [1, 1]} : vector<8x1200xbf16> to vector<8x800xbf16>
    %65 = vector.extract_strided_slice %49 {offsets = [0, 209], sizes = [8, 800], strides = [1, 1]} : vector<8x1200xbf16> to vector<8x800xbf16>
    %66 = vector.extract_strided_slice %49 {offsets = [0, 210], sizes = [8, 800], strides = [1, 1]} : vector<8x1200xbf16> to vector<8x800xbf16>
    %67 = vector.extract_strided_slice %49 {offsets = [0, 211], sizes = [8, 800], strides = [1, 1]} : vector<8x1200xbf16> to vector<8x800xbf16>
    %68 = vector.extract_strided_slice %49 {offsets = [0, 289], sizes = [8, 800], strides = [1, 1]} : vector<8x1200xbf16> to vector<8x800xbf16>
    %69 = vector.extract_strided_slice %49 {offsets = [0, 290], sizes = [8, 800], strides = [1, 1]} : vector<8x1200xbf16> to vector<8x800xbf16>
    %70 = vector.extract_strided_slice %49 {offsets = [0, 291], sizes = [8, 800], strides = [1, 1]} : vector<8x1200xbf16> to vector<8x800xbf16>
    %71 = vector.extract_strided_slice %49 {offsets = [0, 299], sizes = [8, 800], strides = [1, 1]} : vector<8x1200xbf16> to vector<8x800xbf16>
    %72 = vector.extract_strided_slice %49 {offsets = [0, 300], sizes = [8, 800], strides = [1, 1]} : vector<8x1200xbf16> to vector<8x800xbf16>
    %73 = vector.extract_strided_slice %49 {offsets = [0, 301], sizes = [8, 800], strides = [1, 1]} : vector<8x1200xbf16> to vector<8x800xbf16>
    %74 = vector.extract_strided_slice %49 {offsets = [0, 309], sizes = [8, 800], strides = [1, 1]} : vector<8x1200xbf16> to vector<8x800xbf16>
    %75 = vector.extract_strided_slice %49 {offsets = [0, 310], sizes = [8, 800], strides = [1, 1]} : vector<8x1200xbf16> to vector<8x800xbf16>
    %76 = vector.extract_strided_slice %49 {offsets = [0, 311], sizes = [8, 800], strides = [1, 1]} : vector<8x1200xbf16> to vector<8x800xbf16>
    %77 = tpu.concatenate %50, %51, %52, %53, %54, %55, %56, %57, %58, %59, %60, %61, %62, %63, %64, %65 in 0 : vector<8x800xbf16>, vector<8x800xbf16>, vector<8x800xbf16>, vector<8x800xbf16>, vector<8x800xbf16>, vector<8x800xbf16>, vector<8x800xbf16>, vector<8x800xbf16>, vector<8x800xbf16>, vector<8x800xbf16>, vector<8x800xbf16>, vector<8x800xbf16>, vector<8x800xbf16>, vector<8x800xbf16>, vector<8x800xbf16>, vector<8x800xbf16> -> vector<128x800xbf16>
    %78 = tpu.concatenate %66, %67, %68, %69, %70, %71, %72, %73, %74, %75, %76 in 0 : vector<8x800xbf16>, vector<8x800xbf16>, vector<8x800xbf16>, vector<8x800xbf16>, vector<8x800xbf16>, vector<8x800xbf16>, vector<8x800xbf16>, vector<8x800xbf16>, vector<8x800xbf16>, vector<8x800xbf16>, vector<8x800xbf16> -> vector<88x800xbf16>
    %79 = tpu.concatenate %77, %78 in 0 : vector<128x800xbf16>, vector<88x800xbf16> -> vector<216x800xbf16>
    %c0_16 = arith.constant 0 : index
    %c0_17 = arith.constant 0 : index
    %80 = vector.load %arg4[%c0_16, %c0_17] : memref<8x216xbf16, #tpu.memory_space<vmem>>, vector<8x216xbf16>
    %cst_18 = arith.constant dense<0.000000e+00> : vector<8x800xf32>
    %81 = tpu.matmul %80, %79, %cst_18 {dimension_numbers = #tpu.dot_dimension_numbers<[1], [0], [0], [1], [0, 0, 1, 1], [], []>} : vector<8x216xbf16>, vector<216x800xbf16>, vector<8x800xf32> -> vector<8x800xf32>
    %82 = vector.extract_strided_slice %3 {offsets = [0, 200], sizes = [8, 800], strides = [1, 1]} : vector<8x1200xf32> to vector<8x800xf32>
    %83 = arith.addf %82, %81 : vector<8x800xf32>
    %c0_19 = arith.constant 0 : index
    %c0_20 = arith.constant 0 : index
    %84 = vector.load %arg5[%c0_19, %c0_20] : memref<8x1xf32, #tpu.memory_space<vmem>>, vector<8x1xf32>
    %85 = vector.broadcast %84 : vector<8x1xf32> to vector<8x800xf32>
    %86 = arith.addf %83, %85 : vector<8x800xf32>
    %87 = vector.shape_cast %86 : vector<8x800xf32> to vector<1x8x800xf32>
    %c0_21 = arith.constant 0 : index
    %c0_22 = arith.constant 0 : index
    %c0_23 = arith.constant 0 : index
    %88 = vector.load %arg7[%c0_21, %c0_22, %c0_23] : memref<1x8x800xf32, #tpu.memory_space<vmem>>, vector<1x8x800xf32>
    tpu.vector_store %arg7[%c0_21, %c0_22, %c0_23], %87 {strides = array<i32>} : memref<1x8x800xf32, #tpu.memory_space<vmem>>, vector<1x8x800xf32>,
    return
  }
  func.func @transform_0(%arg0: i32) -> (i32, i32, i32) {
    %c0_i32 = arith.constant 0 : i32
    %c0_i32_0 = arith.constant 0 : i32
    %c0_i32_1 = arith.constant 0 : i32
    return %arg0, %c0_i32, %c0_i32_0 : i32, i32, i32
  }
  func.func @transform_1(%arg0: i32) -> (i32, i32) {
    %c0_i32 = arith.constant 0 : i32
    %c0_i32_0 = arith.constant 0 : i32
    %c0_i32_1 = arith.constant 0 : i32
    return %c0_i32, %c0_i32_0 : i32, i32
  }
  func.func @transform_2(%arg0: i32) -> (i32, i32) {
    %c0_i32 = arith.constant 0 : i32
    %c0_i32_0 = arith.constant 0 : i32
    %c0_i32_1 = arith.constant 0 : i32
    return %c0_i32, %c0_i32_0 : i32, i32
  }
  func.func @transform_3(%arg0: i32) -> (i32, i32) {
    %c0_i32 = arith.constant 0 : i32
    %c0_i32_0 = arith.constant 0 : i32
    %c0_i32_1 = arith.constant 0 : i32
    return %c0_i32, %c0_i32_0 : i32, i32
  }
  func.func @transform_4(%arg0: i32) -> (i32, i32) {
    %c0_i32 = arith.constant 0 : i32
    %c0_i32_0 = arith.constant 0 : i32
    %c0_i32_1 = arith.constant 0 : i32
    return %c0_i32, %c0_i32_0 : i32, i32
  }
  func.func @transform_5(%arg0: i32) -> (i32, i32) {
    %c0_i32 = arith.constant 0 : i32
    %c0_i32_0 = arith.constant 0 : i32
    %c0_i32_1 = arith.constant 0 : i32
    return %c0_i32, %c0_i32_0 : i32, i32
  }
  func.func @transform_6(%arg0: i32) -> (i32, i32, i32) {
    %c0_i32 = arith.constant 0 : i32
    %c0_i32_0 = arith.constant 0 : i32
    %c0_i32_1 = arith.constant 0 : i32
    return %arg0, %c0_i32, %c0_i32_0 : i32, i32, i32
  }
}

</mosaic_0001>

<bundles_post_ra>
// kernel: resnet_block_pallas.1
= control target key start
LH: loop header
LB: loop body
LE: loop exit
PB: predicated region body
PF: predicated region fallthrough
CT: control target
= control target key end

     0   :  { %s3744_s21 = smov 0   ;;  %s7369_s0 = inlined_call_operand.vmem [shape: f32[2,8,1200], index: 0, kind: input, shape index: {}]   ;;  %s7370_s1 = inlined_call_operand.vmem [shape: bf16[8,216], index: 1, kind: input, shape index: {}]   ;;  %s7371_s2 = inlined_call_operand.vmem [shape: f32[8,1], index: 2, kind: input, shape index: {}]   ;;  %s7372_s3 = inlined_call_operand.vmem [shape: bf16[8,216], index: 3, kind: input, shape index: {}]   ;;  %s7373_s4 = inlined_call_operand.vmem [shape: f32[8,1], index: 4, kind: input, shape index: {}]   ;;  %s7374_s5 = inlined_call_operand.vmem [shape: f32[1,800], index: 5, kind: input, shape index: {}]   ;;  %s7375_s6 = inlined_call_operand.vmem [shape: f32[2,8,800], index: 6, kind: output, shape index: {}]  }
   0x1 LB: > { %s3603_s22 = sadd.s32 4294967295, %s3679_s21   ;;  %p3607_p0 = scmp.ge.s32.totalorder %s3679_s21, 1  ;;  %s3679_s21 = sphi %s3744_s21, %s16_s21  }
   0x2   : > { %p212_p1 = scmp.lt.s32.totalorder %s3679_s21, 3 }
   0x4   : > { %p213_p2 = pnand %p3607_p0, %p212_p1 }
   0x6   : > { %216 = sbr.rel (%p213_p2) target bundleno = 2283 (0x8eb), region = 44 }
   0xd   : > { %p242_p3 = scmp.lt.s32.totalorder %s3603_s22, 1  ;;  %s3681_s27 = smov 126   ;;  %vm7438_vm0 = vcmask 1039360   ;;  %vm629_vm1 = vcmask 1043456   ;;  %vm816_vm2 = vcmask 400384   ;;  %vm838_vm3 = vcmask 392192  }
   0xe   : > { %s3682_s28 = smov 127   ;;  %s3683_s29 = smov 118   ;;  %vm859_vm4 = vcmask 384000   ;;  %vm880_vm5 = vcmask 318464   ;;  %vm922_vm6 = vcmask 302080   ;;  %vm901_vm7 = vcmask 310272  }
   0xf   : > { %s7871_s22 = smov (!%p242_p3, %s3603_s22), 1  ;;  %s3684_s30 = smov 117   ;;  %vm7444_vm8 = vcmask 236544   ;;  %vm496_vm9 = vcmask 228352   ;;  %vm7443_vm10 = vcmask 220160   ;;  %vm7446_vm11 = vcmask 965632  }
  0x10   : > { %s3630_s23 = smul.u32 80, %s7871_s22  ;;  %s3685_s7 = smov 116   ;;  %vm7445_vm12 = vcmask 1031168   ;;  %vm7424_vm13 = vcmask 949248   ;;  %vm378_vm14 = vcmask 957440   ;;  %vm7429_vm15 = vcmask 875520  }
  0x11   : > { %s3686_s8 = smov 108   ;;  %s3687_s9 = smov 107  }
  0x12   : > { %s3758_s26 = scalar_lea.vmem %s7369_s0, %s3630_s23  ;;  %s7379_s10 = smov 106  }
  0x13   : > { %v253_v0 = vld [vmem:[%s3758_s26] sm:$0xff]  ;;  %v254_v1 = vld [vmem:[%s3758_s26 + $0x8] sm:$0xff]  ;;  %v255_v2 = vld [vmem:[%s3758_s26 + $0x10] sm:$0xff]  ;;  %s3689_s11 = smov 49   ;;  %s3690_s12 = smov 28  }
  0x14   : > { %v256_v3 = vld [vmem:[%s3758_s26 + $0x18] sm:$0xff]  ;;  %v257_v4 = vld [vmem:[%s3758_s26 + $0x20] sm:$0xff]  ;;  %v262_v5 = vmax.f32 %v253_v0, 0.0  ;;  %v3765_v6 = vmax.f32 %v254_v1, 0.0  ;;  %v3767_v7 = vmax.f32 %v255_v2, 0.0  ;;  %v258_v8 = vld [vmem:[%s3758_s26 + $0x28] sm:$0xff] }
  0x15   : > { %v3770_v9 = vmax.f32 %v256_v3, 0.0  ;;  %v3772_v10 = vmax.f32 %v257_v4, 0.0  ;;  %v259_v13 = vld [vmem:[%s3758_s26 + $0x30] sm:$0xff]  ;;  %v3785_v15 = vmax.f32 %v258_v8, 0.0  ;;  %v260_v28 = vld [vmem:[%s3758_s26 + $0x38] sm:$0xff]  ;;  %s3691_s13 = smov 48  }
  0x16   : > { %7513 = vst [vmem:[#allocation3_spill] sm:$0xff] %v3765_v6  ;;  %7514 = vst [vmem:[#allocation4_spill] sm:$0xff] %v3767_v7  ;;  %v3774_v11 = vpack.c.bf16 %v262_v5, %v262_v5  ;;  %v3778_v12 = vpack.c.bf16 %v3765_v6, %v3765_v6  ;;  %v3783_v14 = vpack.c.bf16 %v3767_v7, %v3767_v7  ;;  %v3799_v19 = vmax.f32 %v259_v13, 0.0  ;;  %s3692_s14 = smov 47   ;;  %s3693_s15 = smov 39  }
  0x17   : > { %7515 = vst [vmem:[#allocation5_spill] sm:$0xff] %v3770_v9  ;;  %7516 = vst [vmem:[#allocation6_spill] sm:$0xff] %v3772_v10  ;;  %v3789_v16 = vpack.c.bf16 %v3770_v9, %v3770_v9  ;;  %v3803_v20 = vpack.c.bf16 %v3772_v10, %v3772_v10  ;;  %v3812_v22 = vpack.c.bf16 %v3785_v15, %v3785_v15  ;;  %v3855_v29 = vmax.f32 %v260_v28, 0.0  ;;  %s3694_s16 = smov 38   ;;  %s3695_s17 = smov 37  }
  0x18   : > { %7517 = vst [vmem:[#allocation7_spill] sm:$0xff] %v3785_v15  ;;  %315 = vrot.lane.b32.xlu1 %v3774_v11, %s3681_s27  ;;  %v3794_v17 = vrot.slane %v3774_v11, 4  ;;  %v3797_v18 = vrot.slane %v3783_v14, 4  ;;  %7518 = vst [vmem:[#allocation8_spill] sm:$0xff] %v3799_v19  ;;  %v3808_v21 = vrot.slane %v3778_v12, 4  ;;  %v3821_v24 = vpack.c.bf16 %v3799_v19, %v3799_v19  ;;  %s3696_s18 = smov 29  }
  0x19   : > { %7519 = vst [vmem:[#allocation9_spill] sm:$0xff] %v3803_v20  ;;  %v3817_v23 = vrot.slane %v3789_v16, 4  ;;  %v3826_v25 = vrot.slane %v3803_v20, 4  ;;  %v3831_v26 = vrot.slane %v3812_v22, 4  ;;  %7520 = vst [vmem:[#allocation10_spill] sm:$0xff] %v3855_v29  ;;  %v3863_v30 = vpack.c.bf16 %v3855_v29, %v3855_v29  ;;  %s3697_s19 = smov 27  }
  0x1a   : > { %294 = vrot.lane.b32.xlu0 %v3794_v17, %s3682_s28  ;;  %v3836_v27 = vrot.slane %v3821_v24, 4  ;;  %s3698_s20 = smov 26   ;;  %s3699_s23 = smov 18  }
  0x1b   : > { %v3872_v31 = vrot.slane %v3863_v30, 4  ;;  %s3700_s24 = smov 17   ;;  %s7441_s25 = smov 16  }
  0x1c   : > { %298 = vrot.lane.b32.xlu1 %v3797_v18, %s3682_s28 }
  0x1e   : > { %296 = vrot.lane.b32.xlu0 %v3808_v21, %s3682_s28 }
  0x20   : > { %300 = vrot.lane.b32.xlu1 %v3817_v23, %s3682_s28 }
  0x22   : > { %302 = vrot.lane.b32.xlu0 %v3826_v25, %s3682_s28 }
  0x24   : > { %304 = vrot.lane.b32.xlu1 %v3831_v26, %s3682_s28 }
  0x26   : > { %306 = vrot.lane.b32.xlu0 %v3836_v27, %s3682_s28 }
  0x28   : > { %319 = vrot.lane.b32.xlu1 %v3783_v14, %s3681_s27 }
  0x2a   : > { %317 = vrot.lane.b32.xlu0 %v3778_v12, %s3681_s27 }
  0x2c   : > { %323 = vrot.lane.b32.xlu1 %v3803_v20, %s3681_s27 }
  0x2e   : > { %321 = vrot.lane.b32.xlu0 %v3789_v16, %s3681_s27 }
  0x30   : > { %327 = vrot.lane.b32.xlu1 %v3821_v24, %s3681_s27 }
  0x32   : > { %325 = vrot.lane.b32.xlu0 %v3812_v22, %s3681_s27 }
  0x34   : > { %340 = vrot.lane.b32.xlu1 %v3808_v21, %s3683_s29 }
  0x36   : > { %338 = vrot.lane.b32.xlu0 %v3794_v17, %s3683_s29 }
  0x38   : > { %344 = vrot.lane.b32.xlu1 %v3817_v23, %s3683_s29 }
  0x3a   : > { %342 = vrot.lane.b32.xlu0 %v3797_v18, %s3683_s29 }
  0x3c   : > { %348 = vrot.lane.b32.xlu1 %v3831_v26, %s3683_s29 }
  0x3e   : > { %346 = vrot.lane.b32.xlu0 %v3826_v25, %s3683_s29 }
  0x40   : > { %352 = vrot.lane.b32.xlu1 %v3872_v31, %s3683_s29 }
  0x42   : > { %350 = vrot.lane.b32.xlu0 %v3836_v27, %s3683_s29 }
  0x44   : > { %364 = vrot.lane.b32.xlu1 %v3778_v12, %s3684_s30 }
  0x46   : > { %362 = vrot.lane.b32.xlu0 %v3774_v11, %s3684_s30 }
  0x48   : > { %368 = vrot.lane.b32.xlu1 %v3789_v16, %s3684_s30 }
  0x4a   : > { %366 = vrot.lane.b32.xlu0 %v3783_v14, %s3684_s30 }
  0x4c   : > { %372 = vrot.lane.b32.xlu1 %v3812_v22, %s3684_s30 }
  0x4e   : > { %370 = vrot.lane.b32.xlu0 %v3803_v20, %s3684_s30 }
  0x50   : > { %376 = vrot.lane.b32.xlu1 %v3863_v30, %s3684_s30 }
  0x52   : > { %374 = vrot.lane.b32.xlu0 %v3821_v24, %s3684_s30 }
  0x54   : > { %388 = vrot.lane.b32.xlu1 %v3808_v21, %s3685_s7 }
  0x56   : > { %386 = vrot.lane.b32.xlu0 %v3794_v17, %s3685_s7 }
  0x58   : > { %392 = vrot.lane.b32.xlu1 %v3817_v23, %s3685_s7 }
  0x5a   : > { %390 = vrot.lane.b32.xlu0 %v3797_v18, %s3685_s7 }
  0x5c   : > { %396 = vrot.lane.b32.xlu1 %v3831_v26, %s3685_s7 }
  0x5e   : > { %394 = vrot.lane.b32.xlu0 %v3826_v25, %s3685_s7 }
  0x60   : > { %400 = vrot.lane.b32.xlu1 %v3872_v31, %s3685_s7 }
  0x62   : > { %398 = vrot.lane.b32.xlu0 %v3836_v27, %s3685_s7 }
  0x64   : > { %412 = vrot.lane.b32.xlu1 %v3778_v12, %s3686_s8 }
  0x66   : > { %410 = vrot.lane.b32.xlu0 %v3774_v11, %s3686_s8 }
  0x68   : > { %416 = vrot.lane.b32.xlu1 %v3789_v16, %s3686_s8 }
  0x6a   : > { %414 = vrot.lane.b32.xlu0 %v3783_v14, %s3686_s8 }
  0x6c   : > { %420 = vrot.lane.b32.xlu1 %v3812_v22, %s3686_s8 }
  0x6e   : > { %418 = vrot.lane.b32.xlu0 %v3803_v20, %s3686_s8 }
  0x70   : > { %424 = vrot.lane.b32.xlu1 %v3863_v30, %s3686_s8 }
  0x72   : > { %422 = vrot.lane.b32.xlu0 %v3821_v24, %s3686_s8 }
  0x74   : > { %436 = vrot.lane.b32.xlu1 %v3808_v21, %s3687_s9 }
  0x76   : > { %434 = vrot.lane.b32.xlu0 %v3794_v17, %s3687_s9 }
  0x78   : > { %440 = vrot.lane.b32.xlu1 %v3817_v23, %s3687_s9 }
  0x7a   : > { %438 = vrot.lane.b32.xlu0 %v3797_v18, %s3687_s9 }
  0x7c   : > { %444 = vrot.lane.b32.xlu1 %v3831_v26, %s3687_s9 }
  0x7e   : > { %442 = vrot.lane.b32.xlu0 %v3826_v25, %s3687_s9 }
  0x80   : > { %448 = vrot.lane.b32.xlu1 %v3872_v31, %s3687_s9 }
  0x82   : > { %446 = vrot.lane.b32.xlu0 %v3836_v27, %s3687_s9 }
  0x84   : > { %460 = vrot.lane.b32.xlu1 %v3778_v12, %s7379_s10 }
  0x86   : > { %458 = vrot.lane.b32.xlu0 %v3774_v11, %s7379_s10 }
  0x88   : > { %464 = vrot.lane.b32.xlu1 %v3789_v16, %s7379_s10 }
  0x8a   : > { %v3950_v32 = vpop.permute.xlu1 %315  ;;  %462 = vrot.lane.b32.xlu0 %v3783_v14, %s7379_s10 }
  0x8c   : > { %468 = vrot.lane.b32.xlu1 %v3812_v22, %s7379_s10  ;;  %v3956_v33 = vpop.permute.xlu0 %294 }
  0x8e   : > { %v3958_v34 = vpop.permute.xlu1 %298  ;;  %466 = vrot.lane.b32.xlu0 %v3803_v20, %s7379_s10 }
  0x90   : > { %472 = vrot.lane.b32.xlu1 %v3863_v30, %s7379_s10  ;;  %v3964_v35 = vpop.permute.xlu0 %296 }
  0x92   : > { %v3966_v36 = vpop.permute.xlu1 %300  ;;  %470 = vrot.lane.b32.xlu0 %v3821_v24, %s7379_s10  ;;  %s7439_s10 = smov 8  }
  0x94   : > { %802 = vrot.lane.b32.xlu1 %v3783_v14, %s3689_s11  ;;  %v3972_v37 = vpop.permute.xlu0 %302 }
  0x95   : > { %7521 = vst [vmem:[#allocation11_spill] sm:$0xff] %v3972_v37 }
  0x96   : > { %v3974_v38 = vpop.permute.xlu1 %304  ;;  %482 = vrot.lane.b32.xlu0 %v3808_v21, %s3690_s12 }
  0x97   : > { %7522 = vst [vmem:[#allocation12_spill] sm:$0xff] %v3974_v38 }
  0x98   : > { %806 = vrot.lane.b32.xlu1 %v3803_v20, %s3689_s11  ;;  %v3980_v39 = vpop.permute.xlu0 %306 }
  0x99   : > { %7523 = vst [vmem:[#allocation13_spill] sm:$0xff] %v3980_v39 }
  0x9a   : > { %v3982_v40 = vpop.permute.xlu1 %319  ;;  %804 = vrot.lane.b32.xlu0 %v3789_v16, %s3689_s11 }
  0x9c   : > { %826 = vrot.lane.b32.xlu1 %v3817_v23, %s3691_s13  ;;  %v3988_v41 = vpop.permute.xlu0 %317 }
  0x9e   : > { %v3990_v42 = vpop.permute.xlu1 %323  ;;  %824 = vrot.lane.b32.xlu0 %v3797_v18, %s3691_s13 }
  0x9f   : > { %7524 = vst [vmem:[#allocation14_spill] sm:$0xff] %v3990_v42 }
  0xa0   : > { %845 = vrot.lane.b32.xlu1 %v3783_v14, %s3692_s14  ;;  %v3996_v43 = vpop.permute.xlu0 %321 }
  0xa1   : > { %7525 = vst [vmem:[#allocation15_spill] sm:$0xff] %v3996_v43 }
  0xa2   : > { %v3998_v44 = vpop.permute.xlu1 %327  ;;  %828 = vrot.lane.b32.xlu0 %v3826_v25, %s3691_s13 }
  0xa3   : > { %7526 = vst [vmem:[#allocation16_spill] sm:$0xff] %v3998_v44 }
  0xa4   : > { %849 = vrot.lane.b32.xlu1 %v3803_v20, %s3692_s14  ;;  %v4004_v45 = vpop.permute.xlu0 %325 }
  0xa5   : > { %7527 = vst [vmem:[#allocation17_spill] sm:$0xff] %v4004_v45 }
  0xa6   : > { %v4006_v46 = vpop.permute.xlu1 %340  ;;  %847 = vrot.lane.b32.xlu0 %v3789_v16, %s3692_s14 }
  0xa8   : > { %868 = vrot.lane.b32.xlu1 %v3817_v23, %s3693_s15  ;;  %v4012_v47 = vpop.permute.xlu0 %338 }
  0xaa   : > { %v4014_v48 = vpop.permute.xlu1 %344  ;;  %866 = vrot.lane.b32.xlu0 %v3797_v18, %s3693_s15 }
  0xac   : > { %887 = vrot.lane.b32.xlu1 %v3783_v14, %s3694_s16  ;;  %v4020_v49 = vpop.permute.xlu0 %342 }
  0xae   : > { %v4022_v50 = vpop.permute.xlu1 %348  ;;  %870 = vrot.lane.b32.xlu0 %v3826_v25, %s3693_s15 }
  0xaf   : > { %7528 = vst [vmem:[#allocation18_spill] sm:$0xff] %v4022_v50 }
  0xb0   : > { %891 = vrot.lane.b32.xlu1 %v3803_v20, %s3694_s16  ;;  %v4028_v51 = vpop.permute.xlu0 %346 }
  0xb1   : > { %7529 = vst [vmem:[#allocation19_spill] sm:$0xff] %v4028_v51 }
  0xb2   : > { %v4030_v52 = vpop.permute.xlu1 %352  ;;  %889 = vrot.lane.b32.xlu0 %v3789_v16, %s3694_s16 }
  0xb3   : > { %7530 = vst [vmem:[#allocation20_spill] sm:$0xff] %v4030_v52 }
  0xb4   : > { %910 = vrot.lane.b32.xlu1 %v3817_v23, %s3695_s17  ;;  %v4036_v53 = vpop.permute.xlu0 %350 }
  0xb5   : > { %7531 = vst [vmem:[#allocation21_spill] sm:$0xff] %v4036_v53 }
  0xb6   : > { %v4038_v54 = vpop.permute.xlu1 %364  ;;  %908 = vrot.lane.b32.xlu0 %v3797_v18, %s3695_s17 }
  0xb8   : > { %484 = vrot.lane.b32.xlu1 %v3797_v18, %s3690_s12  ;;  %v4044_v55 = vpop.permute.xlu0 %362 }
  0xba   : > { %v4046_v56 = vpop.permute.xlu1 %368  ;;  %912 = vrot.lane.b32.xlu0 %v3826_v25, %s3695_s17 }
  0xbb   : > { %7532 = vst [vmem:[#allocation22_spill] sm:$0xff] %v4046_v56 }
  0xbc   : > { %488 = vrot.lane.b32.xlu1 %v3826_v25, %s3690_s12  ;;  %v4052_v57 = vpop.permute.xlu0 %366 }
  0xbe   : > { %v4054_v58 = vpop.permute.xlu1 %372  ;;  %486 = vrot.lane.b32.xlu0 %v3817_v23, %s3690_s12 }
  0xbf   : > { %7533 = vst [vmem:[#allocation23_spill] sm:$0xff] %v4054_v58 }
  0xc0   : > { %931 = vrot.lane.b32.xlu1 %v3789_v16, %s3696_s18  ;;  %v4060_v59 = vpop.permute.xlu0 %370 }
  0xc1   : > { %7534 = vst [vmem:[#allocation24_spill] sm:$0xff] %v4060_v59 }
  0xc2   : > { %v4062_v60 = vpop.permute.xlu1 %376  ;;  %929 = vrot.lane.b32.xlu0 %v3783_v14, %s3696_s18 }
  0xc3   : > { %7535 = vst [vmem:[#allocation25_spill] sm:$0xff] %v4062_v60 }
  0xc4   : > { %505 = vrot.lane.b32.xlu1 %v3783_v14, %s3697_s19  ;;  %v4068_v61 = vpop.permute.xlu0 %374 }
  0xc5   : > { %7536 = vst [vmem:[#allocation26_spill] sm:$0xff] %v4068_v61  ;;  %v311_v61 = vsel %vm7438_vm0, %v3958_v34, %v3966_v36 }
  0xc6   : > { %v4070_v62 = vpop.permute.xlu1 %388  ;;  %933 = vrot.lane.b32.xlu0 %v3803_v20, %s3696_s18 }
  0xc8   : > { %509 = vrot.lane.b32.xlu1 %v3803_v20, %s3697_s19  ;;  %v4076_v63 = vpop.permute.xlu0 %386 }
  0xca   : > { %v4078_v0 = vpop.permute.xlu1 %392  ;;  %507 = vrot.lane.b32.xlu0 %v3789_v16, %s3697_s19 }
  0xcb   : > { %7537 = vst [vmem:[#allocation27_spill] sm:$0xff] %v4078_v0 }
  0xcc   : > { %524 = vrot.lane.b32.xlu1 %v3808_v21, %s3698_s20  ;;  %v4084_v1 = vpop.permute.xlu0 %390 }
  0xce   : > { %v4086_v2 = vpop.permute.xlu1 %396  ;;  %503 = vrot.lane.b32.xlu0 %v3778_v12, %s3697_s19 }
  0xcf   : > { %7538 = vst [vmem:[#allocation28_spill] sm:$0xff] %v4086_v2 }
  0xd0   : > { %528 = vrot.lane.b32.xlu1 %v3817_v23, %s3698_s20  ;;  %v4092_v3 = vpop.permute.xlu0 %394 }
  0xd1   : > { %7539 = vst [vmem:[#allocation29_spill] sm:$0xff] %v4092_v3 }
  0xd2   : > { %v4094_v4 = vpop.permute.xlu1 %400  ;;  %526 = vrot.lane.b32.xlu0 %v3797_v18, %s3698_s20 }
  0xd3   : > { %7540 = vst [vmem:[#allocation30_spill] sm:$0xff] %v4094_v4 }
  0xd4   : > { %547 = vrot.lane.b32.xlu1 %v3783_v14, %s3699_s23  ;;  %v4100_v5 = vpop.permute.xlu0 %398 }
  0xd5   : > { %7541 = vst [vmem:[#allocation31_spill] sm:$0xff] %v4100_v5  ;;  %v4215_v5 = vsel %vm629_vm1, %v3783_v14, %v311_v61 }
  0xd6   : > { %v4102_v8 = vpop.permute.xlu1 %412  ;;  %545 = vrot.lane.b32.xlu0 %v3778_v12, %s3699_s23 }
  0xd8   : > { %566 = vrot.lane.b32.xlu1 %v3808_v21, %s3700_s24  ;;  %v4108_v13 = vpop.permute.xlu0 %410 }
  0xda   : > { %v4110_v17 = vpop.permute.xlu1 %416  ;;  %549 = vrot.lane.b32.xlu0 %v3789_v16, %s3699_s23 }
  0xdb   : > { %7542 = vst [vmem:[#allocation32_spill] sm:$0xff] %v4110_v17 }
  0xdc   : > { %570 = vrot.lane.b32.xlu1 %v3817_v23, %s3700_s24  ;;  %v4116_v28 = vpop.permute.xlu0 %414 }
  0xde   : > { %v4118_v29 = vpop.permute.xlu1 %420  ;;  %568 = vrot.lane.b32.xlu0 %v3797_v18, %s3700_s24 }
  0xdf   : > { %7543 = vst [vmem:[#allocation33_spill] sm:$0xff] %v4118_v29  ;;  %v261_v29 = vld [vmem:[%s3758_s26 + $0x40] sm:$0xff]  ;;  %s3703_s26 = smov 7  }
  0xe0   : > { %589 = vrot.lane.b32.xlu1 %v3783_v14, %s7441_s25  ;;  %v4124_v19 = vpop.permute.xlu0 %418 }
  0xe1   : > { %7544 = vst [vmem:[#allocation34_spill] sm:$0xff] %v4124_v19 }
  0xe2   : > { %v4126_v15 = vpop.permute.xlu1 %424  ;;  %587 = vrot.lane.b32.xlu0 %v3778_v12, %s7441_s25 }
  0xe3   : > { %7545 = vst [vmem:[#allocation35_spill] sm:$0xff] %v4126_v15 }
  0xe4   : > { %608 = vrot.lane.b32.xlu1 %v3808_v21, %s7439_s10  ;;  %v4132_v10 = vpop.permute.xlu0 %422 }
  0xe5   : > { %7546 = vst [vmem:[#allocation36_spill] sm:$0xff] %v4132_v10 }
  0xe6   : > { %v4134_v9 = vpop.permute.xlu1 %436  ;;  %591 = vrot.lane.b32.xlu0 %v3789_v16, %s7441_s25 }
  0xe8   : > { %612 = vrot.lane.b32.xlu1 %v3817_v23, %s7439_s10  ;;  %v4140_v7 = vpop.permute.xlu0 %434 }
  0xea   : > { %v4142_v6 = vpop.permute.xlu1 %440  ;;  %610 = vrot.lane.b32.xlu0 %v3797_v18, %s7439_s10  ;;  %v270_v18 = vmax.f32 %v261_v29, 0.0 }
  0xeb   : > { %7547 = vst [vmem:[#allocation37_spill] sm:$0xff] %v4142_v6 }
  0xec   : > { %808 = vrot.lane.b32.xlu1 %v3812_v22, %s3689_s11  ;;  %v4148_v21 = vpop.permute.xlu0 %438  ;;  %v4171_v19 = vpack.c.bf16 %v270_v18, %v270_v18 }
  0xee   : > { %v4150_v15 = vpop.permute.xlu1 %444  ;;  %798 = vrot.lane.b32.xlu0 %v3872_v31, %s3682_s28 }
  0xef   : > { %7548 = vst [vmem:[#allocation38_spill] sm:$0xff] %v4150_v15 }
  0xf0   : > { %830 = vrot.lane.b32.xlu1 %v3831_v26, %s3691_s13  ;;  %v4157_v23 = vpop.permute.xlu0 %442 }
  0xf1   : > { %7549 = vst [vmem:[#allocation39_spill] sm:$0xff] %v4157_v23  ;;  %v312_v23 = vsel %vm7438_vm0, %v3966_v36, %v3972_v37 }
  0xf2   : > { %v4159_v10 = vpop.permute.xlu1 %448  ;;  %810 = vrot.lane.b32.xlu0 %v3821_v24, %s3689_s11 }
  0xf3   : > { %7550 = vst [vmem:[#allocation40_spill] sm:$0xff] %v4159_v10  ;;  %v310_v10 = vsel %vm7438_vm0, %v3964_v35, %v3958_v34 }
  0xf4   : > { %812 = vrot.lane.b32.xlu1 %v3863_v30, %s3689_s11  ;;  %v4165_v60 = vpop.permute.xlu0 %446  ;;  %v4189_v18 = vsel %vm629_vm1, %v3778_v12, %v310_v10  ;;  %v4207_v10 = vsel %vm629_vm1, %v3789_v16, %v312_v23 }
  0xf5   : > { %7551 = vst [vmem:[#allocation41_spill] sm:$0xff] %v4165_v60  ;;  %v4185_v60 = vrot.slane %v4171_v19, 4  ;;  %7554 = vst [vmem:[#allocation44_spill] sm:$0xff] %v4207_v10 }
  0xf6   : > { %v4167_v15 = vpop.permute.xlu1 %460  ;;  %832 = vrot.lane.b32.xlu0 %v3836_v27, %s3691_s13 }
  0xf8   : > { %834 = vrot.lane.b32.xlu1 %v3872_v31, %s3691_s13  ;;  %v4178_v29 = vpop.permute.xlu0 %458 }
  0xfa   : > { %v4180_v4 = vpop.permute.xlu1 %464  ;;  %814 = vrot.lane.b32.xlu0 %v4171_v19, %s3689_s11 }
  0xfb   : > { %7552 = vst [vmem:[#allocation42_spill] sm:$0xff] %v4180_v4 }
  0xfc   : > { %1075 = vrot.lane.b32.xlu1 %v4189_v18, %s3703_s26  ;;  %v4196_v58 = vpop.permute.xlu0 %462 }
  0xfe   : > { %v4201_v2 = vpop.permute.xlu1 %468  ;;  %836 = vrot.lane.b32.xlu0 %v4185_v60, %s3691_s13 }
  0xff   : > { %7553 = vst [vmem:[#allocation43_spill] sm:$0xff] %v4201_v2 }
 0x100   : > { %1079 = vrot.lane.b32.xlu1 %v4207_v10, %s3703_s26  ;;  %v4211_v12 = vpop.permute.xlu0 %466 }
 0x101   : > { %7555 = vst [vmem:[#allocation45_spill] sm:$0xff] %v4211_v12 }
 0x102   : > { %v4217_v59 = vpop.permute.xlu1 %472  ;;  %1077 = vrot.lane.b32.xlu0 %v4215_v5, %s3703_s26 }
 0x103   : > { %7556 = vst [vmem:[#allocation46_spill] sm:$0xff] %v4217_v59 }
 0x104   : > { %853 = vrot.lane.b32.xlu1 %v3821_v24, %s3692_s14  ;;  %v4223_v34 = vpop.permute.xlu0 %470 }
 0x105   : > { %7557 = vst [vmem:[#allocation47_spill] sm:$0xff] %v4223_v34 }
 0x106   : > { %v803_v16 = vpop.permute.xlu1 %802  ;;  %851 = vrot.lane.b32.xlu0 %v3812_v22, %s3692_s14 }
 0x108   : > { %874 = vrot.lane.b32.xlu1 %v3836_v27, %s3693_s15  ;;  %v4229_v36 = vpop.permute.xlu0 %482 }
 0x10a   : > { %v4231_v14 = vpop.permute.xlu1 %806  ;;  %872 = vrot.lane.b32.xlu0 %v3831_v26, %s3693_s15 }
 0x10b   : > { %7558 = vst [vmem:[#allocation48_spill] sm:$0xff] %v4231_v14 }
 0x10c   : > { %857 = vrot.lane.b32.xlu1 %v4171_v19, %s3692_s14  ;;  %v805_v61 = vpop.permute.xlu0 %804 }
 0x10d   : > { %v817_v2 = vsel %vm816_vm2, %v803_v16, %v805_v61  ;;  %v818_v53 = vsel %vm816_vm2, %v805_v61, %v4231_v14 }
 0x10e   : > { %v827_v23 = vpop.permute.xlu1 %826  ;;  %855 = vrot.lane.b32.xlu0 %v3863_v30, %s3692_s14 }
 0x110   : > { %878 = vrot.lane.b32.xlu1 %v4185_v60, %s3693_s15  ;;  %v825_v59 = vpop.permute.xlu0 %824 }
 0x111   : > { %v839_v34 = vsel %vm838_vm3, %v825_v59, %v827_v23  ;;  %v963_v45 = vsel %vm629_vm1, %v803_v16, %v825_v59 }
 0x112   : > { %v846_v12 = vpop.permute.xlu1 %845  ;;  %876 = vrot.lane.b32.xlu0 %v3872_v31, %s3693_s15  ;;  %v966_v52 = vsel %vm629_vm1, %v817_v2, %v839_v34 }
 0x114   : > { %1091 = vrot.lane.b32.xlu1 %v966_v52, %s3703_s26  ;;  %v4247_v3 = vpop.permute.xlu0 %828 }
 0x115   : > { %7559 = vst [vmem:[#allocation49_spill] sm:$0xff] %v4247_v3  ;;  %v840_v44 = vsel %vm838_vm3, %v827_v23, %v4247_v3 }
 0x116   : > { %v4252_v50 = vpop.permute.xlu1 %849  ;;  %1089 = vrot.lane.b32.xlu0 %v963_v45, %s3703_s26  ;;  %v969_v52 = vsel %vm629_vm1, %v818_v53, %v840_v44 }
 0x117   : > { %7560 = vst [vmem:[#allocation50_spill] sm:$0xff] %v4252_v50 }
 0x118   : > { %893 = vrot.lane.b32.xlu1 %v3812_v22, %s3694_s16  ;;  %v848_v2 = vpop.permute.xlu0 %847 }
 0x119   : > { %v861_v51 = vsel %vm859_vm4, %v848_v2, %v4252_v50  ;;  %v860_v37 = vsel %vm859_vm4, %v846_v12, %v848_v2 }
 0x11a   : > { %v869_v34 = vpop.permute.xlu1 %868  ;;  %1093 = vrot.lane.b32.xlu0 %v969_v52, %s3703_s26 }
 0x11c   : > { %914 = vrot.lane.b32.xlu1 %v3831_v26, %s3695_s17  ;;  %v867_v59 = vpop.permute.xlu0 %866 }
 0x11d   : > { %v984_v23 = vsel %vm629_vm1, %v846_v12, %v867_v59  ;;  %v881_v10 = vsel %vm880_vm5, %v867_v59, %v869_v34 }
 0x11e   : > { %v888_v16 = vpop.permute.xlu1 %887  ;;  %895 = vrot.lane.b32.xlu0 %v3821_v24, %s3694_s16 }
 0x120   : > { %897 = vrot.lane.b32.xlu1 %v3863_v30, %s3694_s16  ;;  %v4267_v45 = vpop.permute.xlu0 %870 }
 0x121   : > { %7561 = vst [vmem:[#allocation51_spill] sm:$0xff] %v4267_v45  ;;  %v882_v52 = vsel %vm880_vm5, %v869_v34, %v4267_v45 }
 0x122   : > { %v4269_v61 = vpop.permute.xlu1 %891  ;;  %916 = vrot.lane.b32.xlu0 %v3836_v27, %s3695_s17  ;;  %v990_v3 = vsel %vm629_vm1, %v861_v51, %v882_v52 }
 0x123   : > { %7562 = vst [vmem:[#allocation52_spill] sm:$0xff] %v4269_v61 }
 0x124   : > { %918 = vrot.lane.b32.xlu1 %v3872_v31, %s3695_s17  ;;  %v890_v44 = vpop.permute.xlu0 %889 }
 0x125   : > { %v902_v52 = vsel %vm901_vm7, %v888_v16, %v890_v44 }
 0x126   : > { %v911_v53 = vpop.permute.xlu1 %910  ;;  %899 = vrot.lane.b32.xlu0 %v4171_v19, %s3694_s16 }
 0x128   : > { %1103 = vrot.lane.b32.xlu1 %v984_v23, %s3703_s26  ;;  %v909_v42 = vpop.permute.xlu0 %908  ;;  %v987_v23 = vsel %vm629_vm1, %v860_v37, %v881_v10 }
 0x129   : > { %v923_v12 = vsel %vm922_vm6, %v909_v42, %v911_v53  ;;  %v1005_v20 = vsel %vm629_vm1, %v888_v16, %v909_v42 }
 0x12a   : > { %v4284_v14 = vpop.permute.xlu1 %484  ;;  %920 = vrot.lane.b32.xlu0 %v4185_v60, %s3695_s17  ;;  %v1008_v50 = vsel %vm629_vm1, %v902_v52, %v923_v12 }
 0x12c   : > { %1107 = vrot.lane.b32.xlu1 %v990_v3, %s3703_s26  ;;  %v4291_v45 = vpop.permute.xlu0 %912 }
 0x12d   : > { %v924_v4 = vsel %vm922_vm6, %v911_v53, %v4291_v45 }
 0x12e   : > { %v4294_v38 = vpop.permute.xlu1 %488  ;;  %1105 = vrot.lane.b32.xlu0 %v987_v23, %s3703_s26 }
 0x12f   : > { %7563 = vst [vmem:[#allocation53_spill] sm:$0xff] %v4294_v38 }
 0x130   : > { %492 = vrot.lane.b32.xlu1 %v3836_v27, %s3690_s12  ;;  %v487_v34 = vpop.permute.xlu0 %486 }
 0x132   : > { %v932_v59 = vpop.permute.xlu1 %931  ;;  %490 = vrot.lane.b32.xlu0 %v3831_v26, %s3690_s12 }
 0x134   : > { %937 = vrot.lane.b32.xlu1 %v3821_v24, %s3696_s18  ;;  %v930_v51 = vpop.permute.xlu0 %929 }
 0x135   : > { %v1026_v42 = vsel %vm629_vm1, %v930_v51, %v4284_v14 }
 0x136   : > { %v4303_v3 = vpop.permute.xlu1 %505  ;;  %935 = vrot.lane.b32.xlu0 %v3812_v22, %s3696_s18 }
 0x138   : > { %939 = vrot.lane.b32.xlu1 %v3863_v30, %s3696_s18  ;;  %v4309_v37 = vpop.permute.xlu0 %933 }
 0x139   : > { %7564 = vst [vmem:[#allocation54_spill] sm:$0xff] %v4309_v37 }
 0x13a   : > { %v4311_v10 = vpop.permute.xlu1 %509  ;;  %494 = vrot.lane.b32.xlu0 %v3872_v31, %s3690_s12 }
 0x13c   : > { %950 = vrot.lane.b32.xlu1 %v4185_v60, %s3690_s12  ;;  %v508_v2 = vpop.permute.xlu0 %507 }
 0x13e   : > { %v4319_v23 = vpop.permute.xlu1 %524  ;;  %941 = vrot.lane.b32.xlu0 %v4171_v19, %s3696_s18 }
 0x13f   : > { %7565 = vst [vmem:[#allocation55_spill] sm:$0xff] %v4319_v23  ;;  %v903_v23 = vsel %vm901_vm7, %v890_v44, %v4269_v61  ;;  %v4352_v44 = vsel %vm496_vm9, %v487_v34, %v4294_v38 }
 0x140   : > { %1119 = vrot.lane.b32.xlu1 %v1008_v50, %s3703_s26  ;;  %v4325_v39 = vpop.permute.xlu0 %503  ;;  %v1011_v50 = vsel %vm629_vm1, %v903_v23, %v924_v4  ;;  %7567 = vst [vmem:[#allocation57_spill] sm:$0xff] %v4352_v44  ;;  %v944_v4 = vsel %vm7444_vm8, %v930_v51, %v932_v59 }
 0x142   : > { %v4330_v60 = vpop.permute.xlu1 %528  ;;  %1117 = vrot.lane.b32.xlu0 %v1005_v20, %s3703_s26  ;;  %v945_v20 = vsel %vm7444_vm8, %v932_v59, %v4309_v37 }
 0x143   : > { %7566 = vst [vmem:[#allocation56_spill] sm:$0xff] %v4330_v60  ;;  %v1030_v23 = vsel %vm629_vm1, %v945_v20, %v4352_v44  ;;  %v4402_v44 = vsel %vm7443_vm10, %v508_v2, %v4311_v10 }
 0x144   : > { %511 = vrot.lane.b32.xlu1 %v3812_v22, %s3697_s19  ;;  %v4337_v12 = vpop.permute.xlu0 %526  ;;  %7570 = vst [vmem:[#allocation60_spill] sm:$0xff] %v4402_v44 }
 0x146   : > { %v4340_v52 = vpop.permute.xlu1 %547  ;;  %1121 = vrot.lane.b32.xlu0 %v1011_v50, %s3703_s26  ;;  %v4363_v50 = vsel %vm496_vm9, %v4284_v14, %v487_v34  ;;  %v4383_v34 = vsel %vm7443_vm10, %v4303_v3, %v508_v2  ;;  %v356_v2 = vsel %vm7446_vm11, %v4006_v46, %v4020_v49 }
 0x147   : > { %v1028_v38 = vsel %vm629_vm1, %v944_v4, %v4363_v50 }
 0x148   : > { %1131 = vrot.lane.b32.xlu1 %v1026_v42, %s3703_s26  ;;  %v4348_v16 = vpop.permute.xlu0 %545 }
 0x14a   : > { %v4355_v53 = vpop.permute.xlu1 %566  ;;  %513 = vrot.lane.b32.xlu0 %v3821_v24, %s3697_s19 }
 0x14c   : > { %1135 = vrot.lane.b32.xlu1 %v1030_v23, %s3703_s26  ;;  %v4366_v42 = vpop.permute.xlu0 %549 }
 0x14e   : > { %v4370_v59 = vpop.permute.xlu1 %570  ;;  %1133 = vrot.lane.b32.xlu0 %v1028_v38, %s3703_s26 }
 0x14f   : > { %7568 = vst [vmem:[#allocation58_spill] sm:$0xff] %v4370_v59 }
 0x150   : > { %953 = vrot.lane.b32.xlu1 %v4171_v19, %s3697_s19  ;;  %v4375_v51 = vpop.permute.xlu0 %568  ;;  %v309_v19 = vsel %vm7438_vm0, %v3956_v33, %v3964_v35  ;;  %v357_v33 = vsel %vm7446_vm11, %v4020_v49, %v4014_v48 }
 0x151   : > { %v632_v61 = vsel %vm629_vm1, %v3774_v11, %v309_v19  ;;  %v404_v19 = vsel %vm7424_vm13, %v4070_v62, %v4084_v1 }
 0x152   : > { %v4377_v20 = vpop.permute.xlu1 %589  ;;  %515 = vrot.lane.b32.xlu0 %v3863_v30, %s3697_s19 }
 0x154   : > { %1147 = vrot.lane.b32.xlu1 %v4383_v34, %s3703_s26  ;;  %v4387_v4 = vpop.permute.xlu0 %587 }
 0x156   : > { %v4389_v38 = vpop.permute.xlu1 %608  ;;  %1145 = vrot.lane.b32.xlu0 %v4303_v3, %s3703_s26 }
 0x158   : > { %1262 = vrot.lane.b32.xlu1 %v4189_v18, %s3693_s15  ;;  %v4398_v23 = vpop.permute.xlu0 %591  ;;  %v332_v18 = vsel %vm7445_vm12, %v3982_v40, %v3996_v43 }
 0x159   : > { %7569 = vst [vmem:[#allocation59_spill] sm:$0xff] %v4398_v23  ;;  %v659_v11 = vsel %vm629_vm1, %v332_v18, %v357_v33  ;;  %v380_v33 = vsel %vm378_vm14, %v4038_v54, %v4052_v57 }
 0x15a   : > { %v4404_v37 = vpop.permute.xlu1 %612  ;;  %1149 = vrot.lane.b32.xlu0 %v4402_v44, %s3703_s26  ;;  %v677_v18 = vsel %vm629_vm1, %v380_v33, %v404_v19  ;;  %v405_v19 = vsel %vm7424_vm13, %v4084_v1, %v4078_v0  ;;  %v452_v1 = vsel %vm7429_vm15, %v4134_v9, %v4148_v21 }
 0x15c   : > { %1260 = vrot.lane.b32.xlu1 %v632_v61, %s3693_s15  ;;  %v4414_v35 = vpop.permute.xlu0 %610  ;;  %v331_v61 = vsel %vm7445_vm12, %v3988_v41, %v3982_v40 }
 0x15d   : > { %v656_v49 = vsel %vm629_vm1, %v331_v61, %v356_v2  ;;  %v403_v2 = vsel %vm7424_vm13, %v4076_v63, %v4070_v62  ;;  %v379_v61 = vsel %vm378_vm14, %v4044_v55, %v4038_v54  ;;  %v453_v62 = vsel %vm7429_vm15, %v4148_v21, %v4142_v6 }
 0x15e   : > { %v4422_v44 = vpop.permute.xlu1 %808  ;;  %1264 = vrot.lane.b32.xlu0 %v4215_v5, %s3693_s15  ;;  %v355_v5 = vsel %vm7446_vm11, %v4012_v47, %v4006_v46  ;;  %vm7425_vm13 = vcmask 883712   ;;  %v451_v21 = vsel %vm7429_vm15, %v4140_v7, %v4134_v9  ;;  %v497_v9 = vsel %vm496_vm9, %v4229_v36, %v4284_v14 }
 0x15f   : > { %v429_v63 = vsel %vm7425_vm13, %v4116_v28, %v4110_v17  ;;  %v428_v33 = vsel %vm7425_vm13, %v4102_v8, %v4116_v28  ;;  %vm7436_vm15 = vcmask 146432   ;;  %v758_v6 = vsel %vm629_vm1, %v4348_v16, %v4355_v53 }
 0x160   : > { %1278 = vrot.lane.b32.xlu1 %v659_v11, %s3693_s15  ;;  %v4434_v43 = vpop.permute.xlu0 %798  ;;  %v330_v11 = vsel %vm7445_vm12, %v3950_v32, %v3988_v41  ;;  %v674_v32 = vsel %vm629_vm1, %v379_v61, %v403_v2  ;;  %v381_v41 = vsel %vm378_vm14, %v4052_v57, %v4046_v56  ;;  %v7575_v56 = vld [vmem:[#allocation12_spill] sm:$0xff] }
 0x161   : > { %v653_v47 = vsel %vm629_vm1, %v330_v11, %v355_v5  ;;  %v680_v55 = vsel %vm629_vm1, %v381_v41, %v405_v19  ;;  %v701_v5 = vsel %vm629_vm1, %v429_v63, %v453_v62  ;;  %v698_v11 = vsel %vm629_vm1, %v428_v33, %v452_v1  ;;  %v7571_v63 = vld [vmem:[#allocation42_spill] sm:$0xff] }
 0x162   : > { %v4443_v40 = vpop.permute.xlu1 %830  ;;  %1276 = vrot.lane.b32.xlu0 %v656_v49, %s3693_s15 }
 0x164   : > { %1290 = vrot.lane.b32.xlu1 %v677_v18, %s3693_s15  ;;  %v4454_v46 = vpop.permute.xlu0 %810 }
 0x166   : > { %v4463_v49 = vpop.permute.xlu1 %812  ;;  %1274 = vrot.lane.b32.xlu0 %v653_v47, %s3693_s15  ;;  %v427_v47 = vsel %vm7425_vm13, %v4108_v13, %v4102_v8  ;;  %vm7426_vm13 = vcmask 867328  }
 0x167   : > { %v695_v61 = vsel %vm629_vm1, %v427_v47, %v451_v21  ;;  %v476_v8 = vsel %vm7426_vm13, %v4167_v15, %v4196_v58  ;;  %v475_v14 = vsel %vm7426_vm13, %v4178_v29, %v4167_v15  ;;  %v477_v1 = vsel %vm7426_vm13, %v4196_v58, %v7571_v63  ;;  %v7572_v58 = vld [vmem:[#allocation9_spill] sm:$0xff] }
 0x168   : > { %1288 = vrot.lane.b32.xlu1 %v674_v32, %s3693_s15  ;;  %v4474_v54 = vpop.permute.xlu0 %832  ;;  %v719_v32 = vsel %vm629_vm1, %v476_v8, %v497_v9  ;;  %v722_v33 = vsel %vm629_vm1, %v477_v1, %v4363_v50  ;;  %vm7428_vm13 = vcmask 211968   ;;  %v7573_v8 = vld [vmem:[#allocation55_spill] sm:$0xff]  ;;  %v518_v1 = vsel %vm7443_vm10, %v4325_v39, %v4303_v3 }
 0x16a   : > { %v4483_v57 = vpop.permute.xlu1 %834  ;;  %1292 = vrot.lane.b32.xlu0 %v680_v55, %s3693_s15  ;;  %v716_v55 = vsel %vm629_vm1, %v475_v14, %v4229_v36 }
 0x16c   : > { %1306 = vrot.lane.b32.xlu1 %v701_v5, %s3693_s15  ;;  %v4491_v18 = vpop.permute.xlu0 %814 }
 0x16e   : > { %v4497_v2 = vpop.permute.xlu1 %1075  ;;  %1304 = vrot.lane.b32.xlu0 %v698_v11, %s3693_s15 }
 0x170   : > { %530 = vrot.lane.b32.xlu1 %v3826_v25, %s3698_s20  ;;  %v4505_v28 = vpop.permute.xlu0 %836 }
 0x172   : > { %v4508_v19 = vpop.permute.xlu1 %1079  ;;  %1302 = vrot.lane.b32.xlu0 %v695_v61, %s3693_s15  ;;  %v540_v61 = vsel %vm7428_vm13, %v4337_v12, %v4330_v60 }
 0x174   : > { %534 = vrot.lane.b32.xlu1 %v3836_v27, %s3698_s20  ;;  %v4513_v7 = vpop.permute.xlu0 %1077 }
 0x176   : > { %v4521_v13 = vpop.permute.xlu1 %853  ;;  %532 = vrot.lane.b32.xlu0 %v3831_v26, %s3698_s20 }
 0x178   : > { %1318 = vrot.lane.b32.xlu1 %v719_v32, %s3693_s15  ;;  %v4527_v41 = vpop.permute.xlu0 %851  ;;  %v539_v32 = vsel %vm7428_vm13, %v7573_v8, %v4337_v12  ;;  %vm7433_vm13 = vcmask 138240  }
 0x179   : > { %v740_v60 = vsel %vm629_vm1, %v518_v1, %v539_v32 }
 0x17a   : > { %v4532_v62 = vpop.permute.xlu1 %874  ;;  %536 = vrot.lane.b32.xlu0 %v3872_v31, %s3698_s20 }
 0x17c   : > { %1316 = vrot.lane.b32.xlu1 %v716_v55, %s3693_s15  ;;  %v4542_v5 = vpop.permute.xlu0 %872  ;;  %v743_v55 = vsel %vm629_vm1, %v4383_v34, %v540_v61  ;;  %v737_v34 = vsel %vm629_vm1, %v4325_v39, %v7573_v8 }
 0x17e   : > { %v4546_v15 = vpop.permute.xlu1 %857  ;;  %1320 = vrot.lane.b32.xlu0 %v722_v33, %s3693_s15 }
 0x180   : > { %553 = vrot.lane.b32.xlu1 %v3812_v22, %s3699_s23  ;;  %v4551_v29 = vpop.permute.xlu0 %855 }
 0x182   : > { %v4553_v36 = vpop.permute.xlu1 %878  ;;  %551 = vrot.lane.b32.xlu0 %v7572_v58, %s3699_s23 }
 0x184   : > { %574 = vrot.lane.b32.xlu1 %v3831_v26, %s3700_s24  ;;  %v4559_v11 = vpop.permute.xlu0 %876 }
 0x186   : > { %v4561_v50 = vpop.permute.xlu1 %1091  ;;  %572 = vrot.lane.b32.xlu0 %v3826_v25, %s3700_s24 }
 0x188   : > { %557 = vrot.lane.b32.xlu1 %v3863_v30, %s3699_s23  ;;  %v4567_v21 = vpop.permute.xlu0 %1089 }
 0x18a   : > { %v4569_v47 = vpop.permute.xlu1 %893  ;;  %555 = vrot.lane.b32.xlu0 %v3821_v24, %s3699_s23 }
 0x18c   : > { %578 = vrot.lane.b32.xlu1 %v3872_v31, %s3700_s24  ;;  %v4578_v9 = vpop.permute.xlu0 %1093 }
 0x18e   : > { %v4583_v14 = vpop.permute.xlu1 %914  ;;  %576 = vrot.lane.b32.xlu0 %v3836_v27, %s3700_s24 }
 0x190   : > { %1334 = vrot.lane.b32.xlu1 %v743_v55, %s3693_s15  ;;  %v4593_v33 = vpop.permute.xlu0 %895  ;;  %v560_v55 = vsel %vm7436_vm15, %v4348_v16, %v4340_v52 }
 0x192   : > { %v4596_v63 = vpop.permute.xlu1 %897  ;;  %1332 = vrot.lane.b32.xlu0 %v740_v60, %s3693_s15 }
 0x194   : > { %593 = vrot.lane.b32.xlu1 %v7572_v58, %s7441_s25  ;;  %v4601_v12 = vpop.permute.xlu0 %916 }
 0x196   : > { %v4606_v3 = vpop.permute.xlu1 %918  ;;  %1330 = vrot.lane.b32.xlu0 %v737_v34, %s3693_s15 }
 0x198   : > { %614 = vrot.lane.b32.xlu1 %v3826_v25, %s7439_s10  ;;  %v4611_v61 = vpop.permute.xlu0 %899  ;;  %v581_v25 = vsel %vm7433_vm13, %v4355_v53, %v4375_v51 }
 0x19a   : > { %v4613_v32 = vpop.permute.xlu1 %1103  ;;  %595 = vrot.lane.b32.xlu0 %v3812_v22, %s7441_s25 }
 0x19c   : > { %597 = vrot.lane.b32.xlu1 %v3821_v24, %s7441_s25  ;;  %v4619_v60 = vpop.permute.xlu0 %920 }
 0x19e   : > { %v4621_v39 = vpop.permute.xlu1 %1107  ;;  %616 = vrot.lane.b32.xlu0 %v3831_v26, %s7439_s10  ;;  %v761_v26 = vsel %vm629_vm1, %v560_v55, %v581_v25  ;;  %v561_v25 = vsel %vm7436_vm15, %v4340_v52, %v4366_v42  ;;  %vm601_vm15 = vcmask 130048  }
 0x1a0   : > { %618 = vrot.lane.b32.xlu1 %v3836_v27, %s7439_s10  ;;  %v4630_v8 = vpop.permute.xlu0 %1105  ;;  %v582_v27 = vsel %vm7433_vm13, %v4375_v51, %v4370_v59  ;;  %vm622_vm13 = vcmask 64512  }
 0x1a1   : > { %v764_v59 = vsel %vm629_vm1, %v561_v25, %v582_v27  ;;  %v624_v52 = vsel %vm622_vm13, %v4414_v35, %v4404_v37 }
 0x1a2   : > { %v4635_v1 = vpop.permute.xlu1 %492  ;;  %599 = vrot.lane.b32.xlu0 %v3863_v30, %s7441_s25  ;;  %s7669_s25 = smov 8  }
 0x1a4   : > { %1346 = vrot.lane.b32.xlu1 %v761_v26, %s3693_s15  ;;  %v4641_v34 = vpop.permute.xlu0 %490  ;;  %v7574_v26 = vld [vmem:[#allocation13_spill] sm:$0xff] }
 0x1a5   : > { %v314_v51 = vsel %vm7438_vm0, %v7575_v56, %v7574_v26 }
 0x1a6   : > { %v4646_v17 = vpop.permute.xlu1 %937  ;;  %620 = vrot.lane.b32.xlu0 %v3872_v31, %s7439_s10  ;;  %v7576_v31 = vld [vmem:[#allocation11_spill] sm:$0xff]  ;;  %s3706_s10 = smov 72  }
 0x1a7   : > { %v313_v0 = vsel %vm7438_vm0, %v7576_v31, %v7575_v56 }
 0x1a8   : > { %1344 = vrot.lane.b32.xlu1 %v758_v6, %s3693_s15  ;;  %v4657_v55 = vpop.permute.xlu0 %935  ;;  %v4671_v6 = vsel %vm629_vm1, %v3812_v22, %v314_v51  ;;  %v4682_v56 = vsel %vm629_vm1, %v7572_v58, %v313_v0  ;;  %v623_v22 = vsel %vm622_vm13, %v4389_v38, %v4414_v35  ;;  %v602_v0 = vsel %vm601_vm15, %v4387_v4, %v4377_v20 }
 0x1a9   : > { %v782_v51 = vsel %vm629_vm1, %v602_v0, %v623_v22  ;;  %v800_v35 = vsel %vm7438_vm0, %v7574_v26, %v4434_v43  ;;  %v7578_v0 = vld [vmem:[#allocation48_spill] sm:$0xff]  ;;  %vm1159_vm0 = vcmask 56320  }
 0x1aa   : > { %v4666_v16 = vpop.permute.xlu1 %939  ;;  %1348 = vrot.lane.b32.xlu0 %v764_v59, %s3693_s15  ;;  %v603_v59 = vsel %vm601_vm15, %v4377_v20, %v4398_v23  ;;  %v7577_v20 = vld [vmem:[#allocation49_spill] sm:$0xff]  ;;  %v957_v22 = vsel %vm629_vm1, %v3821_v24, %v800_v35  ;;  %v819_v23 = vsel %vm816_vm2, %v7578_v0, %v4422_v44  ;;  %v842_v35 = vsel %vm838_vm3, %v4443_v40, %v4474_v54 }
 0x1ab   : > { %v785_v25 = vsel %vm629_vm1, %v603_v59, %v624_v52  ;;  %v960_v52 = vsel %vm629_vm1, %v3863_v30, %v4434_v43  ;;  %v841_v59 = vsel %vm838_vm3, %v7577_v20, %v4443_v40 }
 0x1ac   : > { %1083 = vrot.lane.b32.xlu1 %v4671_v6, %s3703_s26  ;;  %v4678_v53 = vpop.permute.xlu0 %494  ;;  %v972_v30 = vsel %vm629_vm1, %v819_v23, %v841_v59  ;;  %v1160_v23 = vsel %vm1159_vm0, %v4497_v2, %v4513_v7  ;;  %v820_v59 = vsel %vm816_vm2, %v4422_v44, %v4454_v46 }
 0x1ad   : > { %v975_v40 = vsel %vm629_vm1, %v820_v59, %v842_v35 }
 0x1ae   : > { %v4690_v27 = vpop.permute.xlu1 %950  ;;  %1081 = vrot.lane.b32.xlu0 %v4682_v56, %s3703_s26 }
 0x1b0   : > { %1362 = vrot.lane.b32.xlu1 %v785_v25, %s3693_s15  ;;  %v4699_v58 = vpop.permute.xlu0 %941 }
 0x1b2   : > { %v4705_v31 = vpop.permute.xlu1 %1119  ;;  %1360 = vrot.lane.b32.xlu0 %v782_v51, %s3693_s15 }
 0x1b4   : > { %1087 = vrot.lane.b32.xlu1 %v960_v52, %s3703_s26  ;;  %v4715_v25 = vpop.permute.xlu0 %1117  ;;  %v779_v52 = vsel %vm629_vm1, %v4387_v4, %v4389_v38  ;;  %v843_v4 = vsel %vm838_vm3, %v4474_v54, %v4483_v57  ;;  %v1161_v54 = vsel %vm1159_vm0, %v4513_v7, %v4508_v19 }
 0x1b6   : > { %v4722_v51 = vpop.permute.xlu1 %511  ;;  %1085 = vrot.lane.b32.xlu0 %v957_v22, %s3703_s26  ;;  %v821_v22 = vsel %vm816_vm2, %v4454_v46, %v4463_v49  ;;  %v822_v46 = vsel %vm816_vm2, %v4463_v49, %v4491_v18 }
 0x1b7   : > { %v978_v44 = vsel %vm629_vm1, %v821_v22, %v843_v4 }
 0x1b8   : > { %1095 = vrot.lane.b32.xlu1 %v972_v30, %s3703_s26  ;;  %v4727_v43 = vpop.permute.xlu0 %1121 }
 0x1ba   : > { %v4735_v20 = vpop.permute.xlu1 %1131  ;;  %1358 = vrot.lane.b32.xlu0 %v779_v52, %s3693_s15  ;;  %v844_v52 = vsel %vm838_vm3, %v4483_v57, %v4505_v28  ;;  %v863_v57 = vsel %vm859_vm4, %v4527_v41, %v4521_v13  ;;  %v7579_v28 = vld [vmem:[#allocation51_spill] sm:$0xff] }
 0x1bb   : > { %v981_v59 = vsel %vm629_vm1, %v822_v46, %v844_v52  ;;  %v883_v4 = vsel %vm880_vm5, %v7579_v28, %v4542_v5  ;;  %v886_v52 = vsel %vm880_vm5, %v4559_v11, %v4553_v36  ;;  %v1166_v46 = vsel %vm1159_vm0, %v4567_v21, %v4561_v50 }
 0x1bc   : > { %1374 = vrot.lane.b32.xlu1 %v1160_v23, %s3693_s15  ;;  %v4748_v38 = vpop.permute.xlu0 %513  ;;  %v884_v23 = vsel %vm880_vm5, %v4542_v5, %v4532_v62  ;;  %v1167_v5 = vsel %vm1159_vm0, %v4561_v50, %v4578_v9  ;;  %v864_v28 = vsel %vm859_vm4, %v4521_v13, %v4551_v29  ;;  %v925_v50 = vsel %vm922_vm6, %v4291_v45, %v4583_v14 }
 0x1bd   : > { %v996_v18 = vsel %vm629_vm1, %v863_v57, %v884_v23  ;;  %v865_v23 = vsel %vm859_vm4, %v4551_v29, %v4546_v15 }
 0x1be   : > { %v4754_v0 = vpop.permute.xlu1 %1135  ;;  %1097 = vrot.lane.b32.xlu0 %v975_v40, %s3703_s26  ;;  %v1002_v36 = vsel %vm629_vm1, %v865_v23, %v886_v52  ;;  %v905_v52 = vsel %vm901_vm7, %v4569_v47, %v4593_v33 }
 0x1c0   : > { %1099 = vrot.lane.b32.xlu1 %v978_v44, %s3703_s26  ;;  %v4759_v30 = vpop.permute.xlu0 %1133 }
 0x1c2   : > { %v4767_v35 = vpop.permute.xlu1 %953  ;;  %1376 = vrot.lane.b32.xlu0 %v1161_v54, %s3693_s15 }
 0x1c4   : > { %1372 = vrot.lane.b32.xlu1 %v4497_v2, %s3693_s15  ;;  %v4778_v7 = vpop.permute.xlu0 %515  ;;  %v7580_v2 = vld [vmem:[#allocation50_spill] sm:$0xff] }
 0x1c5   : > { %v862_v40 = vsel %vm859_vm4, %v7580_v2, %v4527_v41 }
 0x1c6   : > { %v4787_v49 = vpop.permute.xlu1 %1147  ;;  %1101 = vrot.lane.b32.xlu0 %v981_v59, %s3703_s26  ;;  %v993_v44 = vsel %vm629_vm1, %v862_v40, %v883_v4  ;;  %v885_v59 = vsel %vm880_vm5, %v4532_v62, %v4559_v11  ;;  %v7581_v11 = vld [vmem:[#allocation52_spill] sm:$0xff] }
 0x1c7   : > { %v999_v4 = vsel %vm629_vm1, %v864_v28, %v885_v59  ;;  %v906_v59 = vsel %vm901_vm7, %v4593_v33, %v4596_v63  ;;  %v928_v33 = vsel %vm922_vm6, %v4606_v3, %v4619_v60 }
 0x1c8   : > { %1111 = vrot.lane.b32.xlu1 %v996_v18, %s3703_s26  ;;  %v4795_v22 = vpop.permute.xlu0 %1145  ;;  %v904_v18 = vsel %vm901_vm7, %v7581_v11, %v4569_v47 }
 0x1c9   : > { %v1014_v13 = vsel %vm629_vm1, %v904_v18, %v925_v50  ;;  %v4893_v18 = vsel %vm496_vm9, %v4641_v34, %v4635_v1 }
 0x1ca   : > { %v1263_v54 = vpop.permute.xlu1 %1262  ;;  %1109 = vrot.lane.b32.xlu0 %v993_v44, %s3703_s26  ;;  %v926_v44 = vsel %vm922_vm6, %v4583_v14, %v4601_v12 }
 0x1cb   : > { %v1017_v23 = vsel %vm629_vm1, %v905_v52, %v926_v44 }
 0x1cc   : > { %1390 = vrot.lane.b32.xlu1 %v1167_v5, %s3693_s15  ;;  %v4806_v41 = vpop.permute.xlu0 %1149 }
 0x1ce   : > { %v1261_v57 = vpop.permute.xlu1 %1260  ;;  %1388 = vrot.lane.b32.xlu0 %v1166_v46, %s3693_s15  ;;  %v927_v46 = vsel %vm922_vm6, %v4601_v12, %v4606_v3 }
 0x1cf   : > { %v1456_v45 = vsel %vm880_vm5, %v1261_v57, %v1263_v54  ;;  %v1020_v47 = vsel %vm629_vm1, %v906_v59, %v927_v46  ;;  %v1178_v46 = vsel %vm1159_vm0, %v4715_v25, %v4705_v31 }
 0x1d0   : > { %1115 = vrot.lane.b32.xlu1 %v1002_v36, %s3703_s26  ;;  %v4826_v15 = vpop.permute.xlu0 %1264  ;;  %v1173_v36 = vsel %vm1159_vm0, %v4630_v8, %v4621_v39 }
 0x1d1   : > { %v1457_v62 = vsel %vm880_vm5, %v1263_v54, %v4826_v15  ;;  %v1172_v54 = vsel %vm1159_vm0, %v4613_v32, %v4630_v8  ;;  %v947_v8 = vsel %vm7444_vm8, %v4657_v55, %v4646_v17 }
 0x1d2   : > { %v4834_v2 = vpop.permute.xlu1 %1278  ;;  %1113 = vrot.lane.b32.xlu0 %v999_v4, %s3703_s26  ;;  %1656 = vmatprep.subr.bf16.mxu0 %v1457_v62  ;;  %v907_v62 = vsel %vm901_vm7, %v4596_v63, %v4611_v61  ;;  %v7582_v63 = vld [vmem:[#allocation54_spill] sm:$0xff] }
 0x1d3   : > { %1657 = vmatpush1.bf16.msra.mxu0 %v1456_v45  ;;  %v1023_v60 = vsel %vm629_vm1, %v907_v62, %v928_v33  ;;  %v946_v61 = vsel %vm7444_vm8, %v7582_v63, %v4657_v55 }
 0x1d4   : > { %1123 = vrot.lane.b32.xlu1 %v1014_v13, %s3703_s26  ;;  %v1277_v29 = vpop.permute.xlu0 %1276  ;;  %v7583_v13 = vld [vmem:[#allocation53_spill] sm:$0xff] }
 0x1d5   : > { %v1463_v40 = vsel %vm880_vm5, %v1277_v29, %v4834_v2 }
 0x1d6   : > { %v1291_v5 = vpop.permute.xlu1 %1290  ;;  %1386 = vrot.lane.b32.xlu0 %v4567_v21, %s3693_s15  ;;  %1658 = vmatprep.subr.bf16.mxu0 %v1463_v40 }
 0x1d8   : > { %1402 = vrot.lane.b32.xlu1 %v1172_v54, %s3693_s15  ;;  %v1275_v14 = vpop.permute.xlu0 %1274  ;;  %v1179_v54 = vsel %vm1159_vm0, %v4705_v31, %v4727_v43 }
 0x1d9   : > { %v1462_v21 = vsel %vm880_vm5, %v1275_v14, %v1277_v29  ;;  %v4906_v29 = vsel %vm496_vm9, %v7583_v13, %v4641_v34  ;;  %v949_v34 = vsel %vm7444_vm8, %v4666_v16, %v4699_v58  ;;  %v948_v14 = vsel %vm7444_vm8, %v4646_v17, %v4666_v16 }
 0x1da   : > { %v1289_v57 = vpop.permute.xlu1 %1288  ;;  %1125 = vrot.lane.b32.xlu0 %v1017_v23, %s3703_s26  ;;  %1659 = vmatpush1.bf16.msra.mxu0 %v1462_v21  ;;  %v1032_v44 = vsel %vm629_vm1, %v946_v61, %v4906_v29  ;;  %v4933_v23 = vsel %vm496_vm9, %v4635_v1, %v4678_v53  ;;  %v952_v58 = vsel %vm496_vm9, %v4678_v53, %v4690_v27  ;;  %vm7594_vm8 = vcmask 949248  }
 0x1db   : > { %v1468_v4 = vsel %vm880_vm5, %v1289_v57, %v1291_v5  ;;  %v1039_v59 = vsel %vm629_vm1, %v949_v34, %v952_v58  ;;  %v1036_v17 = vsel %vm629_vm1, %v948_v14, %v4933_v23  ;;  %v4949_v1 = vsel %vm7443_vm10, %v4311_v10, %v4722_v51  ;;  %v7588_v58 = vld [vmem:[#allocation21_spill] sm:$0xff] }
 0x1dc   : > { %1127 = vrot.lane.b32.xlu1 %v1020_v47, %s3703_s26  ;;  %v4865_v12 = vpop.permute.xlu0 %1292  ;;  %v1184_v10 = vsel %vm1159_vm0, %v4735_v20, %v4759_v30  ;;  %v1191_v61 = vsel %vm1159_vm0, %v4787_v49, %v4806_v41 }
 0x1dd   : > { %v1469_v28 = vsel %vm880_vm5, %v1291_v5, %v4865_v12 }
 0x1de   : > { %v4875_v50 = vpop.permute.xlu1 %1306  ;;  %1404 = vrot.lane.b32.xlu0 %v1173_v36, %s3693_s15  ;;  %1660 = vmatprep.subr.bf16.mxu0 %v1469_v28  ;;  %v4971_v28 = vsel %vm7443_vm10, %v4722_v51, %v4748_v38  ;;  %v1185_v51 = vsel %vm1159_vm0, %v4759_v30, %v4754_v0  ;;  %v1190_v30 = vsel %vm1159_vm0, %v4795_v22, %v4787_v49  ;;  %v7587_v49 = vld [vmem:[#allocation15_spill] sm:$0xff] }
 0x1df   : > { %1661 = vmatpush1.bf16.msra.mxu0 %v1468_v4 }
 0x1e0   : > { %1400 = vrot.lane.b32.xlu1 %v4613_v32, %s3693_s15  ;;  %v1305_v3 = vpop.permute.xlu0 %1304  ;;  %v1034_v32 = vsel %vm629_vm1, %v947_v8, %v4893_v18 }
 0x1e1   : > { %v1475_v11 = vsel %vm880_vm5, %v1305_v3, %v4875_v50 }
 0x1e2   : > { %v4898_v45 = vpop.permute.xlu1 %530  ;;  %1129 = vrot.lane.b32.xlu0 %v1023_v60, %s3703_s26  ;;  %1662 = vmatprep.subr.bf16.mxu0 %v1475_v11  ;;  %v5008_v60 = vld [vmem:[%s7370_s1] sm:$0xff]  ;;  %v7584_v11 = vld [vmem:[#allocation44_spill] sm:$0xff] }
 0x1e4   : > { %1139 = vrot.lane.b32.xlu1 %v1034_v32, %s3703_s26  ;;  %v1303_v40 = vpop.permute.xlu0 %1302 }
 0x1e5   : > { %v1474_v55 = vsel %vm880_vm5, %v1303_v40, %v1305_v3 }
 0x1e6   : > { %v4912_v5 = vpop.permute.xlu1 %534  ;;  %1137 = vrot.lane.b32.xlu0 %v1032_v44, %s3703_s26  ;;  %1663 = vmatpush1.bf16.msra.mxu0 %v1474_v55 }
 0x1e8   : > { %1418 = vrot.lane.b32.xlu1 %v1179_v54, %s3693_s15  ;;  %v4922_v52 = vpop.permute.xlu0 %532  ;;  %v7586_v54 = vld [vmem:[#allocation14_spill] sm:$0xff] }
 0x1e9   : > { %v333_v34 = vsel %vm7445_vm12, %v7587_v49, %v7586_v54  ;;  %v7599_v49 = vld [vmem:[#allocation28_spill] sm:$0xff] }
 0x1ea   : > { %v1319_v21 = vpop.permute.xlu1 %1318  ;;  %1416 = vrot.lane.b32.xlu0 %v1178_v46, %s3693_s15 }
 0x1ec   : > { %1143 = vrot.lane.b32.xlu1 %v1039_v59, %s3703_s26  ;;  %v4941_v31 = vpop.permute.xlu0 %536  ;;  %v650_v59 = vsel %vm629_vm1, %v3821_v24, %v7574_v26  ;;  %v7593_v24 = vld [vmem:[#allocation27_spill] sm:$0xff] }
 0x1ee   : > { %v1317_v16 = vpop.permute.xlu1 %1316  ;;  %1141 = vrot.lane.b32.xlu0 %v1036_v17, %s3703_s26  ;;  %v7590_v17 = vld [vmem:[#allocation16_spill] sm:$0xff] }
 0x1ef   : > { %v1480_v47 = vsel %vm880_vm5, %v1317_v16, %v1319_v21  ;;  %v7591_v16 = vld [vmem:[#allocation17_spill] sm:$0xff] }
 0x1f0   : > { %1151 = vrot.lane.b32.xlu1 %v4949_v1, %s3703_s26  ;;  %v4953_v53 = vpop.permute.xlu0 %1320 }
 0x1f1   : > { %v1481_v27 = vsel %vm880_vm5, %v1319_v21, %v4953_v53 }
 0x1f2   : > { %v4957_v57 = vpop.permute.xlu1 %553  ;;  %1414 = vrot.lane.b32.xlu0 %v4715_v25, %s3693_s15  ;;  %1664 = vmatprep.subr.bf16.mxu0 %v1481_v27  ;;  %v4980_v25 = vsel %vm7443_vm10, %v4748_v38, %v4778_v7  ;;  %v955_v38 = vsel %vm7443_vm10, %v4778_v7, %v4767_v35  ;;  %v5015_v35 = vcombine.high %v5008_v60, %v5008_v60  ;;  %vm7492_vm10 = vcmask 719872  }
 0x1f3   : > { %1665 = vmatpush1.bf16.msra.mxu0 %v1480_v47  ;;  %v335_v27 = vsel %vm7445_vm12, %v7591_v16, %v7590_v17 }
 0x1f4   : > { %1430 = vrot.lane.b32.xlu1 %v1184_v10, %s3693_s15  ;;  %v4966_v36 = vpop.permute.xlu0 %551  ;;  %3613 = vmatprep.mubr.msk.bf16.mxu0 %vm7492_vm10, %v5015_v35 }
 0x1f5   : > { %3615 = vmatprep.mubr.msk.bf16.mxu1 %vm7492_vm10, %v5015_v35 }
 0x1f6   : > { %v4973_v33 = vpop.permute.xlu1 %574  ;;  %1153 = vrot.lane.b32.xlu0 %v4971_v28, %s3703_s26 }
 0x1f8   : > { %1155 = vrot.lane.b32.xlu1 %v4980_v25, %s3703_s26  ;;  %v4984_v4 = vpop.permute.xlu0 %572 }
 0x1fa   : > { %v4989_v62 = vpop.permute.xlu1 %557  ;;  %1432 = vrot.lane.b32.xlu0 %v1185_v51, %s3693_s15  ;;  %v334_v51 = vsel %vm7445_vm12, %v7586_v54, %v7591_v16  ;;  %v7598_v54 = vld [vmem:[#allocation31_spill] sm:$0xff]  ;;  %vm7602_vm12 = vmmov %vm7594_vm8 }
 0x1fc   : > { %1428 = vrot.lane.b32.xlu1 %v4735_v20, %s3693_s15  ;;  %v4994_v8 = vpop.permute.xlu0 %555 }
 0x1fe   : > { %v4999_v3 = vpop.permute.xlu1 %578  ;;  %1157 = vrot.lane.b32.xlu0 %v955_v38, %s3703_s26  ;;  %v7592_v38 = vld [vmem:[#allocation29_spill] sm:$0xff] }
 0x1ff   : > { %v406_v26 = vsel %vm7594_vm8, %v7593_v24, %v7592_v38  ;;  %v407_v16 = vsel %vm7602_vm12, %v7592_v38, %v7599_v49  ;;  %v7604_v24 = vld [vmem:[#allocation37_spill] sm:$0xff]  ;;  %v7606_v38 = vld [vmem:[#allocation30_spill] sm:$0xff] }
 0x200   : > { %1444 = vrot.lane.b32.xlu1 %v1190_v30, %s3693_s15  ;;  %v5011_v20 = vpop.permute.xlu0 %576 }
 0x202   : > { %v5017_v7 = vpop.permute.xlu1 %1334  ;;  %1442 = vrot.lane.b32.xlu0 %v4795_v22, %s3693_s15  ;;  %v7585_v22 = vld [vmem:[#allocation19_spill] sm:$0xff] }
 0x203   : > { %v358_v40 = vsel %vm7446_vm11, %v4014_v48, %v7585_v22  ;;  %v7589_v48 = vld [vmem:[#allocation18_spill] sm:$0xff] }
 0x204   : > { %1266 = vrot.lane.b32.xlu1 %v7584_v11, %s3693_s15  ;;  %v1333_v63 = vpop.permute.xlu0 %1332  ;;  %v662_v14 = vsel %vm629_vm1, %v333_v34, %v358_v40  ;;  %v360_v21 = vsel %vm7446_vm11, %v7589_v48, %v7588_v58  ;;  %v408_v34 = vsel %vm7594_vm8, %v7599_v49, %v7598_v54  ;;  %vm7605_vm8 = vcmask 875520   ;;  %v7610_v49 = vld [vmem:[#allocation25_spill] sm:$0xff] }
 0x205   : > { %v1487_v32 = vsel %vm880_vm5, %v1333_v63, %v5017_v7  ;;  %v668_v10 = vsel %vm629_vm1, %v335_v27, %v360_v21  ;;  %v7601_v21 = vld [vmem:[#allocation23_spill] sm:$0xff] }
 0x206   : > { %v5032_v13 = vpop.permute.xlu1 %593  ;;  %1446 = vrot.lane.b32.xlu0 %v1191_v61, %s3693_s15  ;;  %1666 = vmatprep.subr.bf16.mxu0 %v1487_v32  ;;  %v7596_v32 = vld [vmem:[#allocation24_spill] sm:$0xff] }
 0x208   : > { %1270 = vrot.lane.b32.xlu1 %v4671_v6, %s3693_s15  ;;  %v1331_v44 = vpop.permute.xlu0 %1330 }
 0x209   : > { %v1486_v55 = vsel %vm880_vm5, %v1331_v44, %v1333_v63  ;;  %v7595_v63 = vld [vmem:[#allocation20_spill] sm:$0xff] }
 0x20a   : > { %v5044_v46 = vpop.permute.xlu1 %614  ;;  %1268 = vrot.lane.b32.xlu0 %v4682_v56, %s3693_s15  ;;  %1667 = vmatpush1.bf16.msra.mxu0 %v1486_v55  ;;  %v359_v56 = vsel %vm7446_vm11, %v7585_v22, %v7589_v48  ;;  %v361_v61 = vsel %vm7446_vm11, %v7588_v58, %v7595_v63  ;;  %v7597_v22 = vld [vmem:[#allocation22_spill] sm:$0xff]  ;;  %v409_v63 = vsel %vm7602_vm12, %v7598_v54, %v7606_v38  ;;  %vm7609_vm11 = vcmask 883712   ;;  %vm7615_vm12 = vmmov %vm7605_vm8 }
 0x20b   : > { %v665_v11 = vsel %vm629_vm1, %v334_v51, %v359_v56  ;;  %v382_v40 = vsel %vm378_vm14, %v7597_v22, %v7596_v32  ;;  %v671_v58 = vsel %vm629_vm1, %v7590_v17, %v361_v61  ;;  %v7600_v48 = vld [vmem:[#allocation26_spill] sm:$0xff]  ;;  %v7603_v51 = vld [vmem:[#allocation39_spill] sm:$0xff]  ;;  %v7608_v22 = vld [vmem:[#allocation32_spill] sm:$0xff] }
 0x20c   : > { %1280 = vrot.lane.b32.xlu1 %v662_v14, %s3693_s15  ;;  %v5053_v6 = vpop.permute.xlu0 %595  ;;  %v683_v55 = vsel %vm629_vm1, %v382_v40, %v406_v26  ;;  %v454_v17 = vsel %vm7605_vm8, %v7604_v24, %v7603_v51  ;;  %v7607_v61 = vld [vmem:[#allocation34_spill] sm:$0xff]  ;;  %v7614_v24 = vld [vmem:[#allocation33_spill] sm:$0xff] }
 0x20d   : > { %v430_v40 = vsel %vm7609_vm11, %v7608_v22, %v7607_v61 }
 0x20e   : > { %v5064_v47 = vpop.permute.xlu1 %597  ;;  %1272 = vrot.lane.b32.xlu0 %v650_v59, %s3693_s15  ;;  %v384_v59 = vsel %vm378_vm14, %v7601_v21, %v7600_v48 }
 0x20f   : > { %v689_v56 = vsel %vm629_vm1, %v384_v59, %v408_v34  ;;  %v385_v34 = vsel %vm378_vm14, %v7600_v48, %v7610_v49 }
 0x210   : > { %1284 = vrot.lane.b32.xlu1 %v668_v10, %s3693_s15  ;;  %v5075_v30 = vpop.permute.xlu0 %616  ;;  %v383_v10 = vsel %vm378_vm14, %v7596_v32, %v7601_v21  ;;  %v704_v32 = vsel %vm629_vm1, %v430_v40, %v454_v17  ;;  %v7612_v21 = vld [vmem:[#allocation38_spill] sm:$0xff] }
 0x211   : > { %v455_v48 = vsel %vm7615_vm12, %v7603_v51, %v7612_v21 }
 0x212   : > { %v5084_v44 = vpop.permute.xlu1 %618  ;;  %1282 = vrot.lane.b32.xlu0 %v665_v11, %s3693_s15  ;;  %v686_v11 = vsel %vm629_vm1, %v383_v10, %v407_v16  ;;  %v692_v16 = vsel %vm629_vm1, %v385_v34, %v409_v63  ;;  %v7613_v10 = vld [vmem:[#allocation36_spill] sm:$0xff]  ;;  %v7619_v34 = vld [vmem:[#allocation45_spill] sm:$0xff] }
 0x213   : > { %v432_v17 = vsel %vm7609_vm11, %v7614_v24, %v7613_v10 }
 0x214   : > { %1294 = vrot.lane.b32.xlu1 %v683_v55, %s3693_s15  ;;  %v5092_v14 = vpop.permute.xlu0 %599 }
 0x216   : > { %v1347_v27 = vpop.permute.xlu1 %1346  ;;  %1286 = vrot.lane.b32.xlu0 %v671_v58, %s3693_s15  ;;  %v7611_v58 = vld [vmem:[#allocation41_spill] sm:$0xff] }
 0x217   : > { %v456_v59 = vsel %vm7605_vm8, %v7612_v21, %v7611_v58  ;;  %vm7616_vm8 = vmmov %vm7609_vm11  ;;  %v7620_v21 = vld [vmem:[#allocation42_spill] sm:$0xff] }
 0x218   : > { %1298 = vrot.lane.b32.xlu1 %v689_v56, %s3693_s15  ;;  %v5111_v26 = vpop.permute.xlu0 %620  ;;  %v710_v63 = vsel %vm629_vm1, %v432_v17, %v456_v59  ;;  %v431_v22 = vsel %vm7616_vm8, %v7607_v61, %v7614_v24  ;;  %vm7618_vm11 = vmmov %vm7615_vm12  ;;  %vm7621_vm12 = vcmask 867328   ;;  %v7622_v59 = vld [vmem:[#allocation57_spill] sm:$0xff] }
 0x219   : > { %v707_v51 = vsel %vm629_vm1, %v431_v22, %v455_v48  ;;  %v7624_v48 = vld [vmem:[#allocation47_spill] sm:$0xff] }
 0x21a   : > { %v1345_v55 = vpop.permute.xlu1 %1344  ;;  %1296 = vrot.lane.b32.xlu0 %v686_v11, %s3693_s15 }
 0x21b   : > { %v1492_v38 = vsel %vm880_vm5, %v1345_v55, %v1347_v27 }
 0x21c   : > { %1308 = vrot.lane.b32.xlu1 %v704_v32, %s3693_s15  ;;  %v5129_v54 = vpop.permute.xlu0 %1348  ;;  %v7617_v32 = vld [vmem:[#allocation40_spill] sm:$0xff] }
 0x21d   : > { %v1493_v56 = vsel %vm880_vm5, %v1347_v27, %v5129_v54  ;;  %v457_v49 = vsel %vm7618_vm11, %v7611_v58, %v7617_v32  ;;  %v478_v27 = vsel %vm7621_vm12, %v7620_v21, %v7619_v34  ;;  %vm7626_vm11 = vmmov %vm7621_vm12  ;;  %v7628_v32 = vld [vmem:[#allocation56_spill] sm:$0xff] }
 0x21e   : > { %v5140_v11 = vpop.permute.xlu1 %1083  ;;  %1300 = vrot.lane.b32.xlu0 %v692_v16, %s3693_s15  ;;  %1668 = vmatprep.subr.bf16.mxu0 %v1493_v56  ;;  %v725_v61 = vsel %vm629_vm1, %v478_v27, %v7622_v59  ;;  %v7623_v16 = vld [vmem:[#allocation35_spill] sm:$0xff]  ;;  %vm7627_vm12 = vmmov %vm7626_vm11 }
 0x21f   : > { %1669 = vmatpush1.bf16.msra.mxu0 %v1492_v38  ;;  %v433_v56 = vsel %vm7616_vm8, %v7613_v10, %v7623_v16  ;;  %v7625_v38 = vld [vmem:[#allocation43_spill] sm:$0xff]  ;;  %vm7629_vm8 = vcmask 211968   ;;  %v7631_v16 = vld [vmem:[#allocation46_spill] sm:$0xff] }
 0x220   : > { %1312 = vrot.lane.b32.xlu1 %v710_v63, %s3693_s15  ;;  %v5149_v40 = vpop.permute.xlu0 %1081  ;;  %v713_v58 = vsel %vm629_vm1, %v433_v56, %v457_v49  ;;  %v480_v63 = vsel %vm7626_vm11, %v7625_v38, %v7624_v48  ;;  %v541_v49 = vsel %vm7629_vm8, %v7628_v32, %v4898_v45 }
 0x221   : > { %v731_v10 = vsel %vm629_vm1, %v480_v63, %v4893_v18  ;;  %v7630_v18 = vld [vmem:[#allocation60_spill] sm:$0xff] }
 0x222   : > { %v5158_v55 = vpop.permute.xlu1 %1362  ;;  %1310 = vrot.lane.b32.xlu0 %v707_v51, %s3693_s15  ;;  %v479_v51 = vsel %vm7627_vm12, %v7619_v34, %v7625_v38  ;;  %v481_v34 = vsel %vm7626_vm11, %v7624_v48, %v7631_v16  ;;  %vm7632_vm12 = vmmov %vm7629_vm8  ;;  %v542_v38 = vsel %vm7629_vm8, %v4898_v45, %v4922_v52  ;;  %vm7634_vm11 = vcmask 138240  }
 0x223   : > { %v728_v27 = vsel %vm629_vm1, %v479_v51, %v4906_v29  ;;  %v543_v56 = vsel %vm7632_vm12, %v4922_v52, %v4912_v5  ;;  %v734_v29 = vsel %vm629_vm1, %v481_v34, %v4933_v23  ;;  %vm7635_vm12 = vmmov %vm7629_vm8  ;;  %vm7636_vm8 = vcmask 146432  }
 0x224   : > { %1322 = vrot.lane.b32.xlu1 %v725_v61, %s3693_s15  ;;  %v1361_v24 = vpop.permute.xlu0 %1360  ;;  %v746_v61 = vsel %vm629_vm1, %v7630_v18, %v541_v49  ;;  %v752_v48 = vsel %vm629_vm1, %v4971_v28, %v543_v56  ;;  %v544_v45 = vsel %vm7635_vm12, %v4912_v5, %v4941_v31  ;;  %v562_v52 = vsel %vm7636_vm8, %v4366_v42, %v4966_v36  ;;  %vm7637_vm12 = vmmov %vm7634_vm11 }
 0x225   : > { %v1499_v17 = vsel %vm880_vm5, %v1361_v24, %v5158_v55  ;;  %v585_v49 = vsel %vm7634_vm11, %v4973_v33, %v5011_v20  ;;  %v755_v5 = vsel %vm629_vm1, %v4980_v25, %v544_v45  ;;  %v584_v31 = vsel %vm7637_vm12, %v4984_v4, %v4973_v33 }
 0x226   : > { %v5173_v22 = vpop.permute.xlu1 %1087  ;;  %1314 = vrot.lane.b32.xlu0 %v713_v58, %s3693_s15  ;;  %1670 = vmatprep.subr.bf16.mxu0 %v1499_v17  ;;  %v625_v33 = vsel %vm622_vm13, %v4404_v37, %v5044_v46  ;;  %v586_v56 = vsel %vm7637_vm12, %v5011_v20, %v4999_v3  ;;  %vm7481_vm12 = vcmask 588800  }
 0x228   : > { %1326 = vrot.lane.b32.xlu1 %v731_v10, %s3693_s15  ;;  %v5185_v21 = vpop.permute.xlu0 %1085  ;;  %v7633_v10 = vld [vmem:[#allocation58_spill] sm:$0xff] }
 0x229   : > { %v583_v51 = vsel %vm7634_vm11, %v7633_v10, %v4984_v4  ;;  %vm7638_vm11 = vmmov %vm7636_vm8 }
 0x22a   : > { %v5189_v59 = vpop.permute.xlu1 %1095  ;;  %1324 = vrot.lane.b32.xlu0 %v728_v27, %s3693_s15  ;;  %v767_v32 = vsel %vm629_vm1, %v562_v52, %v583_v51  ;;  %v564_v27 = vsel %vm7636_vm8, %v4957_v57, %v4994_v8  ;;  %v563_v25 = vsel %vm7638_vm11, %v4966_v36, %v4957_v57  ;;  %v565_v57 = vsel %vm7636_vm8, %v4994_v8, %v4989_v62 }
 0x22b   : > { %v770_v34 = vsel %vm629_vm1, %v563_v25, %v584_v31  ;;  %v627_v36 = vsel %vm622_vm13, %v5075_v30, %v5084_v44  ;;  %v776_v20 = vsel %vm629_vm1, %v565_v57, %v586_v56  ;;  %v605_v8 = vsel %vm601_vm15, %v5032_v13, %v5053_v6 }
 0x22c   : > { %1336 = vrot.lane.b32.xlu1 %v746_v61, %s3693_s15  ;;  %v1359_v58 = vpop.permute.xlu0 %1358  ;;  %v773_v61 = vsel %vm629_vm1, %v564_v27, %v585_v49  ;;  %v1168_v49 = vsel %vm1159_vm0, %v4578_v9, %v5189_v59  ;;  %vm1916_vm11 = vcmask 1048128   ;;  %vm1923_vm8 = vcmask 850944  }
 0x22d   : > { %v1498_v17 = vsel %vm880_vm5, %v1359_v58, %v1361_v24  ;;  %v749_v24 = vsel %vm629_vm1, %v4949_v1, %v542_v38  ;;  %v7639_v58 = vld [vmem:[#allocation59_spill] sm:$0xff]  ;;  %v606_v38 = vsel %vm601_vm15, %v5053_v6, %v5064_v47  ;;  %v607_v6 = vsel %vm601_vm15, %v5064_v47, %v5092_v14 }
 0x22e   : > { %v1375_v63 = vpop.permute.xlu1 %1374  ;;  %1328 = vrot.lane.b32.xlu0 %v734_v29, %s3693_s15  ;;  %1671 = vmatpush1.bf16.msra.mxu0 %v1498_v17  ;;  %v604_v29 = vsel %vm601_vm15, %v7639_v58, %v5032_v13  ;;  %v794_v62 = vsel %vm629_vm1, %v606_v38, %v627_v36  ;;  %v1162_v13 = vsel %vm1159_vm0, %v4508_v19, %v5149_v40 }
 0x22f   : > { %v788_v37 = vsel %vm629_vm1, %v604_v29, %v625_v33  ;;  %v1163_v19 = vsel %vm1159_vm0, %v5149_v40, %v5140_v11 }
 0x230   : > { %1340 = vrot.lane.b32.xlu1 %v752_v48, %s3693_s15  ;;  %v5214_v23 = vpop.permute.xlu0 %1097 }
 0x231   : > { %v1169_v9 = vsel %vm1159_vm0, %v5189_v59, %v5214_v23 }
 0x232   : > { %v5224_v28 = vpop.permute.xlu1 %1099  ;;  %1338 = vrot.lane.b32.xlu0 %v749_v24, %s3693_s15 }
 0x234   : > { %1350 = vrot.lane.b32.xlu1 %v767_v32, %s3693_s15  ;;  %v5232_v1 = vpop.permute.xlu0 %1376 }
 0x235   : > { %v1505_v42 = vsel %vm880_vm5, %v1375_v63, %v5232_v1 }
 0x236   : > { %v1373_v18 = vpop.permute.xlu1 %1372  ;;  %1342 = vrot.lane.b32.xlu0 %v755_v5, %s3693_s15  ;;  %1672 = vmatprep.subr.bf16.mxu0 %v1505_v42  ;;  %v1165_v42 = vsel %vm1159_vm0, %v5185_v21, %v5173_v22 }
 0x237   : > { %v1504_v16 = vsel %vm880_vm5, %v1373_v18, %v1375_v63  ;;  %v626_v63 = vsel %vm622_vm13, %v5044_v46, %v5075_v30  ;;  %v628_v46 = vsel %vm622_vm13, %v5084_v44, %v5111_v26  ;;  %v1164_v44 = vsel %vm1159_vm0, %v5140_v11, %v5185_v21 }
 0x238   : > { %1354 = vrot.lane.b32.xlu1 %v773_v61, %s3693_s15  ;;  %1673 = vmatpush1.bf16.msra.mxu0 %v1504_v16  ;;  %v1102_v4 = vpop.permute.xlu0 %1101  ;;  %v791_v51 = vsel %vm629_vm1, %v605_v8, %v626_v63  ;;  %v797_v52 = vsel %vm629_vm1, %v607_v6, %v628_v46  ;;  %v1170_v11 = vsel %vm1159_vm0, %v5214_v23, %v5224_v28 }
 0x239   : > { %v1171_v16 = vsel %vm1159_vm0, %v5224_v28, %v1102_v4 }
 0x23a   : > { %v5261_v17 = vpop.permute.xlu1 %1111  ;;  %1352 = vrot.lane.b32.xlu0 %v770_v34, %s3693_s15 }
 0x23c   : > { %1364 = vrot.lane.b32.xlu1 %v788_v37, %s3693_s15  ;;  %v1110_v3 = vpop.permute.xlu0 %1109 }
 0x23d   : > { %v1174_v22 = vsel %vm1159_vm0, %v4621_v39, %v1110_v3  ;;  %v1175_v39 = vsel %vm1159_vm0, %v1110_v3, %v5261_v17 }
 0x23e   : > { %v5279_v48 = vpop.permute.xlu1 %1390  ;;  %1356 = vrot.lane.b32.xlu0 %v776_v20, %s3693_s15 }
 0x240   : > { %1368 = vrot.lane.b32.xlu1 %v794_v62, %s3693_s15  ;;  %v1389_v10 = vpop.permute.xlu0 %1388 }
 0x241   : > { %v1511_v24 = vsel %vm880_vm5, %v1389_v10, %v5279_v48 }
 0x242   : > { %v1116_v30 = vpop.permute.xlu1 %1115  ;;  %1366 = vrot.lane.b32.xlu0 %v791_v51, %s3693_s15  ;;  %1674 = vmatprep.subr.bf16.mxu0 %v1511_v24 }
 0x244   : > { %1378 = vrot.lane.b32.xlu1 %v1162_v13, %s3693_s15  ;;  %v1114_v45 = vpop.permute.xlu0 %1113 }
 0x245   : > { %v1176_v23 = vsel %vm1159_vm0, %v5261_v17, %v1114_v45  ;;  %v1177_v4 = vsel %vm1159_vm0, %v1114_v45, %v1116_v30 }
 0x246   : > { %v1124_v32 = vpop.permute.xlu1 %1123  ;;  %1370 = vrot.lane.b32.xlu0 %v797_v52, %s3693_s15 }
 0x247   : > { %v1180_v34 = vsel %vm1159_vm0, %v4727_v43, %v1124_v32 }
 0x248   : > { %1382 = vrot.lane.b32.xlu1 %v1164_v44, %s3693_s15  ;;  %v1387_v26 = vpop.permute.xlu0 %1386 }
 0x249   : > { %v1510_v47 = vsel %vm880_vm5, %v1387_v26, %v1389_v10 }
 0x24a   : > { %v1403_v14 = vpop.permute.xlu1 %1402  ;;  %1380 = vrot.lane.b32.xlu0 %v1163_v19, %s3693_s15  ;;  %1675 = vmatpush1.bf16.msra.mxu0 %v1510_v47 }
 0x24c   : > { %1392 = vrot.lane.b32.xlu1 %v1168_v49, %s3693_s15  ;;  %v1126_v5 = vpop.permute.xlu0 %1125 }
 0x24d   : > { %v1181_v37 = vsel %vm1159_vm0, %v1124_v32, %v1126_v5 }
 0x24e   : > { %v1128_v31 = vpop.permute.xlu1 %1127  ;;  %1384 = vrot.lane.b32.xlu0 %v1165_v42, %s3693_s15 }
 0x24f   : > { %v1182_v29 = vsel %vm1159_vm0, %v1126_v5, %v1128_v31 }
 0x250   : > { %1396 = vrot.lane.b32.xlu1 %v1170_v11, %s3693_s15  ;;  %v5324_v40 = vpop.permute.xlu0 %1404 }
 0x251   : > { %v1517_v27 = vsel %vm880_vm5, %v1403_v14, %v5324_v40 }
 0x252   : > { %v1401_v18 = vpop.permute.xlu1 %1400  ;;  %1394 = vrot.lane.b32.xlu0 %v1169_v9, %s3693_s15  ;;  %1676 = vmatprep.subr.bf16.mxu0 %v1517_v27 }
 0x253   : > { %v1516_v21 = vsel %vm880_vm5, %v1401_v18, %v1403_v14 }
 0x254   : > { %1406 = vrot.lane.b32.xlu1 %v1174_v22, %s3693_s15  ;;  %1677 = vmatpush1.bf16.msra.mxu0 %v1516_v21  ;;  %v1130_v61 = vpop.permute.xlu0 %1129 }
 0x255   : > { %v1183_v3 = vsel %vm1159_vm0, %v1128_v31, %v1130_v61  ;;  %v5395_v31 = vcombine.low %v5008_v60, %v5008_v60 }
 0x256   : > { %v1140_v59 = vpop.permute.xlu1 %1139  ;;  %1398 = vrot.lane.b32.xlu0 %v1171_v16, %s3693_s15 }
 0x258   : > { %1410 = vrot.lane.b32.xlu1 %v1176_v23, %s3693_s15  ;;  %v1138_v25 = vpop.permute.xlu0 %1137 }
 0x259   : > { %v1186_v57 = vsel %vm1159_vm0, %v4754_v0, %v1138_v25  ;;  %v1187_v8 = vsel %vm1159_vm0, %v1138_v25, %v1140_v59  ;;  %v7447_v0 = vmov 0  }
 0x25a   : > { %v5344_v33 = vpop.permute.xlu1 %1418  ;;  %1408 = vrot.lane.b32.xlu0 %v1175_v39, %s3693_s15  ;;  %3667 = vset.pattern.permute.xlu1 %v7447_v0 }
 0x25b   : > { %3668 = vset.pattern.permute.xlu0 %v7447_v0 }
 0x25c   : > { %1420 = vrot.lane.b32.xlu1 %v1180_v34, %s3693_s15  ;;  %v1417_v28 = vpop.permute.xlu0 %1416 }
 0x25d   : > { %v1523_v56 = vsel %vm880_vm5, %v1417_v28, %v5344_v33 }
 0x25e   : > { %v1144_v58 = vpop.permute.xlu1 %1143  ;;  %1412 = vrot.lane.b32.xlu0 %v1177_v4, %s3693_s15  ;;  %1678 = vmatprep.subr.bf16.mxu0 %v1523_v56 }
 0x260   : > { %1424 = vrot.lane.b32.xlu1 %v1182_v29, %s3693_s15  ;;  %v1142_v17 = vpop.permute.xlu0 %1141 }
 0x261   : > { %v1188_v63 = vsel %vm1159_vm0, %v1140_v59, %v1142_v17  ;;  %v1189_v46 = vsel %vm1159_vm0, %v1142_v17, %v1144_v58 }
 0x262   : > { %v1152_v43 = vpop.permute.xlu1 %1151  ;;  %1422 = vrot.lane.b32.xlu0 %v1181_v37, %s3693_s15 }
 0x263   : > { %v1192_v51 = vsel %vm1159_vm0, %v4806_v41, %v1152_v43 }
 0x264   : > { %1434 = vrot.lane.b32.xlu1 %v1186_v57, %s3693_s15  ;;  %v1415_v36 = vpop.permute.xlu0 %1414  ;;  %v1197_v57 = vld [vmem:[%s7371_s2] sm:$0xff] }
 0x265   : > { %v1522_v20 = vsel %vm880_vm5, %v1415_v36, %v1417_v28 }
 0x266   : > { %v1431_v38 = vpop.permute.xlu1 %1430  ;;  %1426 = vrot.lane.b32.xlu0 %v1183_v3, %s3693_s15  ;;  %1679 = vmatpush1.bf16.msra.mxu0 %v1522_v20 }
 0x268   : > { %1438 = vrot.lane.b32.xlu1 %v1188_v63, %s3693_s15  ;;  %v1154_v62 = vpop.permute.xlu0 %1153 }
 0x269   : > { %v1193_v52 = vsel %vm1159_vm0, %v1152_v43, %v1154_v62 }
 0x26a   : > { %v1156_v10 = vpop.permute.xlu1 %1155  ;;  %1436 = vrot.lane.b32.xlu0 %v1187_v8, %s3693_s15 }
 0x26b   : > { %v1194_v6 = vsel %vm1159_vm0, %v1154_v62, %v1156_v10 }
 0x26c   : > { %1448 = vrot.lane.b32.xlu1 %v1192_v51, %s3693_s15  ;;  %v5373_v24 = vpop.permute.xlu0 %1432 }
 0x26d   : > { %v1529_v30 = vsel %vm880_vm5, %v1431_v38, %v5373_v24 }
 0x26e   : > { %v1429_v13 = vpop.permute.xlu1 %1428  ;;  %1440 = vrot.lane.b32.xlu0 %v1189_v46, %s3693_s15  ;;  %1680 = vmatprep.subr.bf16.mxu0 %v1529_v30 }
 0x26f   : > { %v1528_v45 = vsel %vm880_vm5, %v1429_v13, %v1431_v38 }
 0x270   : > { %1452 = vrot.lane.b32.xlu1 %v1194_v6, %s3693_s15  ;;  %1681 = vmatpush1.bf16.msra.mxu0 %v1528_v45  ;;  %v1158_v41 = vpop.permute.xlu0 %1157 }
 0x271   : > { %v1195_v26 = vsel %vm1159_vm0, %v1156_v10, %v1158_v41 }
 0x272   : > { %v1445_v32 = vpop.permute.xlu1 %1444  ;;  %1450 = vrot.lane.b32.xlu0 %v1193_v52, %s3693_s15 }
 0x274   : > { %v1443_v44 = vpop.permute.xlu0 %1442  ;;  %1200 = vperm.xlu1 %3667, %v1197_v57  }
 0x275   : > { %v1534_v47 = vsel %vm880_vm5, %v1443_v44, %v1445_v32 }
 0x276   : > { %v1267_v19 = vpop.permute.xlu1 %1266  ;;  %1454 = vrot.lane.b32.xlu0 %v1195_v26, %s3693_s15  ;;  %v1636_v42 = vsel %vm629_vm1, %v1534_v47, 0 }
 0x277   : > { %v1458_v18 = vsel %vm880_vm5, %v4826_v15, %v1267_v19 }
 0x278   : > { %v5387_v14 = vpop.permute.xlu0 %1446 }
 0x279   : > { %v1535_v49 = vsel %vm880_vm5, %v1445_v32, %v5387_v14 }
 0x27a   : > { %v1271_v5 = vpop.permute.xlu1 %1270  ;;  %3612 = vmatprep.subr.msk.bf16.mxu0 %vm629_vm1, %v1535_v49 }
 0x27b   : > { %1683 = vmatpush1.bf16.msra.mxu0 %v1636_v42 }
 0x27c   : > { %v1269_v11 = vpop.permute.xlu0 %1268 }
 0x27d   : > { %v1459_v9 = vsel %vm880_vm5, %v1267_v19, %v1269_v11  ;;  %v1460_v61 = vsel %vm880_vm5, %v1269_v11, %v1271_v5 }
 0x27e   : > { %v1281_v27 = vpop.permute.xlu1 %1280  ;;  %1697 = vmatprep.subr.bf16.mxu1 %v1459_v9  ;;  %1689 = vmatmul.mubr.bf16.vlgmr.msra.gmra.mrb[0].mxu0 %v5395_v31 }
 0x27f   : > { %1698 = vmatpush1.bf16.msra.mxu1 %v1458_v18  ;;  %3617 = vmatprep.mubr.msk.bf16.mxu0 %vm7492_vm10, %v5015_v35  ;;  %v1464_v23 = vsel %vm880_vm5, %v4834_v2, %v1281_v27 }
 0x280   : > { %v5403_v22 = vpop.permute.xlu0 %1272 }
 0x281   : > { %v1461_v60 = vsel %vm880_vm5, %v1271_v5, %v5403_v22 }
 0x282   : > { %v1285_v21 = vpop.permute.xlu1 %1284  ;;  %1738 = vmatprep.subr.bf16.mxu0 %v1461_v60 }
 0x283   : > { %1739 = vmatpush1.bf16.msra.mxu0 %v1460_v61 }
 0x284   : > { %v1283_v16 = vpop.permute.xlu0 %1282 }
 0x285   : > { %v1465_v59 = vsel %vm880_vm5, %v1281_v27, %v1283_v16  ;;  %v1466_v28 = vsel %vm880_vm5, %v1283_v16, %v1285_v21 }
 0x286   : > { %v1295_v15 = vpop.permute.xlu1 %1294  ;;  %1699 = vmatprep.subr.bf16.mxu1 %v1465_v59 }
 0x287   : > { %1700 = vmatpush1.bf16.msra.mxu1 %v1464_v23  ;;  %v1470_v29 = vsel %vm880_vm5, %v4865_v12, %v1295_v15 }
 0x288   : > { %v5411_v25 = vpop.permute.xlu0 %1286 }
 0x289   : > { %v1467_v39 = vsel %vm880_vm5, %v1285_v21, %v5411_v25 }
 0x28a   : > { %v1299_v34 = vpop.permute.xlu1 %1298  ;;  %1740 = vmatprep.subr.bf16.mxu0 %v1467_v39 }
 0x28b   : > { %1741 = vmatpush1.bf16.msra.mxu0 %v1466_v28 }
 0x28c   : > { %v1297_v4 = vpop.permute.xlu0 %1296 }
 0x28d   : > { %v1471_v56 = vsel %vm880_vm5, %v1295_v15, %v1297_v4  ;;  %v1472_v43 = vsel %vm880_vm5, %v1297_v4, %v1299_v34 }
 0x28e   : > { %v1309_v58 = vpop.permute.xlu1 %1308  ;;  %1701 = vmatprep.subr.bf16.mxu1 %v1471_v56 }
 0x28f   : > { %1702 = vmatpush1.bf16.msra.mxu1 %v1470_v29  ;;  %v1476_v20 = vsel %vm880_vm5, %v4875_v50, %v1309_v58 }
 0x290   : > { %v5419_v2 = vpop.permute.xlu0 %1300 }
 0x291   : > { %v1473_v17 = vsel %vm880_vm5, %v1299_v34, %v5419_v2 }
 0x292   : > { %v1313_v37 = vpop.permute.xlu1 %1312  ;;  %1742 = vmatprep.subr.bf16.mxu0 %v1473_v17 }
 0x293   : > { %1743 = vmatpush1.bf16.msra.mxu0 %v1472_v43 }
 0x294   : > { %v1311_v36 = vpop.permute.xlu0 %1310 }
 0x295   : > { %v1477_v3 = vsel %vm880_vm5, %v1309_v58, %v1311_v36  ;;  %v1478_v8 = vsel %vm880_vm5, %v1311_v36, %v1313_v37 }
 0x296   : > { %v1323_v12 = vpop.permute.xlu1 %1322  ;;  %1703 = vmatprep.subr.bf16.mxu1 %v1477_v3 }
 0x297   : > { %1704 = vmatpush1.bf16.msra.mxu1 %v1476_v20  ;;  %v1482_v30 = vsel %vm880_vm5, %v4953_v53, %v1323_v12 }
 0x298   : > { %v5430_v38 = vpop.permute.xlu0 %1314 }
 0x299   : > { %v1479_v63 = vsel %vm880_vm5, %v1313_v37, %v5430_v38 }
 0x29a   : > { %v1327_v62 = vpop.permute.xlu1 %1326  ;;  %1744 = vmatprep.subr.bf16.mxu0 %v1479_v63 }
 0x29b   : > { %1745 = vmatpush1.bf16.msra.mxu0 %v1478_v8 }
 0x29c   : > { %v1325_v10 = vpop.permute.xlu0 %1324 }
 0x29d   : > { %v1483_v51 = vsel %vm880_vm5, %v1323_v12, %v1325_v10  ;;  %v1484_v45 = vsel %vm880_vm5, %v1325_v10, %v1327_v62 }
 0x29e   : > { %v1337_v46 = vpop.permute.xlu1 %1336  ;;  %1705 = vmatprep.subr.bf16.mxu1 %v1483_v51 }
 0x29f   : > { %1706 = vmatpush1.bf16.msra.mxu1 %v1482_v30  ;;  %v1488_v44 = vsel %vm880_vm5, %v5017_v7, %v1337_v46 }
 0x2a0   : > { %v5438_v50 = vpop.permute.xlu0 %1328 }
 0x2a1   : > { %v1485_v13 = vsel %vm880_vm5, %v1327_v62, %v5438_v50 }
 0x2a2   : > { %v1341_v6 = vpop.permute.xlu1 %1340  ;;  %1746 = vmatprep.subr.bf16.mxu0 %v1485_v13 }
 0x2a3   : > { %1747 = vmatpush1.bf16.msra.mxu0 %v1484_v45 }
 0x2a4   : > { %v1339_v41 = vpop.permute.xlu0 %1338 }
 0x2a5   : > { %v1489_v52 = vsel %vm880_vm5, %v1337_v46, %v1339_v41  ;;  %v1490_v47 = vsel %vm880_vm5, %v1339_v41, %v1341_v6 }
 0x2a6   : > { %v1351_v32 = vpop.permute.xlu1 %1350  ;;  %1707 = vmatprep.subr.bf16.mxu1 %v1489_v52 }
 0x2a7   : > { %1708 = vmatpush1.bf16.msra.mxu1 %v1488_v44  ;;  %v1494_v11 = vsel %vm880_vm5, %v5129_v54, %v1351_v32 }
 0x2a8   : > { %v5446_v53 = vpop.permute.xlu0 %1342 }
 0x2a9   : > { %v1491_v26 = vsel %vm880_vm5, %v1341_v6, %v5446_v53 }
 0x2aa   : > { %v1355_v19 = vpop.permute.xlu1 %1354  ;;  %1748 = vmatprep.subr.bf16.mxu0 %v1491_v26 }
 0x2ab   : > { %1749 = vmatpush1.bf16.msra.mxu0 %v1490_v47 }
 0x2ac   : > { %v1353_v49 = vpop.permute.xlu0 %1352 }
 0x2ad   : > { %v1495_v5 = vsel %vm880_vm5, %v1351_v32, %v1353_v49  ;;  %v1496_v18 = vsel %vm880_vm5, %v1353_v49, %v1355_v19 }
 0x2ae   : > { %v1365_v42 = vpop.permute.xlu1 %1364  ;;  %1709 = vmatprep.subr.bf16.mxu1 %v1495_v5 }
 0x2af   : > { %1710 = vmatpush1.bf16.msra.mxu1 %v1494_v11  ;;  %v1500_v16 = vsel %vm880_vm5, %v5158_v55, %v1365_v42 }
 0x2b0   : > { %v5454_v7 = vpop.permute.xlu0 %1356 }
 0x2b1   : > { %v1497_v9 = vsel %vm880_vm5, %v1355_v19, %v5454_v7 }
 0x2b2   : > { %v1369_v27 = vpop.permute.xlu1 %1368  ;;  %1750 = vmatprep.subr.bf16.mxu0 %v1497_v9 }
 0x2b3   : > { %1751 = vmatpush1.bf16.msra.mxu0 %v1496_v18 }
 0x2b4   : > { %v1367_v60 = vpop.permute.xlu0 %1366 }
 0x2b5   : > { %v1501_v21 = vsel %vm880_vm5, %v1365_v42, %v1367_v60  ;;  %v1502_v23 = vsel %vm880_vm5, %v1367_v60, %v1369_v27 }
 0x2b6   : > { %v1379_v61 = vpop.permute.xlu1 %1378  ;;  %1711 = vmatprep.subr.bf16.mxu1 %v1501_v21 }
 0x2b7   : > { %1712 = vmatpush1.bf16.msra.mxu1 %v1500_v16  ;;  %v1506_v4 = vsel %vm880_vm5, %v5232_v1, %v1379_v61 }
 0x2b8   : > { %v5462_v54 = vpop.permute.xlu0 %1370 }
 0x2b9   : > { %v1503_v59 = vsel %vm880_vm5, %v1369_v27, %v5462_v54 }
 0x2ba   : > { %v1383_v15 = vpop.permute.xlu1 %1382  ;;  %1752 = vmatprep.subr.bf16.mxu0 %v1503_v59 }
 0x2bb   : > { %1753 = vmatpush1.bf16.msra.mxu0 %v1502_v23 }
 0x2bc   : > { %v1381_v39 = vpop.permute.xlu0 %1380 }
 0x2bd   : > { %v1507_v34 = vsel %vm880_vm5, %v1379_v61, %v1381_v39  ;;  %v1508_v29 = vsel %vm880_vm5, %v1381_v39, %v1383_v15 }
 0x2be   : > { %v1393_v28 = vpop.permute.xlu1 %1392  ;;  %1713 = vmatprep.subr.bf16.mxu1 %v1507_v34 }
 0x2bf   : > { %1714 = vmatpush1.bf16.msra.mxu1 %v1506_v4  ;;  %v1512_v57 = vsel %vm880_vm5, %v5279_v48, %v1393_v28 }
 0x2c0   : > { %v5470_v55 = vpop.permute.xlu0 %1384 }
 0x2c1   : > { %v1509_v56 = vsel %vm880_vm5, %v1383_v15, %v5470_v55 }
 0x2c2   : > { %v1397_v58 = vpop.permute.xlu1 %1396  ;;  %1754 = vmatprep.subr.bf16.mxu0 %v1509_v56 }
 0x2c3   : > { %1755 = vmatpush1.bf16.msra.mxu0 %v1508_v29 }
 0x2c4   : > { %v1395_v17 = vpop.permute.xlu0 %1394 }
 0x2c5   : > { %v1513_v37 = vsel %vm880_vm5, %v1393_v28, %v1395_v17  ;;  %v1514_v12 = vsel %vm880_vm5, %v1395_v17, %v1397_v58 }
 0x2c6   : > { %v1407_v43 = vpop.permute.xlu1 %1406  ;;  %1715 = vmatprep.subr.bf16.mxu1 %v1513_v37 }
 0x2c7   : > { %1716 = vmatpush1.bf16.msra.mxu1 %v1512_v57  ;;  %v1518_v8 = vsel %vm880_vm5, %v5324_v40, %v1407_v43 }
 0x2c8   : > { %v5478_v1 = vpop.permute.xlu0 %1398 }
 0x2c9   : > { %v1515_v36 = vsel %vm880_vm5, %v1397_v58, %v5478_v1 }
 0x2ca   : > { %v1411_v3 = vpop.permute.xlu1 %1410  ;;  %1756 = vmatprep.subr.bf16.mxu0 %v1515_v36 }
 0x2cb   : > { %1757 = vmatpush1.bf16.msra.mxu0 %v1514_v12 }
 0x2cc   : > { %v1409_v20 = vpop.permute.xlu0 %1408 }
 0x2cd   : > { %v1519_v63 = vsel %vm880_vm5, %v1407_v43, %v1409_v20  ;;  %v1520_v46 = vsel %vm880_vm5, %v1409_v20, %v1411_v3 }
 0x2ce   : > { %v1421_v62 = vpop.permute.xlu1 %1420  ;;  %1717 = vmatprep.subr.bf16.mxu1 %v1519_v63 }
 0x2cf   : > { %1718 = vmatpush1.bf16.msra.mxu1 %v1518_v8  ;;  %v1524_v45 = vsel %vm880_vm5, %v5344_v33, %v1421_v62 }
 0x2d0   : > { %v5486_v48 = vpop.permute.xlu0 %1412 }
 0x2d1   : > { %v1521_v10 = vsel %vm880_vm5, %v1411_v3, %v5486_v48 }
 0x2d2   : > { %v1425_v51 = vpop.permute.xlu1 %1424  ;;  %1758 = vmatprep.subr.bf16.mxu0 %v1521_v10 }
 0x2d3   : > { %1759 = vmatpush1.bf16.msra.mxu0 %v1520_v46 }
 0x2d4   : > { %v1423_v30 = vpop.permute.xlu0 %1422 }
 0x2d5   : > { %v1525_v13 = vsel %vm880_vm5, %v1421_v62, %v1423_v30  ;;  %v1526_v32 = vsel %vm880_vm5, %v1423_v30, %v1425_v51 }
 0x2d6   : > { %v1435_v6 = vpop.permute.xlu1 %1434  ;;  %1719 = vmatprep.subr.bf16.mxu1 %v1525_v13  ;;  %v7449_v13 = vmov 0.0|0.0  }
 0x2d7   : > { %1720 = vmatpush1.bf16.msra.mxu1 %v1524_v45  ;;  %v1530_v19 = vsel %vm880_vm5, %v5373_v24, %v1435_v6 }
 0x2d8   : > { %v1427_v40 = vpop.permute.xlu0 %1426 }
 0x2d9   : > { %v1527_v41 = vsel %vm880_vm5, %v1425_v51, %v1427_v40 }
 0x2da   : > { %v1439_v52 = vpop.permute.xlu1 %1438  ;;  %1760 = vmatprep.subr.bf16.mxu0 %v1527_v41 }
 0x2db   : > { %1761 = vmatpush1.bf16.msra.mxu0 %v1526_v32 }
 0x2dc   : > { %v1437_v44 = vpop.permute.xlu0 %1436 }
 0x2dd   : > { %v1531_v26 = vsel %vm880_vm5, %v1435_v6, %v1437_v44  ;;  %v1532_v5 = vsel %vm880_vm5, %v1437_v44, %v1439_v52  ;;  %v5569_v6 = vrot.slane %v7449_v13, 4 }
 0x2de   : > { %1721 = vmatprep.subr.bf16.mxu1 %v1531_v26  ;;  %v1449_v47 = vpop.permute.xlu1 %1448 }
 0x2df   : > { %1722 = vmatpush1.bf16.msra.mxu1 %v1530_v19  ;;  %v1536_v42 = vsel %vm880_vm5, %v5387_v14, %v1449_v47 }
 0x2e0   : > { %v1441_v49 = vpop.permute.xlu0 %1440  ;;  %v1642_v24 = vsel %vm629_vm1, %v1536_v42, 0 }
 0x2e1   : > { %v1533_v33 = vsel %vm880_vm5, %v1439_v52, %v1441_v49 }
 0x2e2   : > { %1762 = vmatprep.subr.bf16.mxu0 %v1533_v33  ;;  %v1453_v27 = vpop.permute.xlu1 %1452 }
 0x2e3   : > { %1763 = vmatpush1.bf16.msra.mxu0 %v1532_v5 }
 0x2e4   : > { %v1451_v11 = vpop.permute.xlu0 %1450 }
 0x2e5   : > { %v1537_v9 = vsel %vm880_vm5, %v1449_v47, %v1451_v11  ;;  %v1538_v18 = vsel %vm880_vm5, %v1451_v11, %v1453_v27 }
 0x2e6   : > { %3614 = vmatprep.subr.msk.bf16.mxu1 %vm629_vm1, %v1537_v9  ;;  %v1648_v14 = vsel %vm629_vm1, %v1538_v18, 0 }
 0x2e7   : > { %1724 = vmatpush1.bf16.msra.mxu1 %v1642_v24 }
 0x2e8   : > { %v1455_v60 = vpop.permute.xlu0 %1454  ;;  %1779 = vmatprep.subr.bf16.mxu1 %v7447_v0 }
 0x2e9   : > { %v1539_v21 = vsel %vm880_vm5, %v1453_v27, %v1455_v60 }
 0x2ea   : > { %1730 = vmatmul.mubr.bf16.vlgmr.msra.gmra.mrb[0].mxu1 %v5395_v31  ;;  %3616 = vmatprep.subr.msk.bf16.mxu0 %vm629_vm1, %v1539_v21 }
 0x2eb   : > { %1765 = vmatpush1.bf16.msra.mxu0 %v1648_v14  ;;  %1780 = vmatpush1.bf16.msra.mxu1 %v5403_v22  ;;  %v3705_v22 = vmov 0.0  }
 0x2ec   : > { %1781 = vmatprep.subr.bf16.mxu1 %v7447_v0  ;;  %3618 = vmatprep.mubr.msk.bf16.mxu1 %vm7492_vm10, %v5015_v35  ;;  %v1654_v35 = vsel %vm629_vm1, %v1455_v60, 0  ;;  %1871 = vst [vmem:[#allocation2 + $0x8] sm:$0xff] %v3705_v22  ;;  %1877 = vst [vmem:[#allocation2 + $0x38] sm:$0xff] %v3705_v22 }
 0x2ee   : > { %1771 = vmatmul.mubr.bf16.vlgmr.msra.gmra.mrb[4].mxu0 %v5395_v31 }
 0x2ef   : > { %1782 = vmatpush1.bf16.msra.mxu1 %v5411_v25  ;;  %v1828_v25 = vlaneseq }
 0x2f0   : > { %1783 = vmatprep.subr.bf16.mxu1 %v7447_v0 }
 0x2f3   : > { %1784 = vmatpush1.bf16.msra.mxu1 %v5419_v2  ;;  %v5541_v2 = vshrl.u32 %v1828_v25, 7 }
 0x2f4   : > { %1785 = vmatprep.subr.bf16.mxu1 %v7447_v0 }
 0x2f5   : > { %v1838_v56 = vsub.s32 2, %v5541_v2  ;;  %v1842_v58 = vsub.s32 3, %v5541_v2  ;;  %v1850_v19 = vsub.s32 5, %v5541_v2  ;;  %v1854_v11 = vsub.s32 6, %v5541_v2 }
 0x2f7   : > { %1786 = vmatpush1.bf16.msra.mxu1 %v5430_v38  ;;  %v1830_v38 = vsub.s32 0, %v5541_v2 }
 0x2f8   : > { %1787 = vmatprep.subr.bf16.mxu1 %v7447_v0 }
 0x2fb   : > { %1788 = vmatpush1.bf16.msra.mxu1 %v5438_v50  ;;  %v5544_v50 = vpop.permute.xlu1 %1200 }
 0x2fc   : > { %1789 = vmatprep.subr.bf16.mxu1 %v7447_v0 }
 0x2ff   : > { %1790 = vmatpush1.bf16.msra.mxu1 %v5446_v53  ;;  %v5549_v53 = vld [vmem:[%s7374_s5] sm:$0x7f] }
 0x300   : > { %1791 = vmatprep.subr.bf16.mxu1 %v7447_v0  ;;  %v1831_v16 = vrot.slane %v5549_v53, %v1830_v38  ;;  %v1839_v37 = vrot.slane %v5549_v53, %v1838_v56  ;;  %v1855_v24 = vrot.slane %v5549_v53, %v1854_v11 }
 0x303   : > { %1792 = vmatpush1.bf16.msra.mxu1 %v5454_v7  ;;  %v1834_v7 = vsub.s32 1, %v5541_v2 }
 0x304   : > { %1793 = vmatprep.subr.bf16.mxu1 %v7447_v0 }
 0x305   : > { %v1835_v15 = vrot.slane %v5549_v53, %v1834_v7 }
 0x307   : > { %1794 = vmatpush1.bf16.msra.mxu1 %v5462_v54 }
 0x308   : > { %1795 = vmatprep.subr.bf16.mxu1 %v7447_v0 }
 0x30b   : > { %1796 = vmatpush1.bf16.msra.mxu1 %v5470_v55 }
 0x30c   : > { %1797 = vmatprep.subr.bf16.mxu1 %v7447_v0 }
 0x30f   : > { %1798 = vmatpush1.bf16.msra.mxu1 %v5478_v1  ;;  %v1843_v1 = vrot.slane %v5549_v53, %v1842_v58 }
 0x310   : > { %1799 = vmatprep.subr.bf16.mxu1 %v7447_v0 }
 0x313   : > { %1800 = vmatpush1.bf16.msra.mxu1 %v5486_v48  ;;  %v1846_v48 = vsub.s32 4, %v5541_v2 }
 0x314   : > { %1801 = vmatprep.subr.bf16.mxu1 %v7447_v0 }
 0x317   : > { %1802 = vmatpush1.bf16.msra.mxu1 %v1427_v40  ;;  %v1847_v40 = vrot.slane %v5549_v53, %v1846_v48 }
 0x318   : > { %1803 = vmatprep.subr.bf16.mxu1 %v7447_v0 }
 0x31b   : > { %1804 = vmatpush1.bf16.msra.mxu1 %v1441_v49  ;;  %v1851_v49 = vrot.slane %v5549_v53, %v1850_v19 }
 0x31c   : > { %1805 = vmatprep.subr.bf16.mxu1 %v7447_v0 }
 0x31f   : > { %1806 = vmatpush1.bf16.msra.mxu1 %v1654_v35 }
 0x322   : > { %1812 = vmatmul.mubr.bf16.vlgmr.msra.gmra.mrb[4].mxu1 %v5395_v31 }
 0x351   : > { %v1690_v61 = vpop.f32.mrb[0].mxu0 }
 0x352   : > { %v1691_v31 = vadd.f32 %v1690_v61, %v5544_v50  ;;  %v1692_v54 = vpop.f32.mrb[1].mxu0 }
 0x353   : > { %v1693_v59 = vadd.f32 %v1692_v54, %v5544_v50  ;;  %v1694_v23 = vpop.f32.mrb[2].mxu0 }
 0x354   : > { %v1819_v39 = vmax.f32 %v1691_v31, 0.0  ;;  %v1695_v34 = vpop.f32.mrb[3].mxu0 }
 0x355   : > { %v1820_v28 = vmax.f32 %v1693_v59, 0.0 }
 0x356   : > { %v1863_v4 = vmul.f32 %v1831_v16, %v1819_v39 }
 0x357   : > { %v1864_v55 = vmul.f32 %v1835_v15, %v1820_v28 }
 0x358   : > { %1888 = vrot.lane.b32.xlu0 %v1863_v4, %s3706_s10 }
 0x359   : > { %1890 = vrot.lane.b32.xlu1 %v1864_v55, %s3706_s10 }
 0x3bd   : > { %v1731_v29 = vpop.f32.mrb[0].mxu1 }
 0x3be   : > { %v1732_v17 = vadd.f32 %v1731_v29, %v5544_v50  ;;  %v1733_v43 = vpop.f32.mrb[1].mxu1 }
 0x3bf   : > { %v1734_v57 = vadd.f32 %v1733_v43, %v5544_v50  ;;  %v1735_v36 = vpop.f32.mrb[2].mxu1 }
 0x3c0   : > { %v1821_v3 = vmax.f32 %v1732_v17, 0.0  ;;  %v1736_v12 = vpop.f32.mrb[3].mxu1 }
 0x3c1   : > { %v1822_v20 = vmax.f32 %v1734_v57, 0.0  ;;  %v1772_v63 = vpop.f32.mrb[4].mxu0 }
 0x3c2   : > { %v1865_v62 = vmul.f32 %v1839_v37, %v1821_v3  ;;  %v1773_v8 = vadd.f32 %v1772_v63, %v5544_v50  ;;  %v1774_v10 = vpop.f32.mrb[5].mxu0 }
 0x3c3   : > { %v1866_v51 = vmul.f32 %v1843_v1, %v1822_v20  ;;  %v1776_v46 = vpop.f32.mrb[6].mxu0  ;;  %v1775_v26 = vadd.f32 %v1774_v10, %v5544_v50 }
 0x3c4   : > { %1892 = vrot.lane.b32.xlu0 %v1865_v62, %s3706_s10  ;;  %v1777_v30 = vpop.f32.mrb[7].mxu0  ;;  %v1823_v45 = vmax.f32 %v1773_v8, 0.0 }
 0x3c5   : > { %1894 = vrot.lane.b32.xlu1 %v1866_v51, %s3706_s10  ;;  %v1824_v47 = vmax.f32 %v1775_v26, 0.0 }
 0x3c6   : > { %v1867_v41 = vmul.f32 %v1847_v40, %v1823_v45 }
 0x3c7   : > { %v1868_v33 = vmul.f32 %v1851_v49, %v1824_v47 }
 0x3c8   : > { %1977 = vrot.lane.b32.xlu0 %v7449_v13, %s3681_s27 }
 0x3c9   : > { %1957 = vrot.lane.b32.xlu1 %v5569_v6, %s3682_s28 }
 0x3ca   : > { %v1889_v52 = vpop.permute.xlu0 %1888 }
 0x3cb   : > { %1917 = vst.msk [vmem:[#allocation2 + $0x8] sm:$0xff] %vm1916_vm11, %v1889_v52  ;;  %v1891_v32 = vpop.permute.xlu1 %1890  ;;  %vm7678_vm11 = vcmask 1039360  }
 0x3cc   : > { %1896 = vrot.lane.b32.xlu0 %v1867_v41, %s3706_s10  ;;  %v1903_v44 = vsel %vm7481_vm12, %v1889_v52, %v1891_v32 }
 0x3cd   : > { %1999 = vrot.lane.b32.xlu1 %v5569_v6, %s3683_s29  ;;  %v5605_v25 = vpack.c.bf16 %v1903_v44, %v1903_v44 }
 0x3cf   : > { %v5676_v4 = vrot.slane %v5605_v25, 4 }
 0x3d1   : > { %2022 = vrot.lane.b32.xlu1 %v7449_v13, %s3684_s30 }
 0x3d2   : > { %v1926_v5 = vld [vmem:[#allocation2 + $0x8] sm:$0xff] }
 0x3d3   : > { %v5588_v42 = vpack.c.bf16 %v1926_v5, %v1926_v5 }
 0x3d5   : > { %2045 = vrot.lane.b32.xlu1 %v5569_v6, %s3685_s7  ;;  %v5601_v22 = vrot.slane %v5588_v42, 4 }
 0x3d9   : > { %1898 = vrot.lane.b32.xlu1 %v1868_v33, %s3706_s10 }
 0x3dd   : > { %1979 = vrot.lane.b32.xlu1 %v5588_v42, %s3681_s27 }
 0x3f5   : > { %v1813_v9 = vpop.f32.mrb[4].mxu1 }
 0x3f6   : > { %v1814_v27 = vadd.f32 %v1813_v9, %v5544_v50  ;;  %v1815_v18 = vpop.f32.mrb[5].mxu1 }
 0x3f7   : > { %v1816_v60 = vpop.f32.mrb[6].mxu1 }
 0x3f8   : > { %v1825_v21 = vmax.f32 %v1814_v27, 0.0  ;;  %v1817_v14 = vpop.f32.mrb[7].mxu1 }
 0x3fa   : > { %v1869_v35 = vmul.f32 %v1855_v24, %v1825_v21 }
 0x3fc   : > { %1900 = vrot.lane.b32.xlu0 %v1869_v35, %s3706_s10 }
 0x400   : > { %2024 = vrot.lane.b32.xlu0 %v5588_v42, %s3684_s30 }
 0x404   : > { %2070 = vrot.lane.b32.xlu0 %v5588_v42, %s3686_s8 }
 0x408   : > { %1959 = vrot.lane.b32.xlu0 %v5601_v22, %s3682_s28 }
 0x40c   : > { %1981 = vrot.lane.b32.xlu0 %v5605_v25, %s3681_s27 }
 0x436   : > { %v1893_v2 = vpop.permute.xlu0 %1892 }
 0x437   : > { %v1904_v38 = vsel %vm7481_vm12, %v1891_v32, %v1893_v2  ;;  %v1895_v50 = vpop.permute.xlu1 %1894 }
 0x438   : > { %v5610_v53 = vpack.c.bf16 %v1904_v38, %v1904_v38  ;;  %v1905_v7 = vsel %vm7481_vm12, %v1893_v2, %v1895_v50 }
 0x439   : > { %v5613_v61 = vpack.c.bf16 %v1905_v7, %v1905_v7 }
 0x43a   : > { %v5615_v31 = vpop.permute.xlu0 %1977  ;;  %1983 = vrot.lane.b32.xlu1 %v5610_v53, %s3681_s27  ;;  %v5686_v56 = vrot.slane %v5610_v53, 4 }
 0x43b   : > { %7640 = vst [vmem:[#allocation9_spill] sm:$0xff] %v5615_v31  ;;  %v5619_v16 = vpop.permute.xlu1 %1957  ;;  %1985 = vrot.lane.b32.xlu0 %v5613_v61, %s3681_s27  ;;  %v5683_v55 = vrot.slane %v5613_v61, 4 }
 0x43e   : > { %v1897_v54 = vpop.permute.xlu0 %1896  ;;  %2026 = vrot.lane.b32.xlu1 %v5605_v25, %s3684_s30 }
 0x43f   : > { %v1906_v59 = vsel %vm7481_vm12, %v1895_v50, %v1897_v54  ;;  %v5626_v15 = vpop.permute.xlu1 %1999  ;;  %2001 = vrot.lane.b32.xlu0 %v5601_v22, %s3683_s29 }
 0x440   : > { %7641 = vst [vmem:[#allocation55_spill] sm:$0xff] %v5626_v15  ;;  %v5729_v17 = vpack.c.bf16 %v1906_v59, %v1906_v59 }
 0x442   : > { %2451 = vrot.lane.b32.xlu1 %v5610_v53, %s3689_s11  ;;  %v5780_v8 = vrot.slane %v5729_v17, 4 }
 0x443   : > { %v5632_v23 = vpop.permute.xlu1 %2022  ;;  %2449 = vrot.lane.b32.xlu0 %v5605_v25, %s3689_s11 }
 0x444   : > { %7642 = vst [vmem:[#allocation13_spill] sm:$0xff] %v5632_v23 }
 0x446   : > { %2492 = vrot.lane.b32.xlu1 %v5610_v53, %s3692_s14 }
 0x447   : > { %v5638_v39 = vpop.permute.xlu1 %2045  ;;  %2453 = vrot.lane.b32.xlu0 %v5613_v61, %s3689_s11 }
 0x448   : > { %7643 = vst [vmem:[#allocation12_spill] sm:$0xff] %v5638_v39 }
 0x44a   : > { %2532 = vrot.lane.b32.xlu1 %v5610_v53, %s3694_s16 }
 0x44b   : > { %v1899_v34 = vpop.permute.xlu1 %1898  ;;  %2490 = vrot.lane.b32.xlu0 %v5605_v25, %s3692_s14 }
 0x44c   : > { %v1907_v28 = vsel %vm7481_vm12, %v1897_v54, %v1899_v34 }
 0x44d   : > { %v5751_v57 = vpack.c.bf16 %v1907_v28, %v1907_v28 }
 0x44e   : > { %2570 = vrot.lane.b32.xlu1 %v5605_v25, %s3696_s18 }
 0x44f   : > { %2494 = vrot.lane.b32.xlu0 %v5613_v61, %s3692_s14  ;;  %v5759_v36 = vpop.permute.xlu1 %1979  ;;  %v5797_v46 = vrot.slane %v5751_v57, 4 }
 0x450   : > { %7646 = vst [vmem:[#allocation48_spill] sm:$0xff] %v5759_v36 }
 0x451   : > { %7652 = vst [vmem:[#allocation44_spill] sm:$0xff] %v5797_v46 }
 0x452   : > { %2574 = vrot.lane.b32.xlu1 %v5613_v61, %s3696_s18 }
 0x453   : > { %2530 = vrot.lane.b32.xlu0 %v5605_v25, %s3694_s16 }
 0x456   : > { %2161 = vrot.lane.b32.xlu1 %v5610_v53, %s3697_s19 }
 0x457   : > { %2534 = vrot.lane.b32.xlu0 %v5613_v61, %s3694_s16 }
 0x45a   : > { %2028 = vrot.lane.b32.xlu1 %v5610_v53, %s3684_s30 }
 0x45b   : > { %2572 = vrot.lane.b32.xlu0 %v5610_v53, %s3696_s18 }
 0x45e   : > { %2030 = vrot.lane.b32.xlu1 %v5613_v61, %s3684_s30 }
 0x45f   : > { %2159 = vrot.lane.b32.xlu0 %v5605_v25, %s3697_s19 }
 0x462   : > { %2072 = vrot.lane.b32.xlu1 %v5605_v25, %s3686_s8 }
 0x463   : > { %2163 = vrot.lane.b32.xlu0 %v5613_v61, %s3697_s19 }
 0x466   : > { %2093 = vrot.lane.b32.xlu1 %v5601_v22, %s3687_s9 }
 0x467   : > { %2047 = vrot.lane.b32.xlu0 %v5601_v22, %s3685_s7 }
 0x46a   : > { %1961 = vrot.lane.b32.xlu1 %v5676_v4, %s3682_s28 }
 0x46b   : > { %2074 = vrot.lane.b32.xlu0 %v5610_v53, %s3686_s8 }
 0x46e   : > { %v1901_v58 = vpop.permute.xlu0 %1900  ;;  %1965 = vrot.lane.b32.xlu1 %v5683_v55, %s3682_s28 }
 0x46f   : > { %v1908_v29 = vsel %vm7481_vm12, %v1899_v34, %v1901_v58  ;;  %1963 = vrot.lane.b32.xlu0 %v5686_v56, %s3682_s28 }
 0x470   : > { %1924 = vst.msk [vmem:[#allocation2 + $0x38] sm:$0xff] %vm1923_vm8, %v1908_v29  ;;  %vm7680_vm8 = vmmov %vm7678_vm11 }
 0x472   : > { %2003 = vrot.lane.b32.xlu1 %v5676_v4, %s3683_s29  ;;  %v5735_v37 = vpop.permute.xlu0 %2024 }
 0x473   : > { %2005 = vrot.lane.b32.xlu0 %v5686_v56, %s3683_s29  ;;  %7644 = vst [vmem:[#allocation11_spill] sm:$0xff] %v5735_v37 }
 0x476   : > { %2007 = vrot.lane.b32.xlu1 %v5683_v55, %s3683_s29  ;;  %v5743_v43 = vpop.permute.xlu0 %2070 }
 0x477   : > { %2472 = vrot.lane.b32.xlu0 %v5686_v56, %s3691_s13  ;;  %7645 = vst [vmem:[#allocation49_spill] sm:$0xff] %v5743_v43  ;;  %v1932_v32 = vld [vmem:[#allocation2 + $0x38] sm:$0xff] }
 0x478   : > { %v5823_v26 = vpack.c.bf16 %v1932_v32, %v1932_v32 }
 0x47a   : > { %2470 = vrot.lane.b32.xlu1 %v5676_v4, %s3691_s13  ;;  %v5753_v1 = vpop.permute.xlu0 %1959  ;;  %v5836_v33 = vrot.slane %v5823_v26, 4 }
 0x47b   : > { %2512 = vrot.lane.b32.xlu0 %v5686_v56, %s3693_s15 }
 0x47e   : > { %2474 = vrot.lane.b32.xlu1 %v5683_v55, %s3691_s13  ;;  %v5761_v3 = vpop.permute.xlu0 %1981 }
 0x47f   : > { %2552 = vrot.lane.b32.xlu0 %v5686_v56, %s3695_s17  ;;  %7647 = vst [vmem:[#allocation51_spill] sm:$0xff] %v5761_v3 }
 0x482   : > { %2510 = vrot.lane.b32.xlu1 %v5676_v4, %s3693_s15 }
 0x483   : > { %2139 = vrot.lane.b32.xlu0 %v5676_v4, %s3690_s12 }
 0x486   : > { %2514 = vrot.lane.b32.xlu1 %v5683_v55, %s3693_s15 }
 0x487   : > { %2143 = vrot.lane.b32.xlu0 %v5683_v55, %s3690_s12 }
 0x48a   : > { %2550 = vrot.lane.b32.xlu1 %v5676_v4, %s3695_s17 }
 0x48b   : > { %2051 = vrot.lane.b32.xlu0 %v5686_v56, %s3685_s7 }
 0x48e   : > { %2554 = vrot.lane.b32.xlu1 %v5683_v55, %s3695_s17 }
 0x48f   : > { %2053 = vrot.lane.b32.xlu0 %v5683_v55, %s3685_s7 }
 0x492   : > { %2141 = vrot.lane.b32.xlu1 %v5686_v56, %s3690_s12 }
 0x493   : > { %2095 = vrot.lane.b32.xlu0 %v5676_v4, %s3687_s9 }
 0x496   : > { %2049 = vrot.lane.b32.xlu1 %v5676_v4, %s3685_s7 }
 0x497   : > { %2455 = vrot.lane.b32.xlu0 %v5729_v17, %s3689_s11 }
 0x49a   : > { %2097 = vrot.lane.b32.xlu1 %v5686_v56, %s3687_s9 }
 0x49b   : > { %2496 = vrot.lane.b32.xlu0 %v5729_v17, %s3692_s14 }
 0x49e   : > { %1987 = vrot.lane.b32.xlu1 %v5729_v17, %s3681_s27 }
 0x49f   : > { %2536 = vrot.lane.b32.xlu0 %v5729_v17, %s3694_s16 }
 0x4a2   : > { %2165 = vrot.lane.b32.xlu1 %v5729_v17, %s3697_s19 }
 0x4a3   : > { %2576 = vrot.lane.b32.xlu0 %v5729_v17, %s3696_s18 }
 0x4a6   : > { %2457 = vrot.lane.b32.xlu1 %v5751_v57, %s3689_s11 }
 0x4a7   : > { %2032 = vrot.lane.b32.xlu0 %v5729_v17, %s3684_s30 }
 0x4aa   : > { %2498 = vrot.lane.b32.xlu1 %v5751_v57, %s3692_s14 }
 0x4ab   : > { %1989 = vrot.lane.b32.xlu0 %v5751_v57, %s3681_s27  ;;  %s7658_s27 = smov 106  }
 0x4ac   : > { %v5767_v12 = vpop.permute.xlu1 %1983 }
 0x4ad   : > { %7648 = vst [vmem:[#allocation50_spill] sm:$0xff] %v5767_v12  ;;  %v5769_v20 = vpop.permute.xlu0 %1985 }
 0x4ae   : > { %7649 = vst [vmem:[#allocation52_spill] sm:$0xff] %v5769_v20  ;;  %2538 = vrot.lane.b32.xlu1 %v5751_v57, %s3694_s16 }
 0x4af   : > { %2167 = vrot.lane.b32.xlu0 %v5751_v57, %s3697_s19 }
 0x4b0   : > { %v5775_v63 = vpop.permute.xlu1 %2026 }
 0x4b1   : > { %7650 = vst [vmem:[#allocation54_spill] sm:$0xff] %v5775_v63  ;;  %v5777_v62 = vpop.permute.xlu0 %2001 }
 0x4b2   : > { %7651 = vst [vmem:[#allocation53_spill] sm:$0xff] %v5777_v62  ;;  %2578 = vrot.lane.b32.xlu1 %v5751_v57, %s3696_s18 }
 0x4b3   : > { %1967 = vrot.lane.b32.xlu0 %v5780_v8, %s3682_s28 }
 0x4b4   : > { %v5786_v48 = vpop.permute.xlu1 %2451 }
 0x4b5   : > { %v5788_v10 = vpop.permute.xlu0 %2449 }
 0x4b6   : > { %2055 = vrot.lane.b32.xlu1 %v5780_v8, %s3685_s7 }
 0x4b7   : > { %2009 = vrot.lane.b32.xlu0 %v5780_v8, %s3683_s29 }
 0x4b8   : > { %v5794_v51 = vpop.permute.xlu1 %2492 }
 0x4b9   : > { %v5799_v30 = vpop.permute.xlu0 %2453 }
 0x4ba   : > { %1969 = vrot.lane.b32.xlu1 %v5797_v46, %s3682_s28  ;;  %v2464_v62 = vsel %vm816_vm2, %v5786_v48, %v5799_v30 }
 0x4bb   : > { %2476 = vrot.lane.b32.xlu0 %v5780_v8, %s3691_s13 }
 0x4bc   : > { %v5805_v45 = vpop.permute.xlu1 %2532 }
 0x4bd   : > { %v5807_v40 = vpop.permute.xlu0 %2490 }
 0x4be   : > { %2011 = vrot.lane.b32.xlu1 %v5797_v46, %s3683_s29 }
 0x4bf   : > { %2516 = vrot.lane.b32.xlu0 %v5780_v8, %s3693_s15 }
 0x4c0   : > { %v5813_v41 = vpop.permute.xlu1 %2570 }
 0x4c1   : > { %v5815_v52 = vpop.permute.xlu0 %2494 }
 0x4c2   : > { %2478 = vrot.lane.b32.xlu1 %v5797_v46, %s3691_s13 }
 0x4c3   : > { %2556 = vrot.lane.b32.xlu0 %v5780_v8, %s3695_s17 }
 0x4c4   : > { %v5821_v44 = vpop.permute.xlu1 %2574 }
 0x4c5   : > { %v5825_v19 = vpop.permute.xlu0 %2530 }
 0x4c6   : > { %2518 = vrot.lane.b32.xlu1 %v5797_v46, %s3693_s15 }
 0x4c7   : > { %2145 = vrot.lane.b32.xlu0 %v5780_v8, %s3690_s12 }
 0x4c8   : > { %v5831_v47 = vpop.permute.xlu1 %2161 }
 0x4c9   : > { %v5833_v49 = vpop.permute.xlu0 %2534 }
 0x4ca   : > { %2558 = vrot.lane.b32.xlu1 %v5797_v46, %s3695_s17 }
 0x4cb   : > { %2013 = vrot.lane.b32.xlu0 %v5836_v33, %s3683_s29  ;;  %s7667_s29 = smov 16  }
 0x4cc   : > { %v5842_v5 = vpop.permute.xlu1 %2028 }
 0x4cd   : > { %7653 = vst [vmem:[#allocation19_spill] sm:$0xff] %v5842_v5  ;;  %v5844_v11 = vpop.permute.xlu0 %2572 }
 0x4ce   : > { %2147 = vrot.lane.b32.xlu1 %v5797_v46, %s3690_s12 }
 0x4cf   : > { %2068 = vrot.lane.b32.xlu0 %v7449_v13, %s3686_s8 }
 0x4d0   : > { %v5850_v9 = vpop.permute.xlu1 %2030 }
 0x4d1   : > { %7654 = vst [vmem:[#allocation14_spill] sm:$0xff] %v5850_v9  ;;  %v5852_v27 = vpop.permute.xlu0 %2159 }
 0x4d2   : > { %2076 = vrot.lane.b32.xlu1 %v5613_v61, %s3686_s8 }
 0x4d3   : > { %2078 = vrot.lane.b32.xlu0 %v5729_v17, %s3686_s8 }
 0x4d4   : > { %v5858_v24 = vpop.permute.xlu1 %2072 }
 0x4d5   : > { %7655 = vst [vmem:[#allocation15_spill] sm:$0xff] %v5858_v24  ;;  %v5860_v18 = vpop.permute.xlu0 %2163 }
 0x4d6   : > { %2091 = vrot.lane.b32.xlu1 %v5569_v6, %s3687_s9 }
 0x4d7   : > { %2099 = vrot.lane.b32.xlu0 %v5683_v55, %s3687_s9 }
 0x4d8   : > { %v5866_v60 = vpop.permute.xlu1 %2093 }
 0x4d9   : > { %7656 = vst [vmem:[#allocation21_spill] sm:$0xff] %v5866_v60  ;;  %v5868_v21 = vpop.permute.xlu0 %2047 }
 0x4da   : > { %7657 = vst [vmem:[#allocation18_spill] sm:$0xff] %v5868_v21  ;;  %2101 = vrot.lane.b32.xlu1 %v5780_v8, %s3687_s9 }
 0x4db   : > { %2116 = vrot.lane.b32.xlu0 %v5588_v42, %s7658_s27 }
 0x4dc   : > { %v5874_v14 = vpop.permute.xlu1 %1961 }
 0x4dd   : > { %v5876_v35 = vpop.permute.xlu0 %2074 }
 0x4de   : > { %7659 = vst [vmem:[#allocation16_spill] sm:$0xff] %v5876_v35  ;;  %2118 = vrot.lane.b32.xlu1 %v5605_v25, %s7658_s27 }
 0x4df   : > { %2120 = vrot.lane.b32.xlu0 %v5610_v53, %s7658_s27 }
 0x4e0   : > { %v5882_v2 = vpop.permute.xlu1 %1965 }
 0x4e1   : > { %v5884_v38 = vpop.permute.xlu0 %1963 }
 0x4e2   : > { %2137 = vrot.lane.b32.xlu1 %v5601_v22, %s3690_s12  ;;  %v1973_v31 = vsel %vm7680_vm8, %v5874_v14, %v5884_v38 }
 0x4e3   : > { %2114 = vrot.lane.b32.xlu0 %v7449_v13, %s7658_s27 }
 0x4e4   : > { %v5890_v50 = vpop.permute.xlu1 %2003 }
 0x4e5   : > { %7660 = vst [vmem:[#allocation17_spill] sm:$0xff] %v5890_v50  ;;  %v5892_v7 = vpop.permute.xlu0 %2005 }
 0x4e6   : > { %7661 = vst [vmem:[#allocation29_spill] sm:$0xff] %v5892_v7  ;;  %2122 = vrot.lane.b32.xlu1 %v5613_v61, %s7658_s27 }
 0x4e7   : > { %2124 = vrot.lane.b32.xlu0 %v5729_v17, %s7658_s27 }
 0x4e8   : > { %v5898_v54 = vpop.permute.xlu1 %2007 }
 0x4e9   : > { %7662 = vst [vmem:[#allocation27_spill] sm:$0xff] %v5898_v54  ;;  %v5900_v59 = vpop.permute.xlu0 %2472 }
 0x4ea   : > { %2157 = vrot.lane.b32.xlu1 %v5588_v42, %s3697_s19 }
 0x4eb   : > { %2177 = vrot.lane.b32.xlu0 %v5601_v22, %s3698_s20 }
 0x4ec   : > { %v5906_v34 = vpop.permute.xlu1 %2470 }
 0x4ed   : > { %v5908_v28 = vpop.permute.xlu0 %2512 }
 0x4ee   : > { %2179 = vrot.lane.b32.xlu1 %v5676_v4, %s3698_s20 }
 0x4ef   : > { %2181 = vrot.lane.b32.xlu0 %v5686_v56, %s3698_s20 }
 0x4f0   : > { %v5914_v58 = vpop.permute.xlu1 %2474 }
 0x4f1   : > { %v5916_v29 = vpop.permute.xlu0 %2552  ;;  %v2485_v3 = vsel %vm838_vm3, %v5900_v59, %v5914_v58 }
 0x4f2   : > { %2183 = vrot.lane.b32.xlu1 %v5683_v55, %s3698_s20 }
 0x4f3   : > { %2185 = vrot.lane.b32.xlu0 %v5780_v8, %s3698_s20 }
 0x4f4   : > { %v5922_v32 = vpop.permute.xlu1 %2510 }
 0x4f5   : > { %v5924_v0 = vpop.permute.xlu0 %2139 }
 0x4f6   : > { %2197 = vrot.lane.b32.xlu1 %v5588_v42, %s3699_s23 }
 0x4f7   : > { %2199 = vrot.lane.b32.xlu0 %v5605_v25, %s3699_s23 }
 0x4f8   : > { %v5930_v13 = vpop.permute.xlu1 %2514 }
 0x4f9   : > { %v5932_v35 = vpop.permute.xlu0 %2143 }
 0x4fa   : > { %2201 = vrot.lane.b32.xlu1 %v5610_v53, %s3699_s23 }
 0x4fb   : > { %2217 = vrot.lane.b32.xlu0 %v5601_v22, %s3700_s24 }
 0x4fc   : > { %v5938_v43 = vpop.permute.xlu1 %2550 }
 0x4fd   : > { %v5940_v24 = vpop.permute.xlu0 %2051 }
 0x4fe   : > { %7663 = vst [vmem:[#allocation20_spill] sm:$0xff] %v5940_v24  ;;  %2219 = vrot.lane.b32.xlu1 %v5676_v4, %s3700_s24 }
 0x4ff   : > { %2221 = vrot.lane.b32.xlu0 %v5686_v56, %s3700_s24 }
 0x500   : > { %v5946_v60 = vpop.permute.xlu1 %2554 }
 0x501   : > { %v5948_v9 = vpop.permute.xlu0 %2053 }
 0x502   : > { %7664 = vst [vmem:[#allocation24_spill] sm:$0xff] %v5948_v9  ;;  %2203 = vrot.lane.b32.xlu1 %v5613_v61, %s3699_s23 }
 0x503   : > { %2205 = vrot.lane.b32.xlu0 %v5729_v17, %s3699_s23 }
 0x504   : > { %v5954_v23 = vpop.permute.xlu1 %2141 }
 0x505   : > { %v5956_v5 = vpop.permute.xlu0 %2095 }
 0x506   : > { %7665 = vst [vmem:[#allocation22_spill] sm:$0xff] %v5956_v5  ;;  %2223 = vrot.lane.b32.xlu1 %v5683_v55, %s3700_s24 }
 0x507   : > { %2225 = vrot.lane.b32.xlu0 %v5780_v8, %s3700_s24 }
 0x508   : > { %v5962_v39 = vpop.permute.xlu1 %2049 }
 0x509   : > { %7666 = vst [vmem:[#allocation31_spill] sm:$0xff] %v5962_v39  ;;  %v5964_v24 = vpop.permute.xlu0 %2455 }
 0x50a   : > { %2237 = vrot.lane.b32.xlu1 %v5588_v42, %s7667_s29 }
 0x50b   : > { %2239 = vrot.lane.b32.xlu0 %v5605_v25, %s7667_s29 }
 0x50c   : > { %v5970_v9 = vpop.permute.xlu1 %2097 }
 0x50d   : > { %7668 = vst [vmem:[#allocation28_spill] sm:$0xff] %v5970_v9  ;;  %v5972_v37 = vpop.permute.xlu0 %2496 }
 0x50e   : > { %2241 = vrot.lane.b32.xlu1 %v5610_v53, %s7667_s29 }
 0x50f   : > { %2257 = vrot.lane.b32.xlu0 %v5601_v22, %s7669_s25 }
 0x510   : > { %v5978_v5 = vpop.permute.xlu1 %1987 }
 0x511   : > { %7670 = vst [vmem:[#allocation26_spill] sm:$0xff] %v5978_v5  ;;  %v5980_v63 = vpop.permute.xlu0 %2536 }
 0x512   : > { %2259 = vrot.lane.b32.xlu1 %v5676_v4, %s7669_s25 }
 0x513   : > { %2261 = vrot.lane.b32.xlu0 %v5686_v56, %s7669_s25 }
 0x514   : > { %v5986_v21 = vpop.permute.xlu1 %2165 }
 0x515   : > { %v5988_v9 = vpop.permute.xlu0 %2576 }
 0x516   : > { %2243 = vrot.lane.b32.xlu1 %v5613_v61, %s7667_s29 }
 0x517   : > { %2245 = vrot.lane.b32.xlu0 %v5729_v17, %s7667_s29 }
 0x518   : > { %v5994_v22 = vpop.permute.xlu1 %2457 }
 0x519   : > { %7671 = vst [vmem:[#allocation23_spill] sm:$0xff] %v5994_v22  ;;  %v5996_v39 = vpop.permute.xlu0 %2032 }
 0x51a   : > { %7672 = vst [vmem:[#allocation39_spill] sm:$0xff] %v5996_v39  ;;  %2263 = vrot.lane.b32.xlu1 %v5683_v55, %s7669_s25  ;;  %v7677_v39 = vmov 0.0|0.0   ;;  %v1972_v55 = vsel %vm7678_vm11, %v5753_v1, %v5874_v14  ;;  %vm7681_vm11 = vmmov %vm7680_vm8  ;;  %v6043_v14 = vsel %vm629_vm1, %v5605_v25, %v1973_v31 }
 0x51b   : > { %2265 = vrot.lane.b32.xlu0 %v5780_v8, %s7669_s25  ;;  %v6030_v54 = vsel %vm629_vm1, %v5588_v42, %v1972_v55  ;;  %v1974_v15 = vsel %vm7681_vm11, %v5884_v38, %v5882_v2  ;;  %vm7688_vm11 = vmmov %vm7680_vm8 }
 0x51c   : > { %v6002_v4 = vpop.permute.xlu1 %2498  ;;  %v6049_v42 = vsel %vm629_vm1, %v5610_v53, %v1974_v15  ;;  %v2484_v53 = vsel %vm838_vm3, %v5906_v34, %v5900_v59 }
 0x51d   : > { %7673 = vst [vmem:[#allocation37_spill] sm:$0xff] %v6002_v4  ;;  %v6004_v56 = vpop.permute.xlu0 %1989 }
 0x51e   : > { %7674 = vst [vmem:[#allocation30_spill] sm:$0xff] %v6004_v56  ;;  %2445 = vrot.lane.b32.xlu1 %v5836_v33, %s3682_s28 }
 0x51f   : > { %2459 = vrot.lane.b32.xlu0 %v5823_v26, %s3689_s11 }
 0x520   : > { %v6010_v5 = vpop.permute.xlu1 %2538 }
 0x521   : > { %7675 = vst [vmem:[#allocation34_spill] sm:$0xff] %v6010_v5  ;;  %v6012_v20 = vpop.permute.xlu0 %2167 }
 0x522   : > { %7676 = vst [vmem:[#allocation32_spill] sm:$0xff] %v6012_v20  ;;  %2461 = vrot.lane.b32.xlu1 %v7677_v39, %s3689_s11  ;;  %s3631_s11 = smul.u32 56, %s7871_s22 }
 0x523   : > { %2480 = vrot.lane.b32.xlu0 %v5836_v33, %s3691_s13 }
 0x524   : > { %v6021_v8 = vpop.permute.xlu1 %2578 }
 0x525   : > { %7679 = vst [vmem:[#allocation25_spill] sm:$0xff] %v6021_v8  ;;  %v1968_v56 = vpop.permute.xlu0 %1967 }
 0x526   : > { %2482 = vrot.lane.b32.xlu1 %v5569_v6, %s3691_s13 }
 0x527   : > { %2715 = vrot.lane.b32.xlu0 %v6030_v54, %s3703_s26 }
 0x528   : > { %v6037_v12 = vpop.permute.xlu1 %2055 }
 0x529   : > { %7682 = vst [vmem:[#allocation41_spill] sm:$0xff] %v6037_v12  ;;  %v6039_v36 = vpop.permute.xlu0 %2009  ;;  %v2463_v12 = vsel %vm816_vm2, %v5788_v10, %v5786_v48 }
 0x52a   : > { %7683 = vst [vmem:[#allocation38_spill] sm:$0xff] %v6039_v36  ;;  %2717 = vrot.lane.b32.xlu1 %v6043_v14, %s3703_s26  ;;  %v2606_v7 = vsel %vm629_vm1, %v2463_v12, %v2484_v53  ;;  %v1975_v12 = vsel %vm7680_vm8, %v5882_v2, %v1968_v56  ;;  %vm7693_vm8 = vcmask 236544  }
 0x52b   : > { %2719 = vrot.lane.b32.xlu0 %v6049_v42, %s3703_s26 }
 0x52c   : > { %v6053_v38 = vpop.permute.xlu1 %1969 }
 0x52d   : > { %7684 = vst [vmem:[#allocation36_spill] sm:$0xff] %v6053_v38  ;;  %v2477_v55 = vpop.permute.xlu0 %2476  ;;  %v1976_v48 = vsel %vm7688_vm11, %v1968_v56, %v6053_v38  ;;  %vm7694_vm11 = vmmov %vm7693_vm8 }
 0x52e   : > { %2500 = vrot.lane.b32.xlu1 %v5823_v26, %s3692_s14  ;;  %v2486_v46 = vsel %vm838_vm3, %v5914_v58, %v2477_v55 }
 0x52f   : > { %2502 = vrot.lane.b32.xlu0 %v7677_v39, %s3692_s14  ;;  %s251_s14 = scalar_lea.vmem %s7375_s6, %s3631_s11 }
 0x530   : > { %v6059_v25 = vpop.permute.xlu1 %2011 }
 0x531   : > { %7685 = vst [vmem:[#allocation33_spill] sm:$0xff] %v6059_v25  ;;  %v2517_v31 = vpop.permute.xlu0 %2516  ;;  %v2603_v25 = vsel %vm629_vm1, %v5788_v10, %v5906_v34  ;;  %v2465_v10 = vsel %vm816_vm2, %v5799_v30, %v5964_v24  ;;  %v2609_v34 = vsel %vm629_vm1, %v2464_v62, %v2485_v3  ;;  %v6110_v30 = vsel %vm629_vm1, %v5613_v61, %v1975_v12 }
 0x532   : > { %2520 = vrot.lane.b32.xlu1 %v5836_v33, %s3693_s15  ;;  %v6118_v62 = vsel %vm629_vm1, %v5729_v17, %v1976_v48  ;;  %v2525_v12 = vsel %vm880_vm5, %v5908_v28, %v5930_v13 }
 0x533   : > { %2522 = vrot.lane.b32.xlu0 %v5569_v6, %s3693_s15  ;;  %7691 = vst [vmem:[#allocation35_spill] sm:$0xff] %v6118_v62 }
 0x534   : > { %v6068_v15 = vpop.permute.xlu1 %2478 }
 0x535   : > { %7686 = vst [vmem:[#allocation40_spill] sm:$0xff] %v6068_v15  ;;  %v6073_v36 = vpop.permute.xlu0 %2556  ;;  %v2487_v3 = vsel %vm838_vm3, %v2477_v55, %v6068_v15 }
 0x536   : > { %2729 = vrot.lane.b32.xlu1 %v2603_v25, %s3703_s26 }
 0x537   : > { %2731 = vrot.lane.b32.xlu0 %v2606_v7, %s3703_s26  ;;  %v2612_v7 = vsel %vm629_vm1, %v2465_v10, %v2486_v46  ;;  %v2466_v46 = vsel %vm816_vm2, %v5964_v24, %v5994_v22  ;;  %v2524_v10 = vsel %vm880_vm5, %v5922_v32, %v5908_v28 }
 0x538   : > { %v6089_v50 = vpop.permute.xlu1 %2518  ;;  %v2615_v56 = vsel %vm629_vm1, %v2466_v46, %v2487_v3  ;;  %v2505_v3 = vsel %vm859_vm4, %v5794_v51, %v5815_v52 }
 0x539   : > { %7687 = vst [vmem:[#allocation45_spill] sm:$0xff] %v6089_v50  ;;  %v6094_v59 = vpop.permute.xlu0 %2145  ;;  %v2630_v28 = vsel %vm629_vm1, %v2505_v3, %v2525_v12 }
 0x53a   : > { %2733 = vrot.lane.b32.xlu1 %v2609_v34, %s3703_s26  ;;  %v2624_v34 = vsel %vm629_vm1, %v5807_v40, %v5922_v32 }
 0x53b   : > { %2735 = vrot.lane.b32.xlu0 %v2612_v7, %s3703_s26  ;;  %v2504_v7 = vsel %vm859_vm4, %v5807_v40, %v5794_v51  ;;  %v2527_v40 = vsel %vm880_vm5, %v2517_v31, %v6089_v50  ;;  %v2506_v51 = vsel %vm859_vm4, %v5815_v52, %v5972_v37  ;;  %v7716_v50 = vld [vmem:[#allocation50_spill] sm:$0xff] }
 0x53c   : > { %v6104_v58 = vpop.permute.xlu1 %2558  ;;  %v2627_v32 = vsel %vm629_vm1, %v2504_v7, %v2524_v10  ;;  %v2507_v10 = vsel %vm859_vm4, %v5972_v37, %v6002_v4 }
 0x53d   : > { %7689 = vst [vmem:[#allocation42_spill] sm:$0xff] %v6104_v58  ;;  %v6106_v25 = vpop.permute.xlu0 %2013 }
 0x53e   : > { %7690 = vst [vmem:[#allocation57_spill] sm:$0xff] %v6106_v25  ;;  %2721 = vrot.lane.b32.xlu1 %v6110_v30, %s3703_s26 }
 0x53f   : > { %2723 = vrot.lane.b32.xlu0 %v6118_v62, %s3703_s26 }
 0x540   : > { %v6125_v2 = vpop.permute.xlu1 %2147 }
 0x541   : > { %7692 = vst [vmem:[#allocation47_spill] sm:$0xff] %v6125_v2  ;;  %v6127_v61 = vpop.permute.xlu0 %2068 }
 0x542   : > { %2737 = vrot.lane.b32.xlu1 %v2615_v56, %s3703_s26  ;;  %v2526_v56 = vsel %vm880_vm5, %v5930_v13, %v2517_v31  ;;  %v2636_v31 = vsel %vm629_vm1, %v2507_v10, %v2527_v40  ;;  %v2565_v10 = vsel %vm922_vm6, %v5916_v29, %v5946_v60 }
 0x543   : > { %2540 = vrot.lane.b32.xlu0 %v5823_v26, %s3694_s16  ;;  %v2633_v7 = vsel %vm629_vm1, %v2506_v51, %v2526_v56  ;;  %v2645_v51 = vsel %vm629_vm1, %v5825_v19, %v5938_v43 }
 0x544   : > { %v6133_v17 = vpop.permute.xlu1 %2076 }
 0x545   : > { %v6135_v55 = vpop.permute.xlu0 %2078 }
 0x546   : > { %2542 = vrot.lane.b32.xlu1 %v7677_v39, %s3694_s16 }
 0x547   : > { %2560 = vrot.lane.b32.xlu0 %v5836_v33, %s3695_s17 }
 0x548   : > { %v6141_v24 = vpop.permute.xlu1 %2091 }
 0x549   : > { %v6143_v53 = vpop.permute.xlu0 %2099 }
 0x54a   : > { %2562 = vrot.lane.b32.xlu1 %v5569_v6, %s3695_s17 }
 0x54b   : > { %2743 = vrot.lane.b32.xlu0 %v2624_v34, %s3703_s26 }
 0x54c   : > { %v6160_v48 = vpop.permute.xlu1 %2101 }
 0x54d   : > { %v6165_v46 = vpop.permute.xlu0 %2116 }
 0x54e   : > { %2745 = vrot.lane.b32.xlu1 %v2627_v32, %s3703_s26  ;;  %v2564_v32 = vsel %vm922_vm6, %v5938_v43, %v5916_v29  ;;  %v2546_v43 = vsel %vm901_vm7, %v5833_v49, %v5980_v63 }
 0x54f   : > { %2747 = vrot.lane.b32.xlu0 %v2630_v28, %s3703_s26  ;;  %v2544_v28 = vsel %vm901_vm7, %v5825_v19, %v5805_v45 }
 0x550   : > { %v6178_v34 = vpop.permute.xlu1 %2118 }
 0x551   : > { %v6183_v13 = vpop.permute.xlu0 %2120 }
 0x552   : > { %2749 = vrot.lane.b32.xlu1 %v2633_v7, %s3703_s26  ;;  %v2566_v7 = vsel %vm922_vm6, %v5946_v60, %v6073_v36  ;;  %v2567_v60 = vsel %vm922_vm6, %v6073_v36, %v6104_v58  ;;  %v6255_v36 = vsel %vm496_vm9, %v5924_v0, %v5954_v23 }
 0x553   : > { %2751 = vrot.lane.b32.xlu0 %v2636_v31, %s3703_s26  ;;  %v2545_v31 = vsel %vm901_vm7, %v5805_v45, %v5833_v49  ;;  %v2547_v45 = vsel %vm901_vm7, %v5980_v63, %v6010_v5  ;;  %v6264_v63 = vsel %vm496_vm9, %v5954_v23, %v5932_v35  ;;  %v7713_v5 = vld [vmem:[#allocation48_spill] sm:$0xff] }
 0x554   : > { %v6189_v12 = vpop.permute.xlu1 %2137  ;;  %v2651_v29 = vsel %vm629_vm1, %v2545_v31, %v2565_v10  ;;  %v2666_v10 = vsel %vm629_vm1, %v5813_v41, %v5924_v0  ;;  %v2585_v31 = vsel %vm7694_vm11, %v5844_v11, %v5821_v44  ;;  %vm7696_vm11 = vmmov %vm7693_vm8 }
 0x555   : > { %v6191_v3 = vpop.permute.xlu0 %2114  ;;  %v2670_v23 = vsel %vm629_vm1, %v2585_v31, %v6264_v63 }
 0x556   : > { %2149 = vrot.lane.b32.xlu1 %v5836_v33, %s3690_s12 }
 0x557   : > { %2580 = vrot.lane.b32.xlu0 %v5823_v26, %s3696_s18 }
 0x558   : > { %v6197_v37 = vpop.permute.xlu1 %2122 }
 0x559   : > { %v6199_v52 = vpop.permute.xlu0 %2124 }
 0x55a   : > { %2582 = vrot.lane.b32.xlu1 %v7677_v39, %s3696_s18 }
 0x55b   : > { %2590 = vrot.lane.b32.xlu0 %v5569_v6, %s3690_s12  ;;  %v2648_v6 = vsel %vm629_vm1, %v2544_v28, %v2564_v32  ;;  %v2654_v32 = vsel %vm629_vm1, %v2546_v43, %v2566_v7 }
 0x55c   : > { %v6208_v56 = vpop.permute.xlu1 %2157 }
 0x55d   : > { %v6213_v40 = vpop.permute.xlu0 %2177 }
 0x55e   : > { %2757 = vrot.lane.b32.xlu1 %v2645_v51, %s3703_s26  ;;  %v2657_v51 = vsel %vm629_vm1, %v2547_v45, %v2567_v60  ;;  %v2586_v45 = vsel %vm7693_vm8, %v5821_v44, %v5988_v9 }
 0x55f   : > { %2759 = vrot.lane.b32.xlu0 %v2648_v6, %s3703_s26  ;;  %v2584_v6 = vsel %vm7693_vm8, %v5813_v41, %v5844_v11  ;;  %v6290_v11 = vsel %vm496_vm9, %v5932_v35, %v6094_v59  ;;  %v2587_v35 = vsel %vm7696_vm11, %v5988_v9, %v6021_v8  ;;  %vm7697_vm8 = vcmask 220160  }
 0x560   : > { %v6230_v25 = vpop.permute.xlu1 %2179  ;;  %v6326_v9 = vsel %vm7697_vm8, %v5852_v27, %v5831_v47  ;;  %vm7698_vm11 = vmmov %vm7697_vm8 }
 0x561   : > { %v6235_v19 = vpop.permute.xlu0 %2181  ;;  %vm7699_vm12 = vmmov %vm7697_vm8 }
 0x562   : > { %2761 = vrot.lane.b32.xlu1 %v2651_v29, %s3703_s26  ;;  %v2668_v29 = vsel %vm629_vm1, %v2584_v6, %v6255_v36  ;;  %v2672_v6 = vsel %vm629_vm1, %v2586_v45, %v6290_v11  ;;  %v6344_v45 = vsel %vm7699_vm12, %v5860_v18, %v5986_v21  ;;  %vm7708_vm12 = vcmask 965632  }
 0x563   : > { %2763 = vrot.lane.b32.xlu0 %v2654_v32, %s3703_s26  ;;  %v6297_v32 = vsel %vm496_vm9, %v6094_v59, %v6125_v2  ;;  %v7712_v2 = vld [vmem:[#allocation51_spill] sm:$0xff] }
 0x564   : > { %v6247_v28 = vpop.permute.xlu1 %2183  ;;  %7695 = vst [vmem:[#allocation43_spill] sm:$0xff] %v6297_v32 }
 0x565   : > { %v6249_v49 = vpop.permute.xlu0 %2185 }
 0x566   : > { %2765 = vrot.lane.b32.xlu1 %v2657_v51, %s3703_s26 }
 0x567   : > { %2771 = vrot.lane.b32.xlu0 %v2666_v10, %s3703_s26 }
 0x568   : > { %v6270_v7 = vpop.permute.xlu1 %2197 }
 0x569   : > { %v6275_v43 = vpop.permute.xlu0 %2199 }
 0x56a   : > { %2773 = vrot.lane.b32.xlu1 %v2668_v29, %s3703_s26 }
 0x56b   : > { %2775 = vrot.lane.b32.xlu0 %v2670_v23, %s3703_s26  ;;  %v6337_v23 = vsel %vm7698_vm11, %v5831_v47, %v5860_v18  ;;  %v6355_v47 = vsel %vm7697_vm8, %v5986_v21, %v6012_v20  ;;  %vm7701_vm11 = vcmask 1039360   ;;  %v7710_v20 = vld [vmem:[#allocation29_spill] sm:$0xff]  ;;  %vm7711_vm8 = vmmov %vm7708_vm12 }
 0x56c   : > { %v6283_v60 = vpop.permute.xlu1 %2201  ;;  %7700 = vst [vmem:[#allocation56_spill] sm:$0xff] %v6355_v47  ;;  %v1971_v18 = vsel %vm7701_vm11, %v5619_v16, %v5753_v1  ;;  %vm7714_vm11 = vcmask 1031168  }
 0x56d   : > { %v6285_v41 = vpop.permute.xlu0 %2217  ;;  %v2279_v21 = vsel %vm629_vm1, 0.0|0.0, %v1971_v18  ;;  %v7706_v18 = vld [vmem:[#allocation17_spill] sm:$0xff]  ;;  %v1992_v58 = vsel %vm7714_vm11, %v7713_v5, %v7712_v2  ;;  %vm7717_vm10 = vmmov %vm7714_vm11 }
 0x56e   : > { %2169 = vrot.lane.b32.xlu1 %v5823_v26, %s3697_s19  ;;  %v2017_v8 = vsel %vm7711_vm8, %v7706_v18, %v7710_v20  ;;  %v1993_v22 = vsel %vm7717_vm10, %v7712_v2, %v7716_v50  ;;  %v7722_v2 = vld [vmem:[#allocation9_spill] sm:$0xff]  ;;  %vm7725_vm11 = vmmov %vm7717_vm10 }
 0x56f   : > { %2593 = vrot.lane.b32.xlu0 %v7677_v39, %s3697_s19  ;;  %v2674_v39 = vsel %vm629_vm1, %v2587_v35, %v6297_v32 }
 0x570   : > { %v6304_v51 = vpop.permute.xlu1 %2219 }
 0x571   : > { %v6309_v10 = vpop.permute.xlu0 %2221 }
 0x572   : > { %2777 = vrot.lane.b32.xlu1 %v2672_v6, %s3703_s26 }
 0x573   : > { %2779 = vrot.lane.b32.xlu0 %v2674_v39, %s3703_s26 }
 0x574   : > { %v6317_v59 = vpop.permute.xlu1 %2203 }
 0x575   : > { %v6319_v44 = vpop.permute.xlu0 %2205 }
 0x576   : > { %2785 = vrot.lane.b32.xlu1 %v5852_v27, %s3703_s26 }
 0x577   : > { %2787 = vrot.lane.b32.xlu0 %v6326_v9, %s3703_s26 }
 0x578   : > { %v6330_v31 = vpop.permute.xlu1 %2223 }
 0x579   : > { %v6332_v29 = vpop.permute.xlu0 %2225 }
 0x57a   : > { %2789 = vrot.lane.b32.xlu1 %v6337_v23, %s3703_s26 }
 0x57b   : > { %2791 = vrot.lane.b32.xlu0 %v6344_v45, %s3703_s26 }
 0x57c   : > { %v6348_v35 = vpop.permute.xlu1 %2237 }
 0x57d   : > { %v6350_v6 = vpop.permute.xlu0 %2239 }
 0x57e   : > { %2793 = vrot.lane.b32.xlu1 %v6355_v47, %s3703_s26 }
 0x57f   : > { %2895 = vrot.lane.b32.xlu0 %v6030_v54, %s3693_s15 }
 0x580   : > { %v6364_v39 = vpop.permute.xlu1 %2241 }
 0x581   : > { %v6366_v32 = vpop.permute.xlu0 %2257 }
 0x582   : > { %2897 = vrot.lane.b32.xlu1 %v6043_v14, %s3693_s15 }
 0x583   : > { %2893 = vrot.lane.b32.xlu0 %v2279_v21, %s3693_s15  ;;  %v7707_v21 = vld [vmem:[#allocation53_spill] sm:$0xff] }
 0x584   : > { %v6372_v62 = vpop.permute.xlu1 %2259 }
 0x585   : > { %v6374_v47 = vpop.permute.xlu0 %2261 }
 0x586   : > { %2899 = vrot.lane.b32.xlu1 %v6049_v42, %s3693_s15  ;;  %v2016_v42 = vsel %vm7708_vm12, %v7707_v21, %v7706_v18  ;;  %vm7720_vm12 = vmmov %vm7711_vm8 }
 0x587   : > { %2901 = vrot.lane.b32.xlu0 %v6110_v30, %s3693_s15  ;;  %v7709_v30 = vld [vmem:[#allocation44_spill] sm:$0xff] }
 0x588   : > { %v6380_v16 = vpop.permute.xlu1 %2243 }
 0x589   : > { %7702 = vst [vmem:[#allocation60_spill] sm:$0xff] %v6380_v16  ;;  %v6382_v1 = vpop.permute.xlu0 %2245  ;;  %v2306_v16 = vsel %vm629_vm1, %v1993_v22, %v2017_v8  ;;  %v7727_v8 = vld [vmem:[#allocation38_spill] sm:$0xff] }
 0x58a   : > { %7703 = vst [vmem:[#allocation46_spill] sm:$0xff] %v6382_v1  ;;  %2034 = vrot.lane.b32.xlu1 %v5751_v57, %s3684_s30  ;;  %v2303_v1 = vsel %vm629_vm1, %v1992_v58, %v2016_v42  ;;  %v7724_v58 = vld [vmem:[#allocation52_spill] sm:$0xff] }
 0x58b   : > { %2036 = vrot.lane.b32.xlu0 %v5823_v26, %s3684_s30 }
 0x58c   : > { %v6388_v54 = vpop.permute.xlu1 %2263 }
 0x58d   : > { %7704 = vst [vmem:[#allocation58_spill] sm:$0xff] %v6388_v54  ;;  %v6390_v14 = vpop.permute.xlu0 %2265  ;;  %v7721_v54 = vld [vmem:[#allocation27_spill] sm:$0xff] }
 0x58e   : > { %7705 = vst [vmem:[#allocation59_spill] sm:$0xff] %v6390_v14  ;;  %2057 = vrot.lane.b32.xlu1 %v7709_v30, %s3685_s7  ;;  %v7719_v14 = vld [vmem:[#allocation55_spill] sm:$0xff]  ;;  %v2018_v38 = vsel %vm7711_vm8, %v7710_v20, %v7721_v54 }
 0x58f   : > { %2059 = vrot.lane.b32.xlu0 %v5836_v33, %s3685_s7  ;;  %v2015_v18 = vsel %vm7720_vm12, %v7719_v14, %v7707_v21  ;;  %v1994_v14 = vsel %vm7725_vm11, %v7716_v50, %v7724_v58  ;;  %vm7728_vm12 = vmmov %vm7711_vm8 }
 0x590   : > { %v6405_v4 = vpop.permute.xlu1 %2445  ;;  %v2019_v20 = vsel %vm7728_vm12, %v7721_v54, %v7727_v8  ;;  %vm7730_vm8 = vmmov %vm7717_vm10 }
 0x591   : > { %7715 = vst [vmem:[#allocation17_spill] sm:$0xff] %v6405_v4  ;;  %v6410_v15 = vpop.permute.xlu0 %2459 }
 0x592   : > { %7718 = vst [vmem:[#allocation53_spill] sm:$0xff] %v6410_v15  ;;  %2909 = vrot.lane.b32.xlu1 %v2303_v1, %s3693_s15  ;;  %v1991_v15 = vsel %vm7717_vm10, %v7722_v2, %v7713_v5  ;;  %v7729_v5 = vld [vmem:[#allocation26_spill] sm:$0xff]  ;;  %vm7736_vm10 = vcmask 949248  }
 0x593   : > { %2911 = vrot.lane.b32.xlu0 %v2306_v16, %s3693_s15  ;;  %v2300_v22 = vsel %vm629_vm1, %v1991_v15, %v2015_v18  ;;  %v2309_v16 = vsel %vm629_vm1, %v1994_v14, %v2018_v38  ;;  %v1995_v1 = vsel %vm7730_vm8, %v7724_v58, %v7729_v5  ;;  %v7734_v18 = vld [vmem:[#allocation31_spill] sm:$0xff]  ;;  %v7735_v2 = vld [vmem:[#allocation18_spill] sm:$0xff]  ;;  %vm7742_vm11 = vmmov %vm7736_vm10 }
 0x594   : > { %v6425_v4 = vpop.permute.xlu1 %2461  ;;  %v2312_v15 = vsel %vm629_vm1, %v1995_v1, %v2019_v20  ;;  %v2062_v58 = vsel %vm7736_vm10, %v7735_v2, %v7734_v18  ;;  %v7739_v20 = vld [vmem:[#allocation11_spill] sm:$0xff]  ;;  %vm7744_vm12 = vmmov %vm7736_vm10 }
 0x595   : > { %7723 = vst [vmem:[#allocation44_spill] sm:$0xff] %v6425_v4  ;;  %v6430_v21 = vpop.permute.xlu0 %2480  ;;  %v7743_v4 = vld [vmem:[#allocation12_spill] sm:$0xff]  ;;  %vm7750_vm8 = vmmov %vm7736_vm10 }
 0x596   : > { %7726 = vst [vmem:[#allocation29_spill] sm:$0xff] %v6430_v21  ;;  %2907 = vrot.lane.b32.xlu1 %v2300_v22, %s3693_s15  ;;  %v7738_v22 = vld [vmem:[#allocation54_spill] sm:$0xff]  ;;  %v7747_v21 = vld [vmem:[#allocation13_spill] sm:$0xff]  ;;  %vm7752_vm10 = vmmov %vm7750_vm8 }
 0x597   : > { %2913 = vrot.lane.b32.xlu0 %v2309_v16, %s3693_s15  ;;  %v2039_v16 = vsel %vm378_vm14, %v7739_v20, %v7738_v22 }
 0x598   : > { %v6442_v42 = vpop.permute.xlu1 %2482  ;;  %v2324_v8 = vsel %vm629_vm1, %v2039_v16, %v2062_v58  ;;  %v7749_v16 = vld [vmem:[#allocation24_spill] sm:$0xff] }
 0x599   : > { %7731 = vst [vmem:[#allocation51_spill] sm:$0xff] %v6442_v42  ;;  %v6444_v50 = vpop.permute.xlu0 %2715  ;;  %v2061_v42 = vsel %vm7744_vm12, %v7743_v4, %v7735_v2  ;;  %v7751_v2 = vld [vmem:[#allocation41_spill] sm:$0xff] }
 0x59a   : > { %7732 = vst [vmem:[#allocation48_spill] sm:$0xff] %v6444_v50  ;;  %2915 = vrot.lane.b32.xlu1 %v2312_v15, %s3693_s15  ;;  %v7741_v15 = vld [vmem:[#allocation20_spill] sm:$0xff] }
 0x59b   : > { %2080 = vrot.lane.b32.xlu0 %v5751_v57, %s3686_s8  ;;  %v2063_v5 = vsel %vm7742_vm11, %v7734_v18, %v7741_v15  ;;  %v2038_v18 = vsel %vm378_vm14, %v7747_v21, %v7739_v20  ;;  %v2064_v4 = vsel %vm7750_vm8, %v7741_v15, %v7749_v16  ;;  %vm7761_vm11 = vcmask 875520  }
 0x59c   : > { %v6450_v54 = vpop.permute.xlu1 %2717  ;;  %vm7763_vm12 = vmmov %vm7761_vm11  ;;  %vm7766_vm8 = vcmask 883712  }
 0x59d   : > { %v6452_v38 = vpop.permute.xlu0 %2719 }
 0x59e   : > { %7733 = vst [vmem:[#allocation50_spill] sm:$0xff] %v6452_v38  ;;  %2082 = vrot.lane.b32.xlu1 %v5823_v26, %s3686_s8 }
 0x59f   : > { %2103 = vrot.lane.b32.xlu0 %v7709_v30, %s3687_s9 }
 0x5a0   : > { %v6461_v14 = vpop.permute.xlu1 %2500 }
 0x5a1   : > { %7737 = vst [vmem:[#allocation55_spill] sm:$0xff] %v6461_v14  ;;  %v6466_v1 = vpop.permute.xlu0 %2502  ;;  %v7745_v14 = vld [vmem:[#allocation19_spill] sm:$0xff] }
 0x5a2   : > { %7740 = vst [vmem:[#allocation27_spill] sm:$0xff] %v6466_v1  ;;  %2105 = vrot.lane.b32.xlu1 %v5836_v33, %s3687_s9  ;;  %v2040_v38 = vsel %vm378_vm14, %v7738_v22, %v7745_v14  ;;  %v2065_v22 = vsel %vm7752_vm10, %v7749_v16, %v7751_v2  ;;  %vm7768_vm10 = vmmov %vm7766_vm8  ;;  %s3708_s9 = smov 56  }
 0x5a3   : > { %2923 = vrot.lane.b32.xlu0 %v2324_v8, %s3693_s15  ;;  %v2327_v58 = vsel %vm629_vm1, %v2040_v38, %v2063_v5  ;;  %v2321_v8 = vsel %vm629_vm1, %v2038_v18, %v2061_v42  ;;  %v7755_v5 = vld [vmem:[#allocation39_spill] sm:$0xff] }
 0x5a4   : > { %v6481_v1 = vpop.permute.xlu1 %2520 }
 0x5a5   : > { %7746 = vst [vmem:[#allocation9_spill] sm:$0xff] %v6481_v1  ;;  %v6486_v50 = vpop.permute.xlu0 %2522  ;;  %v7753_v1 = vld [vmem:[#allocation14_spill] sm:$0xff] }
 0x5a6   : > { %7748 = vst [vmem:[#allocation52_spill] sm:$0xff] %v6486_v50  ;;  %2925 = vrot.lane.b32.xlu1 %v2327_v58, %s3693_s15  ;;  %v2041_v21 = vsel %vm378_vm14, %v7745_v14, %v7753_v1  ;;  %v2042_v38 = vsel %vm378_vm14, %v7753_v1, %v7755_v5  ;;  %v7759_v14 = vld [vmem:[#allocation22_spill] sm:$0xff]  ;;  %v7762_v1 = vld [vmem:[#allocation28_spill] sm:$0xff] }
 0x5a7   : > { %2921 = vrot.lane.b32.xlu0 %v2321_v8, %s3693_s15  ;;  %v2330_v42 = vsel %vm629_vm1, %v2041_v21, %v2064_v4  ;;  %v2333_v18 = vsel %vm629_vm1, %v2042_v38, %v2065_v22  ;;  %v7760_v8 = vld [vmem:[#allocation21_spill] sm:$0xff]  ;;  %v2109_v4 = vsel %vm7763_vm12, %v7759_v14, %v7762_v1  ;;  %v7764_v22 = vld [vmem:[#allocation15_spill] sm:$0xff]  ;;  %vm7769_vm12 = vmmov %vm7761_vm11 }
 0x5a8   : > { %v6501_v20 = vpop.permute.xlu1 %2729  ;;  %v2108_v2 = vsel %vm7761_vm11, %v7760_v8, %v7759_v14  ;;  %v7765_v21 = vld [vmem:[#allocation49_spill] sm:$0xff]  ;;  %v2107_v14 = vsel %vm7761_vm11, %v6141_v24, %v7760_v8 }
 0x5a9   : > { %7754 = vst [vmem:[#allocation31_spill] sm:$0xff] %v6501_v20  ;;  %v6506_v15 = vpop.permute.xlu0 %2731  ;;  %v2085_v38 = vsel %vm7766_vm8, %v7765_v21, %v7764_v22  ;;  %v2110_v20 = vsel %vm7769_vm12, %v7762_v1, %v6143_v53  ;;  %vm7771_vm12 = vmmov %vm7766_vm8 }
 0x5aa   : > { %7756 = vst [vmem:[#allocation18_spill] sm:$0xff] %v6506_v15  ;;  %2927 = vrot.lane.b32.xlu1 %v2330_v42, %s3693_s15  ;;  %v2345_v50 = vsel %vm629_vm1, %v2085_v38, %v2108_v2 }
 0x5ab   : > { %2929 = vrot.lane.b32.xlu0 %v2333_v18, %s3693_s15  ;;  %v7767_v18 = vld [vmem:[#allocation16_spill] sm:$0xff] }
 0x5ac   : > { %v6512_v58 = vpop.permute.xlu1 %2733  ;;  %v2086_v5 = vsel %vm7768_vm10, %v7764_v22, %v7767_v18  ;;  %v2084_v22 = vsel %vm7766_vm8, %v6127_v61, %v7765_v21  ;;  %vm7770_vm10 = vmmov %vm7766_vm8  ;;  %v2088_v61 = vsel %vm7771_vm12, %v6133_v17, %v6135_v55  ;;  %vm7772_vm8 = vcmask 867328  }
 0x5ad   : > { %7757 = vst [vmem:[#allocation54_spill] sm:$0xff] %v6512_v58  ;;  %v6514_v16 = vpop.permute.xlu0 %2735  ;;  %v2348_v58 = vsel %vm629_vm1, %v2086_v5, %v2109_v4  ;;  %v2087_v24 = vsel %vm7770_vm10, %v7767_v18, %v6133_v17  ;;  %v2111_v5 = vsel %vm7761_vm11, %v6143_v53, %v6160_v48  ;;  %v2151_v53 = vsel %vm496_vm9, %v6189_v12, %v5924_v0  ;;  %vm7773_vm10 = vmmov %vm7772_vm8 }
 0x5ae   : > { %7758 = vst [vmem:[#allocation11_spill] sm:$0xff] %v6514_v16  ;;  %2126 = vrot.lane.b32.xlu1 %v5751_v57, %s7658_s27  ;;  %v2354_v4 = vsel %vm629_vm1, %v2088_v61, %v2111_v5  ;;  %v2131_v17 = vsel %vm7772_vm8, %v6165_v46, %v6178_v34  ;;  %v2132_v38 = vsel %vm7773_vm10, %v6178_v34, %v6183_v13  ;;  %vm7774_vm11 = vmmov %vm7772_vm8  ;;  %vm7776_vm10 = vcmask 211968  }
 0x5af   : > { %2128 = vrot.lane.b32.xlu0 %v5823_v26, %s7658_s27  ;;  %v2366_v0 = vsel %vm629_vm1, %v2131_v17, %v2151_v53  ;;  %v2130_v18 = vsel %vm7774_vm11, %v6191_v3, %v6165_v46  ;;  %vm7775_vm12 = vmmov %vm7772_vm8  ;;  %v2134_v46 = vsel %vm7772_vm8, %v6197_v37, %v6199_v52 }
 0x5b0   : > { %v6529_v42 = vpop.permute.xlu1 %2721  ;;  %v2133_v34 = vsel %vm7775_vm12, %v6183_v13, %v6197_v37  ;;  %v2375_v13 = vsel %vm629_vm1, %v2134_v46, %v6290_v11  ;;  %v2191_v11 = vsel %vm7776_vm10, %v6213_v40, %v6230_v25  ;;  %vm7777_vm11 = vmmov %vm7776_vm10  ;;  %vm7778_vm12 = vcmask 220160  }
 0x5b1   : > { %v6534_v16 = vpop.permute.xlu0 %2723  ;;  %v2192_v61 = vsel %vm7777_vm11, %v6230_v25, %v6235_v19  ;;  %vm7779_vm8 = vmmov %vm7776_vm10  ;;  %vm7781_vm11 = vcmask 138240  }
 0x5b2   : > { %2937 = vrot.lane.b32.xlu1 %v2345_v50, %s3693_s15  ;;  %v2342_v50 = vsel %vm629_vm1, %v2084_v22, %v2107_v14  ;;  %v2193_v25 = vsel %vm7779_vm8, %v6235_v19, %v6247_v28  ;;  %vm7780_vm10 = vmmov %vm7779_vm8 }
 0x5b3   : > { %2939 = vrot.lane.b32.xlu0 %v2348_v58, %s3693_s15  ;;  %v2351_v58 = vsel %vm629_vm1, %v2087_v24, %v2110_v20  ;;  %v2369_v24 = vsel %vm629_vm1, %v2132_v38, %v6255_v36  ;;  %v2372_v36 = vsel %vm629_vm1, %v2133_v34, %v6264_v63  ;;  %v2194_v34 = vsel %vm7780_vm10, %v6247_v28, %v6249_v49  ;;  %vm7783_vm8 = vmmov %vm7781_vm11 }
 0x5b4   : > { %v6549_v15 = vpop.permute.xlu1 %2737  ;;  %v2396_v46 = vsel %vm629_vm1, %v6344_v45, %v2194_v34  ;;  %v2231_v28 = vsel %vm7781_vm11, %v6285_v41, %v6304_v51  ;;  %vm7785_vm11 = vmmov %vm7783_vm8 }
 0x5b5   : > { %v6554_v2 = vpop.permute.xlu0 %2540 }
 0x5b6   : > { %2935 = vrot.lane.b32.xlu1 %v2342_v50, %s3693_s15  ;;  %v2363_v50 = vsel %vm629_vm1, %v2130_v18, %v6189_v12 }
 0x5b7   : > { %2941 = vrot.lane.b32.xlu0 %v2351_v58, %s3693_s15 }
 0x5b8   : > { %v6566_v8 = vpop.permute.xlu1 %2542 }
 0x5b9   : > { %v6568_v1 = vpop.permute.xlu0 %2560 }
 0x5ba   : > { %2943 = vrot.lane.b32.xlu1 %v2354_v4, %s3693_s15  ;;  %v2171_v4 = vsel %vm7778_vm12, %v6208_v56, %v5852_v27  ;;  %vm7782_vm12 = vcmask 146432  }
 0x5bb   : > { %2187 = vrot.lane.b32.xlu0 %v7709_v30, %s3698_s20  ;;  %v2387_v38 = vsel %vm629_vm1, %v2171_v4, %v2191_v11  ;;  %v2211_v45 = vsel %vm7782_vm12, %v6270_v7, %v6275_v43  ;;  %vm7784_vm10 = vmmov %vm7782_vm12 }
 0x5bc   : > { %v6577_v20 = vpop.permute.xlu1 %2562  ;;  %v2408_v11 = vsel %vm629_vm1, %v2211_v45, %v2231_v28  ;;  %vm7786_vm12 = vmmov %vm7783_vm8  ;;  %v7789_v45 = vld [vmem:[#allocation17_spill] sm:$0xff] }
 0x5bd   : > { %v6582_v21 = vpop.permute.xlu0 %2743 }
 0x5be   : > { %2189 = vrot.lane.b32.xlu1 %v5836_v33, %s3698_s20 }
 0x5bf   : > { %2951 = vrot.lane.b32.xlu0 %v2366_v0, %s3693_s15  ;;  %v2390_v0 = vsel %vm629_vm1, %v6326_v9, %v2192_v61  ;;  %v2393_v9 = vsel %vm629_vm1, %v6337_v23, %v2193_v25 }
 0x5c0   : > { %v6594_v14 = vpop.permute.xlu1 %2745 }
 0x5c1   : > { %v6596_v22 = vpop.permute.xlu0 %2747 }
 0x5c2   : > { %2953 = vrot.lane.b32.xlu1 %v2369_v24, %s3693_s15  ;;  %v2384_v24 = vsel %vm629_vm1, %v6208_v56, %v6213_v40 }
 0x5c3   : > { %2949 = vrot.lane.b32.xlu0 %v2363_v50, %s3693_s15 }
 0x5c4   : > { %v6610_v3 = vpop.permute.xlu1 %2749 }
 0x5c5   : > { %v6612_v5 = vpop.permute.xlu0 %2751 }
 0x5c6   : > { %2955 = vrot.lane.b32.xlu1 %v2372_v36, %s3693_s15 }
 0x5c7   : > { %2957 = vrot.lane.b32.xlu0 %v2375_v13, %s3693_s15  ;;  %v2232_v13 = vsel %vm7783_vm8, %v6304_v51, %v6309_v10  ;;  %v2233_v51 = vsel %vm7785_vm11, %v6309_v10, %v6330_v31  ;;  %vm7787_vm8 = vmmov %vm7784_vm10  ;;  %vm7791_vm11 = vcmask 1039360  }
 0x5c8   : > { %v6620_v12 = vpop.permute.xlu1 %2149 }
 0x5c9   : > { %v6622_v58 = vpop.permute.xlu0 %2580 }
 0x5ca   : > { %2207 = vrot.lane.b32.xlu1 %v5751_v57, %s3699_s23 }
 0x5cb   : > { %2209 = vrot.lane.b32.xlu0 %v5823_v26, %s3699_s23 }
 0x5cc   : > { %v6628_v37 = vpop.permute.xlu1 %2582 }
 0x5cd   : > { %v6630_v63 = vpop.permute.xlu0 %2590 }
 0x5ce   : > { %2227 = vrot.lane.b32.xlu1 %v7709_v30, %s3700_s24 }
 0x5cf   : > { %2229 = vrot.lane.b32.xlu0 %v5836_v33, %s3700_s24 }
 0x5d0   : > { %v6645_v53 = vpop.permute.xlu1 %2757 }
 0x5d1   : > { %v6647_v17 = vpop.permute.xlu0 %2759 }
 0x5d2   : > { %2965 = vrot.lane.b32.xlu1 %v2387_v38, %s3693_s15 }
 0x5d3   : > { %2967 = vrot.lane.b32.xlu0 %v2390_v0, %s3693_s15  ;;  %v2213_v0 = vsel %vm7787_vm8, %v6283_v60, %v6317_v59 }
 0x5d4   : > { %v6657_v18 = vpop.permute.xlu1 %2761 }
 0x5d5   : > { %v6659_v27 = vpop.permute.xlu0 %2763 }
 0x5d6   : > { %2963 = vrot.lane.b32.xlu1 %v2384_v24, %s3693_s15 }
 0x5d7   : > { %2969 = vrot.lane.b32.xlu0 %v2393_v9, %s3693_s15  ;;  %v2252_v9 = vsel %vm601_vm15, %v6350_v6, %v6364_v39 }
 0x5d8   : > { %v6671_v19 = vpop.permute.xlu1 %2765 }
 0x5d9   : > { %v6673_v50 = vpop.permute.xlu0 %2771 }
 0x5da   : > { %2971 = vrot.lane.b32.xlu1 %v2396_v46, %s3693_s15 }
 0x5db   : > { %2247 = vrot.lane.b32.xlu0 %v5751_v57, %s7667_s29 }
 0x5dc   : > { %v6680_v56 = vpop.permute.xlu1 %2773 }
 0x5dd   : > { %v6682_v40 = vpop.permute.xlu0 %2775 }
 0x5de   : > { %2249 = vrot.lane.b32.xlu1 %v5823_v26, %s7667_s29 }
 0x5df   : > { %2267 = vrot.lane.b32.xlu0 %v7709_v30, %s7669_s25  ;;  %v2212_v30 = vsel %vm7784_vm10, %v6275_v43, %v6283_v60  ;;  %v2234_v43 = vsel %vm7786_vm12, %v6330_v31, %v6332_v29  ;;  %vm7788_vm10 = vmmov %vm7787_vm8  ;;  %v2272_v60 = vsel %vm622_vm13, %v6372_v62, %v6374_v47  ;;  %vm7828_vm12 = vcmask 965632  }
 0x5e0   : > { %v6691_v23 = vpop.permute.xlu1 %2169  ;;  %v2411_v38 = vsel %vm629_vm1, %v2212_v30, %v2232_v13  ;;  %v2214_v10 = vsel %vm7788_vm10, %v6317_v59, %v6319_v44  ;;  %v2251_v59 = vsel %vm601_vm15, %v6348_v35, %v6350_v6  ;;  %v7790_v13 = vld [vmem:[#allocation36_spill] sm:$0xff]  ;;  %vm7832_vm8 = vcmask 1031168   ;;  %vm7834_vm10 = vmmov %vm7828_vm12 }
 0x5e1   : > { %v6696_v36 = vpop.permute.xlu0 %2593  ;;  %v2417_v31 = vsel %vm629_vm1, %v2214_v10, %v2234_v43  ;;  %v7793_v10 = vld [vmem:[#allocation60_spill] sm:$0xff] }
 0x5e2   : > { %2269 = vrot.lane.b32.xlu1 %v5836_v33, %s7669_s25  ;;  %v2405_v33 = vsel %vm629_vm1, %v6270_v7, %v6285_v41  ;;  %v2414_v7 = vsel %vm629_vm1, %v2213_v0, %v2233_v51  ;;  %v2271_v41 = vsel %vm622_vm13, %v6366_v32, %v6372_v62  ;;  %v2447_v62 = vsel %vm7791_vm11, %v7790_v13, %v7789_v45 }
 0x5e3   : > { %2979 = vrot.lane.b32.xlu0 %v2408_v11, %s3693_s15  ;;  %v2429_v28 = vsel %vm629_vm1, %v2251_v59, %v2271_v41  ;;  %v2432_v11 = vsel %vm629_vm1, %v2252_v9, %v2272_v60  ;;  %v2597_v6 = vsel %vm629_vm1, %v5751_v57, %v2447_v62  ;;  %v2600_v51 = vsel %vm629_vm1, %v5823_v26, %v7789_v45  ;;  %v7794_v59 = vld [vmem:[#allocation59_spill] sm:$0xff]  ;;  %v7797_v62 = vld [vmem:[#allocation48_spill] sm:$0xff] }
 0x5e4   : > { %v6708_v61 = vpop.permute.xlu1 %2777  ;;  %vm7836_vm11 = vcmask 949248  }
 0x5e5   : > { %v6710_v4 = vpop.permute.xlu0 %2779 }
 0x5e6   : > { %2981 = vrot.lane.b32.xlu1 %v2411_v38, %s3693_s15 }
 0x5e7   : > { %2977 = vrot.lane.b32.xlu0 %v2405_v33, %s3693_s15  ;;  %v7792_v33 = vld [vmem:[#allocation58_spill] sm:$0xff] }
 0x5e8   : > { %v6727_v25 = vpop.permute.xlu1 %2785  ;;  %v2273_v43 = vsel %vm622_vm13, %v6374_v47, %v7792_v33  ;;  %v2274_v26 = vsel %vm622_vm13, %v7792_v33, %v7794_v59 }
 0x5e9   : > { %v6732_v24 = vpop.permute.xlu0 %2787 }
 0x5ea   : > { %2983 = vrot.lane.b32.xlu1 %v2414_v7, %s3693_s15  ;;  %v2253_v7 = vsel %vm601_vm15, %v6364_v39, %v7793_v10  ;;  %v7795_v39 = vld [vmem:[#allocation46_spill] sm:$0xff] }
 0x5eb   : > { %2985 = vrot.lane.b32.xlu0 %v2417_v31, %s3693_s15  ;;  %v2426_v31 = vsel %vm629_vm1, %v6348_v35, %v6366_v32  ;;  %v2435_v9 = vsel %vm629_vm1, %v2253_v7, %v2273_v43  ;;  %v2254_v32 = vsel %vm601_vm15, %v7793_v10, %v7795_v39  ;;  %v7800_v7 = vld [vmem:[#allocation53_spill] sm:$0xff] }
 0x5ec   : > { %v6747_v34 = vpop.permute.xlu1 %2789  ;;  %v2438_v45 = vsel %vm629_vm1, %v2254_v32, %v2274_v26  ;;  %v7802_v26 = vld [vmem:[#allocation50_spill] sm:$0xff] }
 0x5ed   : > { %v6752_v46 = vpop.permute.xlu0 %2791 }
 0x5ee   : > { %2993 = vrot.lane.b32.xlu1 %v2429_v28, %s3693_s15 }
 0x5ef   : > { %2995 = vrot.lane.b32.xlu0 %v2432_v11, %s3693_s15  ;;  %v2799_v11 = vsel %vm1159_vm0, %v7797_v62, %v6450_v54 }
 0x5f0   : > { %v6761_v30 = vpop.permute.xlu1 %2793 }
 0x5f1   : > { %v2896_v38 = vpop.permute.xlu0 %2895 }
 0x5f2   : > { %2725 = vrot.lane.b32.xlu1 %v2597_v6, %s3703_s26  ;;  %v7798_v6 = vld [vmem:[#allocation29_spill] sm:$0xff] }
 0x5f3   : > { %2727 = vrot.lane.b32.xlu0 %v2600_v51, %s3703_s26  ;;  %v7799_v51 = vld [vmem:[#allocation40_spill] sm:$0xff] }
 0x5f4   : > { %v2898_v0 = vpop.permute.xlu1 %2897  ;;  %v2488_v33 = vsel %vm838_vm3, %v7799_v51, %v7798_v6 }
 0x5f5   : > { %v2894_v41 = vpop.permute.xlu0 %2893  ;;  %v3090_v60 = vsel %vm880_vm5, %v2896_v38, %v2898_v0 }
 0x5f6   : > { %v3089_v47 = vsel %vm880_vm5, %v2894_v41, %v2896_v38  ;;  %2991 = vrot.lane.b32.xlu1 %v2426_v31, %s3693_s15  ;;  %3288 = vmatprep.subr.bf16.mxu0 %v3090_v60  ;;  %v7801_v41 = vld [vmem:[#allocation23_spill] sm:$0xff] }
 0x5f7   : > { %2997 = vrot.lane.b32.xlu0 %v2435_v9, %s3693_s15  ;;  %3289 = vmatpush1.bf16.msra.mxu0 %v3089_v47  ;;  %v2467_v31 = vsel %vm816_vm2, %v7801_v41, %v7800_v7  ;;  %v2800_v47 = vsel %vm1159_vm0, %v6450_v54, %v7802_v26  ;;  %v7803_v9 = vld [vmem:[#allocation51_spill] sm:$0xff] }
 0x5f8   : > { %v2900_v35 = vpop.permute.xlu1 %2899  ;;  %v2489_v32 = vsel %vm838_vm3, %v7798_v6, %v7803_v9  ;;  %v7806_v9 = vld [vmem:[#allocation31_spill] sm:$0xff] }
 0x5f9   : > { %v6790_v28 = vpop.permute.xlu0 %2901  ;;  %v3091_v43 = vsel %vm880_vm5, %v2898_v0, %v2900_v35  ;;  %v2618_v0 = vsel %vm629_vm1, %v2467_v31, %v2488_v33  ;;  %v2801_v33 = vsel %vm1159_vm0, %v7802_v26, %v6529_v42  ;;  %v7807_v26 = vld [vmem:[#allocation9_spill] sm:$0xff] }
 0x5fa   : > { %7796 = vst [vmem:[#allocation20_spill] sm:$0xff] %v6790_v28  ;;  %2999 = vrot.lane.b32.xlu1 %v2438_v45, %s3693_s15  ;;  %v3092_v38 = vsel %vm880_vm5, %v2900_v35, %v6790_v28  ;;  %v7804_v35 = vld [vmem:[#allocation44_spill] sm:$0xff] }
 0x5fb   : > { %3007 = vrot.lane.b32.xlu0 %v2799_v11, %s3693_s15  ;;  %3329 = vmatprep.subr.bf16.mxu1 %v3092_v38  ;;  %v2468_v45 = vsel %vm816_vm2, %v7800_v7, %v7804_v35  ;;  %vm7819_vm2 = vcmask 236544  }
 0x5fc   : > { %v6804_v10 = vpop.permute.xlu1 %2034  ;;  %3330 = vmatpush1.bf16.msra.mxu1 %v3091_v43  ;;  %v2621_v54 = vsel %vm629_vm1, %v2468_v45, %v2489_v32  ;;  %v2802_v43 = vsel %vm1159_vm0, %v6529_v42, %v6534_v16  ;;  %v7809_v42 = vld [vmem:[#allocation54_spill] sm:$0xff]  ;;  %vm7820_vm3 = vmmov %vm7819_vm2 }
 0x5fd   : > { %v6809_v60 = vpop.permute.xlu0 %2036 }
 0x5fe   : > { %3009 = vrot.lane.b32.xlu1 %v2800_v47, %s3693_s15  ;;  %v7805_v47 = vld [vmem:[#allocation18_spill] sm:$0xff] }
 0x5ff   : > { %2739 = vrot.lane.b32.xlu0 %v2618_v0, %s3703_s26  ;;  %v2805_v32 = vsel %vm1159_vm0, %v7806_v9, %v7805_v47  ;;  %v7808_v0 = vld [vmem:[#allocation45_spill] sm:$0xff]  ;;  %v2806_v45 = vsel %vm1159_vm0, %v7805_v47, %v7809_v42 }
 0x600   : > { %v6823_v11 = vpop.permute.xlu1 %2057  ;;  %v2528_v35 = vsel %vm880_vm5, %v7808_v0, %v7807_v26  ;;  %v7813_v0 = vld [vmem:[#allocation27_spill] sm:$0xff] }
 0x601   : > { %v6825_v38 = vpop.permute.xlu0 %2059 }
 0x602   : > { %2741 = vrot.lane.b32.xlu1 %v2621_v54, %s3703_s26  ;;  %v7810_v54 = vld [vmem:[#allocation52_spill] sm:$0xff] }
 0x603   : > { %3005 = vrot.lane.b32.xlu0 %v7797_v62, %s3693_s15 }
 0x604   : > { %v2910_v6 = vpop.permute.xlu1 %2909 }
 0x605   : > { %v2912_v51 = vpop.permute.xlu0 %2911 }
 0x606   : > { %3011 = vrot.lane.b32.xlu1 %v2801_v33, %s3693_s15  ;;  %v3096_v7 = vsel %vm880_vm5, %v2910_v6, %v2912_v51  ;;  %v7811_v33 = vld [vmem:[#allocation55_spill] sm:$0xff] }
 0x607   : > { %3013 = vrot.lane.b32.xlu0 %v2802_v43, %s3693_s15  ;;  %3290 = vmatprep.subr.bf16.mxu0 %v3096_v7  ;;  %v7812_v43 = vld [vmem:[#allocation37_spill] sm:$0xff] }
 0x608   : > { %v2908_v41 = vpop.permute.xlu1 %2907  ;;  %v2508_v7 = vsel %vm859_vm4, %v7812_v43, %v7811_v33 }
 0x609   : > { %v3095_v62 = vsel %vm880_vm5, %v2908_v41, %v2910_v6  ;;  %v2914_v31 = vpop.permute.xlu0 %2913  ;;  %v2529_v6 = vsel %vm880_vm5, %v7807_v26, %v7810_v54  ;;  %v2639_v47 = vsel %vm629_vm1, %v2508_v7, %v2528_v35  ;;  %v7814_v35 = vld [vmem:[#allocation11_spill] sm:$0xff] }
 0x60a   : > { %3021 = vrot.lane.b32.xlu1 %v2805_v32, %s3693_s15  ;;  %3291 = vmatpush1.bf16.msra.mxu0 %v3095_v62  ;;  %v2509_v62 = vsel %vm859_vm4, %v7811_v33, %v7813_v0  ;;  %v2807_v43 = vsel %vm1159_vm0, %v7809_v42, %v7814_v35  ;;  %v7816_v0 = vld [vmem:[#allocation34_spill] sm:$0xff]  ;;  %vm7822_vm4 = vcmask 220160  }
 0x60b   : > { %3023 = vrot.lane.b32.xlu0 %v2806_v45, %s3693_s15  ;;  %v2642_v26 = vsel %vm629_vm1, %v2509_v62, %v2529_v6  ;;  %v3097_v45 = vsel %vm880_vm5, %v2912_v51, %v2914_v31  ;;  %v2808_v51 = vsel %vm1159_vm0, %v7814_v35, %v6549_v15  ;;  %v2548_v62 = vsel %vm901_vm7, %v7816_v0, %v6554_v2 }
 0x60c   : > { %v6858_v41 = vpop.permute.xlu1 %2915  ;;  %v2569_v35 = vsel %vm922_vm6, %v6568_v1, %v6577_v20 }
 0x60d   : > { %v6863_v32 = vpop.permute.xlu0 %2080  ;;  %v3098_v28 = vsel %vm880_vm5, %v2914_v31, %v6858_v41  ;;  %v2811_v31 = vsel %vm1159_vm0, %v6582_v21, %v6594_v14 }
 0x60e   : > { %2753 = vrot.lane.b32.xlu1 %v2639_v47, %s3703_s26  ;;  %3331 = vmatprep.subr.bf16.mxu1 %v3098_v28 }
 0x60f   : > { %2755 = vrot.lane.b32.xlu0 %v2642_v26, %s3703_s26  ;;  %3332 = vmatpush1.bf16.msra.mxu1 %v3097_v45  ;;  %v2812_v26 = vsel %vm1159_vm0, %v6594_v14, %v6596_v22  ;;  %v2549_v14 = vsel %vm901_vm7, %v6554_v2, %v6566_v8  ;;  %v2813_v8 = vsel %vm1159_vm0, %v6596_v22, %v6610_v3  ;;  %v7818_v22 = vld [vmem:[#allocation25_spill] sm:$0xff]  ;;  %vm7824_vm7 = vcmask 719872  }
 0x610   : > { %v6872_v54 = vpop.permute.xlu1 %2082  ;;  %v2663_v0 = vsel %vm629_vm1, %v2549_v14, %v2569_v35 }
 0x611   : > { %v6874_v33 = vpop.permute.xlu0 %2103 }
 0x612   : > { %3019 = vrot.lane.b32.xlu1 %v7806_v9, %s3693_s15  ;;  %v7815_v9 = vld [vmem:[#allocation42_spill] sm:$0xff] }
 0x613   : > { %3025 = vrot.lane.b32.xlu0 %v2807_v43, %s3693_s15  ;;  %v2568_v7 = vsel %vm922_vm6, %v7815_v9, %v6568_v1  ;;  %vm7823_vm6 = vmmov %vm7822_vm4 }
 0x614   : > { %v6882_v28 = vpop.permute.xlu1 %2105 }
 0x615   : > { %v2924_v6 = vpop.permute.xlu0 %2923 }
 0x616   : > { %3027 = vrot.lane.b32.xlu1 %v2808_v51, %s3693_s15  ;;  %v2660_v51 = vsel %vm629_vm1, %v2548_v62, %v2568_v7  ;;  %v2814_v7 = vsel %vm1159_vm0, %v6610_v3, %v6612_v5  ;;  %v2818_v3 = vsel %vm1159_vm0, %v6647_v17, %v6657_v18 }
 0x617   : > { %3035 = vrot.lane.b32.xlu0 %v2811_v31, %s3693_s15 }
 0x618   : > { %v2926_v42 = vpop.permute.xlu1 %2925 }
 0x619   : > { %v2922_v47 = vpop.permute.xlu0 %2921  ;;  %v3102_v45 = vsel %vm880_vm5, %v2924_v6, %v2926_v42 }
 0x61a   : > { %v3101_v43 = vsel %vm880_vm5, %v2922_v47, %v2924_v6  ;;  %3037 = vrot.lane.b32.xlu1 %v2812_v26, %s3693_s15  ;;  %3292 = vmatprep.subr.bf16.mxu0 %v3102_v45  ;;  %v7817_v47 = vld [vmem:[#allocation47_spill] sm:$0xff]  ;;  %v2588_v45 = vsel %vm7819_vm2, %v7818_v22, %v6622_v58  ;;  %vm7838_vm2 = vmmov %vm7836_vm11 }
 0x61b   : > { %2767 = vrot.lane.b32.xlu0 %v2660_v51, %s3703_s26  ;;  %3293 = vmatpush1.bf16.msra.mxu0 %v3101_v43  ;;  %v6939_v26 = vsel %vm496_vm9, %v7817_v47, %v6620_v12  ;;  %v2589_v43 = vsel %vm7820_vm3, %v6622_v58, %v6628_v37  ;;  %v2592_v51 = vsel %vm496_vm9, %v6620_v12, %v6630_v63  ;;  %vm7825_vm9 = vmmov %vm7824_vm7  ;;  %vm7839_vm3 = vcmask 875520  }
 0x61c   : > { %v2928_v31 = vpop.permute.xlu1 %2927  ;;  %v2819_v63 = vsel %vm1159_vm0, %v6657_v18, %v6659_v27 }
 0x61d   : > { %v6912_v9 = vpop.permute.xlu0 %2929  ;;  %v3103_v20 = vsel %vm880_vm5, %v2926_v42, %v2928_v31  ;;  %v2817_v42 = vsel %vm1159_vm0, %v6645_v53, %v6647_v17  ;;  %v2676_v17 = vsel %vm629_vm1, %v2588_v45, %v6939_v26 }
 0x61e   : > { %2769 = vrot.lane.b32.xlu1 %v2663_v0, %s3703_s26  ;;  %v3104_v1 = vsel %vm880_vm5, %v2928_v31, %v6912_v9 }
 0x61f   : > { %3033 = vrot.lane.b32.xlu0 %v6582_v21, %s3693_s15  ;;  %3333 = vmatprep.subr.bf16.mxu1 %v3104_v1  ;;  %v2679_v1 = vsel %vm629_vm1, %v2589_v43, %v2592_v51 }
 0x620   : > { %v6921_v6 = vpop.permute.xlu1 %2126  ;;  %3334 = vmatpush1.bf16.msra.mxu1 %v3103_v20 }
 0x621   : > { %v6923_v2 = vpop.permute.xlu0 %2128 }
 0x622   : > { %3039 = vrot.lane.b32.xlu1 %v2813_v8, %s3693_s15 }
 0x623   : > { %3041 = vrot.lane.b32.xlu0 %v2814_v7, %s3693_s15 }
 0x624   : > { %v2938_v21 = vpop.permute.xlu1 %2937 }
 0x625   : > { %v2940_v62 = vpop.permute.xlu0 %2939 }
 0x626   : > { %3049 = vrot.lane.b32.xlu1 %v2817_v42, %s3693_s15  ;;  %v3108_v35 = vsel %vm880_vm5, %v2938_v21, %v2940_v62  ;;  %v2824_v42 = vsel %vm1159_vm0, %v6680_v56, %v6682_v40 }
 0x627   : > { %3051 = vrot.lane.b32.xlu0 %v2818_v3, %s3693_s15  ;;  %3294 = vmatprep.subr.bf16.mxu0 %v3108_v35 }
 0x628   : > { %v2936_v14 = vpop.permute.xlu1 %2935 }
 0x629   : > { %v3107_v31 = vsel %vm880_vm5, %v2936_v14, %v2938_v21  ;;  %v2942_v0 = vpop.permute.xlu0 %2941  ;;  %v2820_v21 = vsel %vm1159_vm0, %v6659_v27, %v6671_v19  ;;  %v7821_v27 = vld [vmem:[#allocation32_spill] sm:$0xff] }
 0x62a   : > { %2781 = vrot.lane.b32.xlu1 %v2676_v17, %s3703_s26  ;;  %3295 = vmatpush1.bf16.msra.mxu0 %v3107_v31  ;;  %v3109_v20 = vsel %vm880_vm5, %v2940_v62, %v2942_v0  ;;  %v6994_v45 = vsel %vm7822_vm4, %v7821_v27, %v6691_v23  ;;  %v7831_v27 = vld [vmem:[#allocation26_spill] sm:$0xff]  ;;  %vm7840_vm4 = vcmask 883712  }
 0x62b   : > { %2783 = vrot.lane.b32.xlu0 %v2679_v1, %s3703_s26 }
 0x62c   : > { %v6962_v58 = vpop.permute.xlu1 %2943 }
 0x62d   : > { %v6964_v12 = vpop.permute.xlu0 %2187  ;;  %v3110_v37 = vsel %vm880_vm5, %v2942_v0, %v6962_v58 }
 0x62e   : > { %3047 = vrot.lane.b32.xlu1 %v6645_v53, %s3693_s15  ;;  %3335 = vmatprep.subr.bf16.mxu1 %v3110_v37  ;;  %v2823_v53 = vsel %vm1159_vm0, %v6673_v50, %v6680_v56  ;;  %v2595_v56 = vsel %vm7823_vm6, %v6691_v23, %v6696_v36  ;;  %v2825_v23 = vsel %vm1159_vm0, %v6682_v40, %v6708_v61  ;;  %vm7841_vm6 = vmmov %vm7839_vm3 }
 0x62f   : > { %3053 = vrot.lane.b32.xlu0 %v2819_v63, %s3693_s15  ;;  %3336 = vmatpush1.bf16.msra.mxu1 %v3109_v20  ;;  %v2826_v36 = vsel %vm1159_vm0, %v6708_v61, %v6710_v4  ;;  %v2829_v61 = vsel %vm1159_vm0, %v6727_v25, %v6732_v24  ;;  %v2830_v63 = vsel %vm1159_vm0, %v6732_v24, %v6747_v34  ;;  %v7826_v24 = vld [vmem:[#allocation33_spill] sm:$0xff] }
 0x630   : > { %v6975_v8 = vpop.permute.xlu1 %2189 }
 0x631   : > { %v2952_v7 = vpop.permute.xlu0 %2951 }
 0x632   : > { %3055 = vrot.lane.b32.xlu1 %v2820_v21, %s3693_s15 }
 0x633   : > { %3063 = vrot.lane.b32.xlu0 %v2823_v53, %s3693_s15 }
 0x634   : > { %v2954_v18 = vpop.permute.xlu1 %2953 }
 0x635   : > { %v2950_v62 = vpop.permute.xlu0 %2949  ;;  %v3114_v47 = vsel %vm880_vm5, %v2952_v7, %v2954_v18 }
 0x636   : > { %v3113_v22 = vsel %vm880_vm5, %v2950_v62, %v2952_v7  ;;  %3065 = vrot.lane.b32.xlu1 %v2824_v42, %s3693_s15  ;;  %3296 = vmatprep.subr.bf16.mxu0 %v3114_v47  ;;  %v7827_v62 = vld [vmem:[#allocation38_spill] sm:$0xff]  ;;  %v7829_v42 = vld [vmem:[#allocation35_spill] sm:$0xff] }
 0x637   : > { %2795 = vrot.lane.b32.xlu0 %v6994_v45, %s3703_s26  ;;  %3297 = vmatpush1.bf16.msra.mxu0 %v3113_v22  ;;  %v7830_v22 = vld [vmem:[#allocation30_spill] sm:$0xff] }
 0x638   : > { %v2956_v3 = vpop.permute.xlu1 %2955 }
 0x639   : > { %v7001_v35 = vpop.permute.xlu0 %2957  ;;  %v3115_v51 = vsel %vm880_vm5, %v2954_v18, %v2956_v3  ;;  %v2832_v18 = vsel %vm1159_vm0, %v6752_v46, %v6761_v30 }
 0x63a   : > { %2797 = vrot.lane.b32.xlu1 %v2595_v56, %s3703_s26  ;;  %v3116_v43 = vsel %vm880_vm5, %v2956_v3, %v7001_v35  ;;  %v1996_v3 = vsel %vm7832_vm8, %v7831_v27, %v7830_v22 }
 0x63b   : > { %3061 = vrot.lane.b32.xlu0 %v6673_v50, %s3693_s15  ;;  %3337 = vmatprep.subr.bf16.mxu1 %v3116_v43  ;;  %v7024_v50 = vld [vmem:[%s7372_s3] sm:$0xff] }
 0x63c   : > { %v7009_v14 = vpop.permute.xlu1 %2207  ;;  %3338 = vmatpush1.bf16.msra.mxu1 %v3115_v51  ;;  %v7030_v17 = vcombine.high %v7024_v50, %v7024_v50  ;;  %v7833_v51 = vld [vmem:[#allocation57_spill] sm:$0xff] }
 0x63d   : > { %v7011_v31 = vpop.permute.xlu0 %2209 }
 0x63e   : > { %3067 = vrot.lane.b32.xlu1 %v2825_v23, %s3693_s15  ;;  %3622 = vmatprep.mubr.msk.bf16.mxu0 %vm7824_vm7, %v7030_v17  ;;  %v2021_v23 = vsel %vm7834_vm10, %v7826_v24, %v7833_v51  ;;  %vm7842_vm7 = vcmask 867328   ;;  %vm7849_vm10 = vcmask 138240  }
 0x63f   : > { %3069 = vrot.lane.b32.xlu0 %v2826_v36, %s3693_s15  ;;  %3624 = vmatprep.mubr.msk.bf16.mxu1 %vm7825_vm9, %v7030_v17  ;;  %vm7844_vm9 = vmmov %vm7842_vm7 }
 0x640   : > { %v7026_v0 = vpop.permute.xlu1 %2227 }
 0x641   : > { %v7032_v40 = vpop.permute.xlu0 %2229 }
 0x642   : > { %3075 = vrot.lane.b32.xlu1 %v6727_v25, %s3693_s15  ;;  %v2831_v25 = vsel %vm1159_vm0, %v6747_v34, %v6752_v46  ;;  %v2020_v34 = vsel %vm7828_vm12, %v7827_v62, %v7826_v24  ;;  %v2297_v46 = vsel %vm629_vm1, %v5751_v57, %v7790_v13  ;;  %v7837_v13 = vld [vmem:[#allocation39_spill] sm:$0xff]  ;;  %v2089_v62 = vsel %vm7840_vm4, %v6135_v55, %v6863_v32 }
 0x643   : > { %3077 = vrot.lane.b32.xlu0 %v2829_v61, %s3693_s15  ;;  %v2315_v36 = vsel %vm629_vm1, %v1996_v3, %v2020_v34  ;;  %v2113_v34 = vsel %vm7841_vm6, %v6874_v33, %v6882_v28  ;;  %v2136_v28 = vsel %vm7844_vm9, %v6921_v6, %v6923_v2  ;;  %vm7846_vm12 = vcmask 211968  }
 0x644   : > { %v2966_v1 = vpop.permute.xlu1 %2965  ;;  %vm7847_vm8 = vmmov %vm7846_vm12  ;;  %vm3546_vm9 = vcmask 261120  }
 0x645   : > { %v2968_v37 = vpop.permute.xlu0 %2967  ;;  %v2196_v2 = vsel %vm7847_vm8, %v6964_v12, %v6975_v8 }
 0x646   : > { %3079 = vrot.lane.b32.xlu1 %v2830_v63, %s3693_s15  ;;  %v3120_v20 = vsel %vm880_vm5, %v2966_v1, %v2968_v37 }
 0x647   : > { %3081 = vrot.lane.b32.xlu0 %v2831_v25, %s3693_s15  ;;  %3298 = vmatprep.subr.bf16.mxu0 %v3120_v20  ;;  %v2043_v25 = vsel %vm378_vm14, %v7837_v13, %v6804_v10 }
 0x648   : > { %v2964_v7 = vpop.permute.xlu1 %2963 }
 0x649   : > { %v3119_v21 = vsel %vm880_vm5, %v2964_v7, %v2966_v1  ;;  %v2970_v53 = vpop.permute.xlu0 %2969  ;;  %v7835_v1 = vld [vmem:[#allocation41_spill] sm:$0xff]  ;;  %v2318_v7 = vsel %vm629_vm1, %v7830_v22, %v2021_v23  ;;  %v2235_v23 = vsel %vm7849_vm10, %v6332_v29, %v7026_v0 }
 0x64a   : > { %3083 = vrot.lane.b32.xlu1 %v2832_v18, %s3693_s15  ;;  %3299 = vmatpush1.bf16.msra.mxu0 %v3119_v21  ;;  %v3121_v61 = vsel %vm880_vm5, %v2968_v37, %v2970_v53  ;;  %v2066_v63 = vsel %vm7836_vm11, %v7835_v1, %v6823_v11  ;;  %v2067_v37 = vsel %vm7838_vm2, %v6823_v11, %v6825_v38  ;;  %vm7850_vm11 = vcmask 146432   ;;  %vm7851_vm2 = vmmov %vm7849_vm10 }
 0x64b   : > { %2903 = vrot.lane.b32.xlu0 %v7829_v42, %s3693_s15  ;;  %v2336_v21 = vsel %vm629_vm1, %v2043_v25, %v2066_v63  ;;  %v2044_v18 = vsel %vm378_vm14, %v6804_v10, %v6809_v60  ;;  %v2135_v10 = vsel %vm7842_vm7, %v6199_v52, %v6921_v6  ;;  %vm7843_vm14 = vmmov %vm7840_vm4  ;;  %v7845_v52 = vld [vmem:[#allocation43_spill] sm:$0xff]  ;;  %v2381_v6 = vsel %vm629_vm1, %v2136_v28, %v6939_v26 }
 0x64c   : > { %v7063_v47 = vpop.permute.xlu1 %2971  ;;  %v2339_v38 = vsel %vm629_vm1, %v2044_v18, %v2067_v37  ;;  %v2090_v55 = vsel %vm7843_vm14, %v6863_v32, %v6872_v54  ;;  %v2378_v3 = vsel %vm629_vm1, %v2135_v10, %v7845_v52  ;;  %v2195_v32 = vsel %vm7846_vm12, %v6249_v49, %v6964_v12 }
 0x64d   : > { %v7068_v56 = vpop.permute.xlu0 %2247  ;;  %v3122_v43 = vsel %vm880_vm5, %v2970_v53, %v7063_v47  ;;  %v2112_v53 = vsel %vm7839_vm3, %v6160_v48, %v6874_v33  ;;  %v2360_v22 = vsel %vm629_vm1, %v2090_v55, %v2113_v34  ;;  %v2215_v12 = vsel %vm7850_vm11, %v6319_v44, %v7009_v14  ;;  %vm7852_vm3 = vmmov %vm7850_vm11 }
 0x64e   : > { %2905 = vrot.lane.b32.xlu1 %v2297_v46, %s3693_s15  ;;  %3339 = vmatprep.subr.bf16.mxu1 %v3122_v43  ;;  %v2357_v48 = vsel %vm629_vm1, %v2089_v62, %v2112_v53  ;;  %v7848_v43 = vld [vmem:[#allocation56_spill] sm:$0xff]  ;;  %v2236_v1 = vsel %vm7851_vm2, %v7026_v0, %v7032_v40  ;;  %v2420_v29 = vsel %vm629_vm1, %v2215_v12, %v2235_v23  ;;  %vm3526_vm14 = vcmask 457728  }
 0x64f   : > { %2917 = vrot.lane.b32.xlu0 %v2315_v36, %s3693_s15  ;;  %3340 = vmatpush1.bf16.msra.mxu1 %v3121_v61  ;;  %v2399_v51 = vsel %vm629_vm1, %v7848_v43, %v2195_v32  ;;  %v2402_v61 = vsel %vm629_vm1, %v6994_v45, %v2196_v2  ;;  %v2216_v44 = vsel %vm7852_vm3, %v7009_v14, %v7011_v31 }
 0x650   : > { %v7085_v57 = vpop.permute.xlu1 %2249  ;;  %v2255_v0 = vsel %vm601_vm15, %v7795_v39, %v7068_v56  ;;  %v2423_v25 = vsel %vm629_vm1, %v2216_v44, %v2236_v1 }
 0x651   : > { %v2268_v20 = vpop.permute.xlu0 %2267  ;;  %v2256_v14 = vsel %vm601_vm15, %v7068_v56, %v7085_v57 }
 0x652   : > { %2919 = vrot.lane.b32.xlu1 %v2318_v7, %s3693_s15  ;;  %v2275_v13 = vsel %vm622_vm13, %v7794_v59, %v2268_v20 }
 0x653   : > { %2931 = vrot.lane.b32.xlu0 %v2336_v21, %s3693_s15  ;;  %v2441_v59 = vsel %vm629_vm1, %v2255_v0, %v2275_v13 }
 0x654   : > { %v2270_v24 = vpop.permute.xlu1 %2269 }
 0x655   : > { %v2980_v11 = vpop.permute.xlu0 %2979  ;;  %v2276_v7 = vsel %vm622_vm13, %v2268_v20, %v2270_v24 }
 0x656   : > { %2933 = vrot.lane.b32.xlu1 %v2339_v38, %s3693_s15  ;;  %v2444_v39 = vsel %vm629_vm1, %v2256_v14, %v2276_v7 }
 0x657   : > { %2945 = vrot.lane.b32.xlu0 %v2357_v48, %s3693_s15 }
 0x658   : > { %v2982_v60 = vpop.permute.xlu1 %2981 }
 0x659   : > { %v2978_v42 = vpop.permute.xlu0 %2977  ;;  %v3126_v33 = vsel %vm880_vm5, %v2980_v11, %v2982_v60 }
 0x65a   : > { %v3125_v27 = vsel %vm880_vm5, %v2978_v42, %v2980_v11  ;;  %2947 = vrot.lane.b32.xlu1 %v2360_v22, %s3693_s15  ;;  %3300 = vmatprep.subr.bf16.mxu0 %v3126_v33 }
 0x65b   : > { %2959 = vrot.lane.b32.xlu0 %v2378_v3, %s3693_s15  ;;  %3301 = vmatpush1.bf16.msra.mxu0 %v3125_v27 }
 0x65c   : > { %v2984_v54 = vpop.permute.xlu1 %2983 }
 0x65d   : > { %v7133_v46 = vpop.permute.xlu0 %2985  ;;  %v3127_v36 = vsel %vm880_vm5, %v2982_v60, %v2984_v54 }
 0x65e   : > { %2961 = vrot.lane.b32.xlu1 %v2381_v6, %s3693_s15  ;;  %v3128_v49 = vsel %vm880_vm5, %v2984_v54, %v7133_v46 }
 0x65f   : > { %2973 = vrot.lane.b32.xlu0 %v2399_v51, %s3693_s15  ;;  %3341 = vmatprep.subr.bf16.mxu1 %v3128_v49 }
 0x660   : > { %v2994_v26 = vpop.permute.xlu1 %2993  ;;  %3342 = vmatpush1.bf16.msra.mxu1 %v3127_v36 }
 0x661   : > { %v2996_v8 = vpop.permute.xlu0 %2995 }
 0x662   : > { %2975 = vrot.lane.b32.xlu1 %v2402_v61, %s3693_s15  ;;  %v3132_v63 = vsel %vm880_vm5, %v2994_v26, %v2996_v8 }
 0x663   : > { %2987 = vrot.lane.b32.xlu0 %v2420_v29, %s3693_s15  ;;  %3302 = vmatprep.subr.bf16.mxu0 %v3132_v63 }
 0x664   : > { %v2726_v45 = vpop.permute.xlu1 %2725 }
 0x665   : > { %v2728_v40 = vpop.permute.xlu0 %2727  ;;  %v2803_v53 = vsel %vm1159_vm0, %v6534_v16, %v2726_v45 }
 0x666   : > { %2989 = vrot.lane.b32.xlu1 %v2423_v25, %s3693_s15  ;;  %v2804_v18 = vsel %vm1159_vm0, %v2726_v45, %v2728_v40 }
 0x667   : > { %3001 = vrot.lane.b32.xlu0 %v2441_v59, %s3693_s15 }
 0x668   : > { %v2992_v31 = vpop.permute.xlu1 %2991 }
 0x669   : > { %v3131_v37 = vsel %vm880_vm5, %v2992_v31, %v2994_v26  ;;  %v2998_v21 = vpop.permute.xlu0 %2997 }
 0x66a   : > { %3003 = vrot.lane.b32.xlu1 %v2444_v39, %s3693_s15  ;;  %3303 = vmatpush1.bf16.msra.mxu0 %v3131_v37  ;;  %v3133_v57 = vsel %vm880_vm5, %v2996_v8, %v2998_v21 }
 0x66b   : > { %3015 = vrot.lane.b32.xlu0 %v2803_v53, %s3693_s15 }
 0x66c   : > { %v7184_v20 = vpop.permute.xlu1 %2999 }
 0x66d   : > { %v3008_v24 = vpop.permute.xlu0 %3007  ;;  %v3134_v56 = vsel %vm880_vm5, %v2998_v21, %v7184_v20 }
 0x66e   : > { %3017 = vrot.lane.b32.xlu1 %v2804_v18, %s3693_s15  ;;  %3343 = vmatprep.subr.bf16.mxu1 %v3134_v56 }
 0x66f   : > { %3344 = vmatpush1.bf16.msra.mxu1 %v3133_v57 }
 0x670   : > { %v3010_v16 = vpop.permute.xlu1 %3009 }
 0x671   : > { %v2740_v62 = vpop.permute.xlu0 %2739  ;;  %v3138_v11 = vsel %vm880_vm5, %v3008_v24, %v3010_v16 }
 0x672   : > { %v2809_v38 = vsel %vm1159_vm0, %v6549_v15, %v2740_v62  ;;  %3304 = vmatprep.subr.bf16.mxu0 %v3138_v11 }
 0x673   : > { %3029 = vrot.lane.b32.xlu0 %v2809_v38, %s3693_s15  ;;  %v3492_v38 = vld [vmem:[%s7373_s4] sm:$0xff] }
 0x674   : > { %v2742_v34 = vpop.permute.xlu1 %2741 }
 0x675   : > { %v2810_v48 = vsel %vm1159_vm0, %v2740_v62, %v2742_v34  ;;  %v3006_v10 = vpop.permute.xlu0 %3005 }
 0x676   : > { %v3137_v55 = vsel %vm880_vm5, %v3006_v10, %v3008_v24  ;;  %3031 = vrot.lane.b32.xlu1 %v2810_v48, %s3693_s15 }
 0x677   : > { %3305 = vmatpush1.bf16.msra.mxu0 %v3137_v55 }
 0x678   : > { %v3012_v60 = vpop.permute.xlu1 %3011 }
 0x679   : > { %v7198_v42 = vpop.permute.xlu0 %3013  ;;  %v3139_v15 = vsel %vm880_vm5, %v3010_v16, %v3012_v60 }
 0x67a   : > { %v3140_v22 = vsel %vm880_vm5, %v3012_v60, %v7198_v42 }
 0x67b   : > { %3345 = vmatprep.subr.bf16.mxu1 %v3140_v22 }
 0x67c   : > { %v3022_v33 = vpop.permute.xlu1 %3021  ;;  %3346 = vmatpush1.bf16.msra.mxu1 %v3139_v15 }
 0x67d   : > { %v3024_v28 = vpop.permute.xlu0 %3023 }
 0x67e   : > { %v3144_v27 = vsel %vm880_vm5, %v3022_v33, %v3024_v28 }
 0x67f   : > { %3306 = vmatprep.subr.bf16.mxu0 %v3144_v27 }
 0x680   : > { %v2754_v52 = vpop.permute.xlu1 %2753 }
 0x681   : > { %v2815_v3 = vsel %vm1159_vm0, %v6612_v5, %v2754_v52  ;;  %v2756_v32 = vpop.permute.xlu0 %2755 }
 0x682   : > { %v2816_v54 = vsel %vm1159_vm0, %v2754_v52, %v2756_v32  ;;  %3043 = vrot.lane.b32.xlu0 %v2815_v3, %s3693_s15 }
 0x683   : > { %3045 = vrot.lane.b32.xlu1 %v2816_v54, %s3693_s15  ;;  %v7260_v54 = vcombine.low %v7024_v50, %v7024_v50 }
 0x684   : > { %v3020_v6 = vpop.permute.xlu1 %3019 }
 0x685   : > { %v3143_v2 = vsel %vm880_vm5, %v3020_v6, %v3022_v33  ;;  %v3026_v43 = vpop.permute.xlu0 %3025 }
 0x686   : > { %3307 = vmatpush1.bf16.msra.mxu0 %v3143_v2  ;;  %v3145_v5 = vsel %vm880_vm5, %v3024_v28, %v3026_v43 }
 0x688   : > { %v7210_v51 = vpop.permute.xlu1 %3027 }
 0x689   : > { %v3036_v49 = vpop.permute.xlu0 %3035  ;;  %v3146_v23 = vsel %vm880_vm5, %v3026_v43, %v7210_v51 }
 0x68a   : > { %3347 = vmatprep.subr.bf16.mxu1 %v3146_v23 }
 0x68b   : > { %3348 = vmatpush1.bf16.msra.mxu1 %v3145_v5  ;;  %v7854_v5 = vmov 0  }
 0x68c   : > { %v3038_v36 = vpop.permute.xlu1 %3037 }
 0x68d   : > { %v2768_v26 = vpop.permute.xlu0 %2767  ;;  %v3150_v12 = vsel %vm880_vm5, %v3036_v49, %v3038_v36 }
 0x68e   : > { %v2821_v8 = vsel %vm1159_vm0, %v6671_v19, %v2768_v26  ;;  %3308 = vmatprep.subr.bf16.mxu0 %v3150_v12  ;;  %v7855_v12 = vld [vmem:[#allocation20_spill] sm:$0xff] }
 0x68f   : > { %3057 = vrot.lane.b32.xlu0 %v2821_v8, %s3693_s15 }
 0x690   : > { %v2770_v61 = vpop.permute.xlu1 %2769 }
 0x691   : > { %v2822_v1 = vsel %vm1159_vm0, %v2768_v26, %v2770_v61  ;;  %v3034_v29 = vpop.permute.xlu0 %3033 }
 0x692   : > { %v3149_v63 = vsel %vm880_vm5, %v3034_v29, %v3036_v49  ;;  %3059 = vrot.lane.b32.xlu1 %v2822_v1, %s3693_s15 }
 0x693   : > { %3309 = vmatpush1.bf16.msra.mxu0 %v3149_v63 }
 0x694   : > { %v3040_v13 = vpop.permute.xlu1 %3039 }
 0x695   : > { %v7222_v44 = vpop.permute.xlu0 %3041  ;;  %v3151_v19 = vsel %vm880_vm5, %v3038_v36, %v3040_v13 }
 0x696   : > { %v3152_v45 = vsel %vm880_vm5, %v3040_v13, %v7222_v44 }
 0x697   : > { %3349 = vmatprep.subr.bf16.mxu1 %v3152_v45 }
 0x698   : > { %v3050_v0 = vpop.permute.xlu1 %3049  ;;  %3350 = vmatpush1.bf16.msra.mxu1 %v3151_v19 }
 0x699   : > { %v3052_v40 = vpop.permute.xlu0 %3051 }
 0x69a   : > { %v3156_v25 = vsel %vm880_vm5, %v3050_v0, %v3052_v40 }
 0x69b   : > { %3310 = vmatprep.subr.bf16.mxu0 %v3156_v25 }
 0x69c   : > { %v2782_v7 = vpop.permute.xlu1 %2781 }
 0x69d   : > { %v2827_v59 = vsel %vm1159_vm0, %v6710_v4, %v2782_v7  ;;  %v2784_v14 = vpop.permute.xlu0 %2783 }
 0x69e   : > { %v2828_v31 = vsel %vm1159_vm0, %v2782_v7, %v2784_v14  ;;  %3071 = vrot.lane.b32.xlu0 %v2827_v59, %s3693_s15 }
 0x69f   : > { %3073 = vrot.lane.b32.xlu1 %v2828_v31, %s3693_s15 }
 0x6a0   : > { %v3048_v37 = vpop.permute.xlu1 %3047 }
 0x6a1   : > { %v3155_v21 = vsel %vm880_vm5, %v3048_v37, %v3050_v0  ;;  %v3054_v39 = vpop.permute.xlu0 %3053 }
 0x6a2   : > { %3311 = vmatpush1.bf16.msra.mxu0 %v3155_v21  ;;  %v3157_v4 = vsel %vm880_vm5, %v3052_v40, %v3054_v39 }
 0x6a4   : > { %v7234_v53 = vpop.permute.xlu1 %3055 }
 0x6a5   : > { %v3064_v18 = vpop.permute.xlu0 %3063  ;;  %v3158_v24 = vsel %vm880_vm5, %v3054_v39, %v7234_v53 }
 0x6a6   : > { %3351 = vmatprep.subr.bf16.mxu1 %v3158_v24 }
 0x6a7   : > { %3352 = vmatpush1.bf16.msra.mxu1 %v3157_v4 }
 0x6a8   : > { %v3066_v56 = vpop.permute.xlu1 %3065 }
 0x6a9   : > { %v2796_v57 = vpop.permute.xlu0 %2795  ;;  %v3162_v16 = vsel %vm880_vm5, %v3064_v18, %v3066_v56 }
 0x6aa   : > { %v2833_v62 = vsel %vm1159_vm0, %v6761_v30, %v2796_v57  ;;  %3312 = vmatprep.subr.bf16.mxu0 %v3162_v16 }
 0x6ab   : > { %3085 = vrot.lane.b32.xlu0 %v2833_v62, %s3693_s15 }
 0x6ac   : > { %v2798_v11 = vpop.permute.xlu1 %2797 }
 0x6ad   : > { %v2834_v34 = vsel %vm1159_vm0, %v2796_v57, %v2798_v11  ;;  %v3062_v48 = vpop.permute.xlu0 %3061  ;;  %vm7853_vm0 = vcmask 719872  }
 0x6ae   : > { %v3161_v10 = vsel %vm880_vm5, %v3062_v48, %v3064_v18  ;;  %3087 = vrot.lane.b32.xlu1 %v2834_v34, %s3693_s15  ;;  %vm7856_vm13 = vmmov %vm7853_vm0 }
 0x6af   : > { %3313 = vmatpush1.bf16.msra.mxu0 %v3161_v10  ;;  %3495 = vperm.xlu0 %3668, %v3492_v38  }
 0x6b0   : > { %v3068_v55 = vpop.permute.xlu1 %3067 }
 0x6b1   : > { %v7249_v60 = vpop.permute.xlu0 %3069  ;;  %v3163_v22 = vsel %vm880_vm5, %v3066_v56, %v3068_v55 }
 0x6b2   : > { %v3164_v30 = vsel %vm880_vm5, %v3068_v55, %v7249_v60 }
 0x6b3   : > { %3353 = vmatprep.subr.bf16.mxu1 %v3164_v30 }
 0x6b4   : > { %v3076_v15 = vpop.permute.xlu1 %3075  ;;  %3354 = vmatpush1.bf16.msra.mxu1 %v3163_v22 }
 0x6b5   : > { %v3078_v33 = vpop.permute.xlu0 %3077 }
 0x6b6   : > { %v3167_v28 = vsel %vm880_vm5, %v3076_v15, %v3078_v33 }
 0x6b7   : > { %v3268_v32 = vsel %vm629_vm1, %v3167_v28, 0 }
 0x6b8   : > { %v3080_v27 = vpop.permute.xlu1 %3079 }
 0x6b9   : > { %v3168_v52 = vsel %vm880_vm5, %v3078_v33, %v3080_v27  ;;  %v3082_v3 = vpop.permute.xlu0 %3081 }
 0x6ba   : > { %3621 = vmatprep.subr.msk.bf16.mxu0 %vm629_vm1, %v3168_v52  ;;  %v3169_v6 = vsel %vm880_vm5, %v3080_v27, %v3082_v3 }
 0x6bb   : > { %3315 = vmatpush1.bf16.msra.mxu0 %v3268_v32  ;;  %v3274_v23 = vsel %vm629_vm1, %v3169_v6, 0 }
 0x6bc   : > { %v7263_v2 = vpop.permute.xlu1 %3083 }
 0x6bd   : > { %v3170_v43 = vsel %vm880_vm5, %v3082_v3, %v7263_v2  ;;  %v2904_v49 = vpop.permute.xlu0 %2903 }
 0x6be   : > { %3623 = vmatprep.subr.msk.bf16.mxu1 %vm629_vm1, %v3170_v43  ;;  %3321 = vmatmul.mubr.bf16.vlgmr.msra.gmra.mrb[8].mxu0 %v7260_v54  ;;  %v3093_v8 = vsel %vm880_vm5, %v7855_v12, %v2904_v49 }
 0x6bf   : > { %3356 = vmatpush1.bf16.msra.mxu1 %v3274_v23  ;;  %3626 = vmatprep.mubr.msk.bf16.mxu0 %vm7853_vm0, %v7030_v17 }
 0x6c0   : > { %v2906_v50 = vpop.permute.xlu1 %2905  ;;  %3411 = vmatprep.subr.bf16.mxu1 %v7854_v5 }
 0x6c1   : > { %v2918_v36 = vpop.permute.xlu0 %2917  ;;  %v3094_v26 = vsel %vm880_vm5, %v2904_v49, %v2906_v50 }
 0x6c2   : > { %3370 = vmatprep.subr.bf16.mxu0 %v3094_v26  ;;  %3362 = vmatmul.mubr.bf16.vlgmr.msra.gmra.mrb[8].mxu1 %v7260_v54  ;;  %v3099_v63 = vsel %vm880_vm5, %v6858_v41, %v2918_v36 }
 0x6c3   : > { %3371 = vmatpush1.bf16.msra.mxu0 %v3093_v8  ;;  %3412 = vmatpush1.bf16.msra.mxu1 %v2906_v50 }
 0x6c4   : > { %v2920_v61 = vpop.permute.xlu1 %2919  ;;  %3413 = vmatprep.subr.bf16.mxu1 %v7854_v5  ;;  %3627 = vmatprep.mubr.msk.bf16.mxu1 %vm7856_vm13, %v7030_v17 }
 0x6c5   : > { %v2932_v1 = vpop.permute.xlu0 %2931  ;;  %v3100_v29 = vsel %vm880_vm5, %v2918_v36, %v2920_v61 }
 0x6c6   : > { %3372 = vmatprep.subr.bf16.mxu0 %v3100_v29  ;;  %v3105_v0 = vsel %vm880_vm5, %v6912_v9, %v2932_v1 }
 0x6c7   : > { %3373 = vmatpush1.bf16.msra.mxu0 %v3099_v63  ;;  %3414 = vmatpush1.bf16.msra.mxu1 %v2920_v61 }
 0x6c8   : > { %v2934_v13 = vpop.permute.xlu1 %2933  ;;  %3415 = vmatprep.subr.bf16.mxu1 %v7854_v5 }
 0x6c9   : > { %v2946_v45 = vpop.permute.xlu0 %2945  ;;  %v3106_v19 = vsel %vm880_vm5, %v2932_v1, %v2934_v13 }
 0x6ca   : > { %3374 = vmatprep.subr.bf16.mxu0 %v3106_v19  ;;  %v3111_v25 = vsel %vm880_vm5, %v6962_v58, %v2946_v45 }
 0x6cb   : > { %3375 = vmatpush1.bf16.msra.mxu0 %v3105_v0  ;;  %3416 = vmatpush1.bf16.msra.mxu1 %v2934_v13  ;;  %v7857_v0 = vld [vmem:[#allocation3_spill] sm:$0xff] }
 0x6cc   : > { %v2948_v17 = vpop.permute.xlu1 %2947  ;;  %3417 = vmatprep.subr.bf16.mxu1 %v7854_v5 }
 0x6cd   : > { %v2960_v40 = vpop.permute.xlu0 %2959  ;;  %v3112_v41 = vsel %vm880_vm5, %v2946_v45, %v2948_v17 }
 0x6ce   : > { %3376 = vmatprep.subr.bf16.mxu0 %v3112_v41  ;;  %v3117_v14 = vsel %vm880_vm5, %v7001_v35, %v2960_v40 }
 0x6cf   : > { %3377 = vmatpush1.bf16.msra.mxu0 %v3111_v25  ;;  %3418 = vmatpush1.bf16.msra.mxu1 %v2948_v17 }
 0x6d0   : > { %v2962_v7 = vpop.permute.xlu1 %2961  ;;  %3419 = vmatprep.subr.bf16.mxu1 %v7854_v5 }
 0x6d1   : > { %v2974_v59 = vpop.permute.xlu0 %2973  ;;  %v3118_v9 = vsel %vm880_vm5, %v2960_v40, %v2962_v7 }
 0x6d2   : > { %3378 = vmatprep.subr.bf16.mxu0 %v3118_v9  ;;  %v3123_v21 = vsel %vm880_vm5, %v7063_v47, %v2974_v59  ;;  %v7860_v9 = vld [vmem:[#allocation4_spill] sm:$0xff] }
 0x6d3   : > { %3379 = vmatpush1.bf16.msra.mxu0 %v3117_v14  ;;  %3420 = vmatpush1.bf16.msra.mxu1 %v2962_v7 }
 0x6d4   : > { %v2976_v31 = vpop.permute.xlu1 %2975  ;;  %3421 = vmatprep.subr.bf16.mxu1 %v7854_v5 }
 0x6d5   : > { %v2988_v37 = vpop.permute.xlu0 %2987  ;;  %v3124_v58 = vsel %vm880_vm5, %v2974_v59, %v2976_v31 }
 0x6d6   : > { %3380 = vmatprep.subr.bf16.mxu0 %v3124_v58  ;;  %v3129_v24 = vsel %vm880_vm5, %v7133_v46, %v2988_v37 }
 0x6d7   : > { %3381 = vmatpush1.bf16.msra.mxu0 %v3123_v21  ;;  %3422 = vmatpush1.bf16.msra.mxu1 %v2976_v31  ;;  %v7861_v31 = vld [vmem:[#allocation5_spill] sm:$0xff] }
 0x6d8   : > { %v2990_v39 = vpop.permute.xlu1 %2989  ;;  %3423 = vmatprep.subr.bf16.mxu1 %v7854_v5 }
 0x6d9   : > { %v3002_v18 = vpop.permute.xlu0 %3001  ;;  %v3130_v35 = vsel %vm880_vm5, %v2988_v37, %v2990_v39 }
 0x6da   : > { %3382 = vmatprep.subr.bf16.mxu0 %v3130_v35  ;;  %v3135_v56 = vsel %vm880_vm5, %v7184_v20, %v3002_v18  ;;  %v7863_v35 = vld [vmem:[#allocation6_spill] sm:$0xff] }
 0x6db   : > { %3383 = vmatpush1.bf16.msra.mxu0 %v3129_v24  ;;  %3424 = vmatpush1.bf16.msra.mxu1 %v2990_v39 }
 0x6dc   : > { %v3004_v4 = vpop.permute.xlu1 %3003  ;;  %3425 = vmatprep.subr.bf16.mxu1 %v7854_v5 }
 0x6dd   : > { %v3136_v47 = vsel %vm880_vm5, %v3002_v18, %v3004_v4  ;;  %v3016_v57 = vpop.permute.xlu0 %3015 }
 0x6de   : > { %3384 = vmatprep.subr.bf16.mxu0 %v3136_v47  ;;  %v3141_v62 = vsel %vm880_vm5, %v7198_v42, %v3016_v57 }
 0x6df   : > { %3385 = vmatpush1.bf16.msra.mxu0 %v3135_v56  ;;  %3426 = vmatpush1.bf16.msra.mxu1 %v3004_v4 }
 0x6e0   : > { %v3018_v16 = vpop.permute.xlu1 %3017  ;;  %3427 = vmatprep.subr.bf16.mxu1 %v7854_v5 }
 0x6e1   : > { %v3142_v46 = vsel %vm880_vm5, %v3016_v57, %v3018_v16 }
 0x6e2   : > { %3386 = vmatprep.subr.bf16.mxu0 %v3142_v46 }
 0x6e3   : > { %3387 = vmatpush1.bf16.msra.mxu0 %v3141_v62  ;;  %3428 = vmatpush1.bf16.msra.mxu1 %v3018_v16  ;;  %v7865_v16 = vld [vmem:[#allocation7_spill] sm:$0xff] }
 0x6e4   : > { %3429 = vmatprep.subr.bf16.mxu1 %v7854_v5 }
 0x6e5   : > { %v3030_v11 = vpop.permute.xlu0 %3029 }
 0x6e6   : > { %v3147_v34 = vsel %vm880_vm5, %v7210_v51, %v3030_v11 }
 0x6e8   : > { %v3032_v38 = vpop.permute.xlu1 %3031 }
 0x6e9   : > { %3430 = vmatpush1.bf16.msra.mxu1 %v3032_v38  ;;  %v3148_v20 = vsel %vm880_vm5, %v3030_v11, %v3032_v38  ;;  %v7867_v11 = vld [vmem:[#allocation8_spill] sm:$0xff] }
 0x6ea   : > { %3388 = vmatprep.subr.bf16.mxu0 %v3148_v20  ;;  %3431 = vmatprep.subr.bf16.mxu1 %v7854_v5 }
 0x6eb   : > { %3389 = vmatpush1.bf16.msra.mxu0 %v3147_v34 }
 0x6f4   : > { %v3044_v48 = vpop.permute.xlu0 %3043 }
 0x6f5   : > { %v3046_v10 = vpop.permute.xlu1 %3045  ;;  %v3153_v55 = vsel %vm880_vm5, %v7222_v44, %v3044_v48 }
 0x6f6   : > { %3432 = vmatpush1.bf16.msra.mxu1 %v3046_v10  ;;  %v3154_v42 = vsel %vm880_vm5, %v3044_v48, %v3046_v10 }
 0x6f7   : > { %3390 = vmatprep.subr.bf16.mxu0 %v3154_v42  ;;  %3433 = vmatprep.subr.bf16.mxu1 %v7854_v5  ;;  %v7869_v42 = vld [vmem:[#allocation10_spill] sm:$0xff] }
 0x6f8   : > { %3391 = vmatpush1.bf16.msra.mxu0 %v3153_v55 }
 0x701   : > { %v3058_v30 = vpop.permute.xlu0 %3057 }
 0x702   : > { %v3159_v15 = vsel %vm880_vm5, %v7234_v53, %v3058_v30 }
 0x704   : > { %v3060_v22 = vpop.permute.xlu1 %3059 }
 0x705   : > { %3434 = vmatpush1.bf16.msra.mxu1 %v3060_v22  ;;  %v3160_v51 = vsel %vm880_vm5, %v3058_v30, %v3060_v22 }
 0x706   : > { %3392 = vmatprep.subr.bf16.mxu0 %v3160_v51  ;;  %3435 = vmatprep.subr.bf16.mxu1 %v7854_v5 }
 0x707   : > { %3393 = vmatpush1.bf16.msra.mxu0 %v3159_v15 }
 0x710   : > { %v3072_v33 = vpop.permute.xlu0 %3071 }
 0x711   : > { %v3074_v28 = vpop.permute.xlu1 %3073  ;;  %v3165_v27 = vsel %vm880_vm5, %v7249_v60, %v3072_v33 }
 0x712   : > { %3436 = vmatpush1.bf16.msra.mxu1 %v3074_v28  ;;  %v3166_v44 = vsel %vm880_vm5, %v3072_v33, %v3074_v28 }
 0x713   : > { %3394 = vmatprep.subr.bf16.mxu0 %v3166_v44  ;;  %3437 = vmatprep.subr.bf16.mxu1 %v7854_v5 }
 0x714   : > { %3395 = vmatpush1.bf16.msra.mxu0 %v3165_v27 }
 0x71d   : > { %v3086_v52 = vpop.permute.xlu0 %3085 }
 0x71e   : > { %v3171_v53 = vsel %vm880_vm5, %v7263_v2, %v3086_v52 }
 0x71f   : > { %v3280_v43 = vsel %vm629_vm1, %v3171_v53, 0 }
 0x720   : > { %v3088_v3 = vpop.permute.xlu1 %3087 }
 0x721   : > { %v3172_v32 = vsel %vm880_vm5, %v3086_v52, %v3088_v3  ;;  %v3286_v6 = vsel %vm629_vm1, %v3088_v3, 0 }
 0x722   : > { %3625 = vmatprep.subr.msk.bf16.mxu0 %vm629_vm1, %v3172_v32  ;;  %3438 = vmatpush1.bf16.msra.mxu1 %v3286_v6  ;;  %vm7858_vm1 = vcmask 588800  }
 0x723   : > { %3397 = vmatpush1.bf16.msra.mxu0 %v3280_v43  ;;  %vm7859_vm5 = vmmov %vm7858_vm1 }
 0x724   : > { %vm7862_vm15 = vmmov %vm7858_vm1 }
 0x725   : > { %3444 = vmatmul.mubr.bf16.vlgmr.msra.gmra.mrb[12].mxu1 %v7260_v54  ;;  %vm7864_vm4 = vmmov %vm7858_vm1 }
 0x726   : > { %3403 = vmatmul.mubr.bf16.vlgmr.msra.gmra.mrb[12].mxu0 %v7260_v54  ;;  %vm7866_vm6 = vmmov %vm7858_vm1 }
 0x727   : > { %vm7868_vm7 = vmmov %vm7858_vm1 }
 0x72e   : > { %v3496_v45 = vpop.permute.xlu0 %3495 }
 0x791   : > { %v3322_v60 = vpop.f32.mrb[8].mxu0 }
 0x792   : > { %3458 = vrot.lane.b32.xlu1 %v3322_v60, %s3706_s10  ;;  %v3324_v49 = vpop.f32.mrb[9].mxu0 }
 0x793   : > { %v3326_v2 = vpop.f32.mrb[10].mxu0 }
 0x794   : > { %v3327_v23 = vpop.f32.mrb[11].mxu0 }
 0x795   : > { %v3363_v50 = vpop.f32.mrb[8].mxu1 }
 0x796   : > { %3460 = vrot.lane.b32.xlu1 %v3324_v49, %s3706_s10  ;;  %v3365_v5 = vpop.f32.mrb[9].mxu1  ;;  %3462 = vrot.lane.b32.xlu0 %v3363_v50, %s3706_s10 }
 0x797   : > { %v3367_v36 = vpop.f32.mrb[10].mxu1 }
 0x798   : > { %v3368_v26 = vpop.f32.mrb[11].mxu1 }
 0x79a   : > { %3464 = vrot.lane.b32.xlu1 %v3365_v5, %s3706_s10 }
 0x7f8   : > { %v3445_v12 = vpop.f32.mrb[12].mxu1 }
 0x7f9   : > { %v3404_v8 = vpop.f32.mrb[12].mxu0  ;;  %v3447_v61 = vpop.f32.mrb[13].mxu1 }
 0x7fa   : > { %3466 = vrot.lane.b32.xlu0 %v3404_v8, %s3706_s10  ;;  %v3406_v54 = vpop.f32.mrb[13].mxu0  ;;  %v3448_v1 = vpop.f32.mrb[14].mxu1 }
 0x7fb   : > { %3468 = vrot.lane.b32.xlu1 %v3406_v54, %s3706_s10  ;;  %v3408_v29 = vpop.f32.mrb[14].mxu0  ;;  %v3449_v63 = vpop.f32.mrb[15].mxu1 }
 0x7fc   : > { %v3409_v13 = vpop.f32.mrb[15].mxu0 }
 0x7fe   : > { %3470 = vrot.lane.b32.xlu0 %v3445_v12, %s3706_s10 }
 0x804   : > { %v3459_v19 = vpop.permute.xlu1 %3458 }
 0x805   : > { %v3485_v17 = vadd.f32 %v3459_v19, %v7857_v0 }
 0x807   : > { %v3498_v40 = vadd.f32 %v3496_v45, %v3485_v17 }
 0x808   : > { %v3461_v41 = vpop.permute.xlu1 %3460  ;;  %v3463_v25 = vpop.permute.xlu0 %3462 }
 0x809   : > { %v3472_v7 = vsel %vm7858_vm1, %v3459_v19, %v3461_v41  ;;  %v3473_v59 = vsel %vm7859_vm5, %v3461_v41, %v3463_v25  ;;  %3512 = vrot.lane.b32.xlu1 %v3498_v40, %s3708_s9 }
 0x80a   : > { %v3486_v14 = vadd.f32 %v3472_v7, %v7860_v9  ;;  %v3487_v37 = vadd.f32 %v3473_v59, %v7861_v31 }
 0x80c   : > { %v3465_v58 = vpop.permute.xlu1 %3464  ;;  %v3500_v21 = vadd.f32 %v3496_v45, %v3487_v37  ;;  %v3499_v39 = vadd.f32 %v3496_v45, %v3486_v14 }
 0x80d   : > { %v3474_v18 = vsel %vm7862_vm15, %v3463_v25, %v3465_v58 }
 0x80e   : > { %v3488_v24 = vadd.f32 %v3474_v18, %v7863_v35  ;;  %3514 = vrot.lane.b32.xlu0 %v3499_v39, %s3708_s9  ;;  %3516 = vrot.lane.b32.xlu1 %v3500_v21, %s3708_s9 }
 0x810   : > { %v3501_v4 = vadd.f32 %v3496_v45, %v3488_v24 }
 0x812   : > { %3518 = vrot.lane.b32.xlu0 %v3501_v4, %s3708_s9 }
 0x86c   : > { %v3467_v47 = vpop.permute.xlu0 %3466 }
 0x86d   : > { %v3475_v56 = vsel %vm7864_vm4, %v3465_v58, %v3467_v47  ;;  %v3469_v57 = vpop.permute.xlu1 %3468 }
 0x86e   : > { %v3489_v46 = vadd.f32 %v3475_v56, %v7865_v16  ;;  %v3476_v62 = vsel %vm7866_vm6, %v3467_v47, %v3469_v57 }
 0x86f   : > { %v3490_v38 = vadd.f32 %v3476_v62, %v7867_v11 }
 0x870   : > { %v3502_v20 = vadd.f32 %v3496_v45, %v3489_v46  ;;  %v3471_v34 = vpop.permute.xlu0 %3470 }
 0x871   : > { %v3503_v48 = vadd.f32 %v3496_v45, %v3490_v38  ;;  %v3477_v10 = vsel %vm7868_vm7, %v3469_v57, %v3471_v34 }
 0x872   : > { %v3491_v55 = vadd.f32 %v3477_v10, %v7869_v42  ;;  %3520 = vrot.lane.b32.xlu1 %v3502_v20, %s3708_s9 }
 0x873   : > { %3522 = vrot.lane.b32.xlu0 %v3503_v48, %s3708_s9 }
 0x874   : > { %v3504_v30 = vadd.f32 %v3496_v45, %v3491_v55 }
 0x876   : > { %3524 = vrot.lane.b32.xlu1 %v3504_v30, %s3708_s9 }
 0x87b   : > { %v3513_v22 = vpop.permute.xlu1 %3512 }
 0x880   : > { %v3515_v51 = vpop.permute.xlu0 %3514  ;;  %v3517_v15 = vpop.permute.xlu1 %3516 }
 0x881   : > { %v3527_v33 = vsel %vm3526_vm14, %v3513_v22, %v3515_v51  ;;  %v3528_v28 = vsel %vm3526_vm14, %v3515_v51, %v3517_v15 }
 0x882   : > { %3540 = vst [vmem:[%s251_s14] sm:$0xff] %v3527_v33  ;;  %3541 = vst [vmem:[%s251_s14 + $0x8] sm:$0xff] %v3528_v28 }
 0x884   : > { %v3519_v44 = vpop.permute.xlu0 %3518 }
 0x885   : > { %v3529_v27 = vsel %vm3526_vm14, %v3517_v15, %v3519_v44 }
 0x886   : > { %3542 = vst [vmem:[%s251_s14 + $0x10] sm:$0xff] %v3529_v27 }
 0x8e4   : > { %v3521_v52 = vpop.permute.xlu1 %3520 }
 0x8e5   : > { %v3530_v53 = vsel %vm3526_vm14, %v3519_v44, %v3521_v52  ;;  %v3523_v3 = vpop.permute.xlu0 %3522 }
 0x8e6   : > { %3543 = vst [vmem:[%s251_s14 + $0x18] sm:$0xff] %v3530_v53  ;;  %v3531_v32 = vsel %vm3526_vm14, %v3521_v52, %v3523_v3 }
 0x8e7   : > { %3544 = vst [vmem:[%s251_s14 + $0x20] sm:$0xff] %v3531_v32 }
 0x8e8   : > { %v3525_v6 = vpop.permute.xlu1 %3524 }
 0x8e9   : > { %v3532_v43 = vsel %vm3526_vm14, %v3523_v3, %v3525_v6  ;;  %3547 = vst.msk [vmem:[%s251_s14 + $0x30] sm:$0xff] %vm3546_vm9, %v3525_v6 }
 0x8ea   : > { %3545 = vst [vmem:[%s251_s14 + $0x28] sm:$0xff] %v3532_v43 }
 0x8eb PF: > { %s16_s21 = sadd.s32 1, %s3679_s21  }
 0x8ec   : > { %p13_p4 = scmp.ge.s32.totalorder %s16_s21, 4  }
 0x8ee   :  { %15 = sbr.rel (!%p13_p4) target bundleno = 1 (0x1), region = 74 }

</bundles_post_ra>
